<compile_context>
chip_gen: v6e
topology: v6e:2x2x1
jax: 0.10.0
libtpu: 0.0.40
codegen_flags: <defaults>
</compile_context>

<pallas_src>
import functools

import jax
import jax.numpy as jnp
import numpy as np
from jax.experimental import pallas as pl
from jax.experimental.pallas import tpu as pltpu

NUM_KEYPOINTS = 8
IMG_HEIGHT = 16   # feature_size = IMG_HEIGHT // 8 (kept for parity with the PyTorch module)
IMG_WIDTH = 16

_K1_PAD = 32      # layer-1 contraction dim padded 27 -> 32 (zero rows/cols, exact)
_HEAD_PAD = 128   # 1x1-head output lanes padded 8 -> 128 (lane-dense, unmasked stores)


# --------------------- constant gather (im2col) matrices -------------------- #

def _gather_matrices(h_in, w_in, stride, rows_pad=None):
    """0/1 matrices G[k] (k = ky*3+kx) such that G[k] @ act gathers, for every output
    position (ho, wo), the input row at (stride*ho + ky - 1, stride*wo + kx - 1) of a
    3x3 / pad=1 conv.  Rows whose tap falls into the zero padding are all-zero."""
    h_out = (h_in + 2 - 3) // stride + 1
    w_out = (w_in + 2 - 3) // stride + 1
    m_out = h_out * w_out
    rows = m_out if rows_pad is None else rows_pad
    g = np.zeros((9, rows, h_in * w_in), np.float32)
    for ky in range(3):
        for kx in range(3):
            k = ky * 3 + kx
            for ho in range(h_out):
                hi = stride * ho + ky - 1
                if hi < 0 or hi >= h_in:
                    continue
                for wo in range(w_out):
                    wi = stride * wo + kx - 1
                    if 0 <= wi < w_in:
                        g[k, ho * w_out + wo, hi * w_in + wi] = 1.0
    return g


# ------------------------------ fused kernel -------------------------------- #

def _fused_kernel(p_ref, w1_ref, b1_ref,
                  g2_ref, w2_ref, b2_ref,
                  g3_ref, w3_ref, b3_ref,
                  g4_ref, w4_ref, b4_ref,
                  w5_ref, b5_ref, o_ref, *, b_blk, m_per_img):
    """KeypointExtractor forward for one batch-block; activations stay in VMEM/vregs."""
    m1, m2, m3 = m_per_img   # per-image row counts feeding layers 2/3/4

    def mm(a, b):   # bf16 x bf16 -> f32 accumulator, single MXU pass
        return jnp.dot(a, b, preferred_element_type=jnp.float32)

    def conv3x3(act, rows_per_img, g_ref, w_ref, b_ref):
        # act: (b_blk*rows_per_img, c_in) bf16, images stacked along sublanes.
        # Per image: exact 0/1 gather matmul per tap, taps lane-concatenated to
        # (m_out, 9*c_in); images sublane-stacked; ONE deep-K weight matmul + bias + ReLU.
        per_img = []
        for b in range(b_blk):                                     # unrolled, b_blk <= 8
            a_b = act[b * rows_per_img:(b + 1) * rows_per_img, :]
            taps = [mm(g_ref[k], a_b).astype(jnp.bfloat16) for k in range(9)]
            per_img.append(jnp.concatenate(taps, axis=-1))
        gathered = per_img[0] if b_blk == 1 else jnp.concatenate(per_img, axis=0)
        out = mm(gathered, w_ref[...]) + b_ref[...]
        return jnp.maximum(out, 0.0).astype(jnp.bfloat16)

    # layer 1: stride-1 conv as (b_blk*H*W, 32) @ (32, 64) on pre-built im2col patches
    a = jnp.maximum(mm(p_ref[...], w1_ref[...]) + b1_ref[...], 0.0).astype(jnp.bfloat16)
    # layers 2-4: stride-2 3x3 convs as gather + single tap-fused weight matmul
    a = conv3x3(a, m1, g2_ref, w2_ref, b2_ref)      # (b_blk*64, 128)   8x8 spatial
    a = conv3x3(a, m2, g3_ref, w3_ref, b3_ref)      # (b_blk*16, 256)   4x4 spatial
    a = conv3x3(a, m3, g4_ref, w4_ref, b4_ref)      # (b_blk*8,  512)   2x2 spatial (+pad rows)
    # 1x1 keypoint head (no ReLU), output lanes padded to 128, stored in f32
    o_ref[...] = (mm(a, w5_ref[...]) + b5_ref[...]).astype(o_ref.dtype)


# ------------------------------- forward pass ------------------------------- #

def _im2col_3x3_s1(x_nhwc):
    """im2col for the stride-1 / pad-1 first layer; feature order (ky, kx, cin)."""
    b, h, w, c = x_nhwc.shape
    xp = jnp.pad(x_nhwc, ((0, 0), (1, 1), (1, 1), (0, 0)))
    cols = [xp[:, ky:ky + h, kx:kx + w, :] for ky in range(3) for kx in range(3)]
    return jnp.concatenate(cols, axis=-1).reshape(b, h * w, 9 * c)


def _pick_b_blk(bsz):
    # Keep >= 2 grid steps so both v7x TensorCores get work; cap at 8 images/step
    # (enough rows to fill the 128-row v5e MXU without extra vreg/VMEM pressure).
    return max(1, min(8, -(-bsz // 2)))


@jax.jit
def keypoint_extractor_forward(params, x_nchw):
    """Input (B, 3, H, W) f32 -> keypoint logits (B, NUM_KEYPOINTS, H//8, W//8)."""
    bsz, _, h, w = x_nchw.shape
    x = jnp.transpose(x_nchw, (0, 2, 3, 1))                           # NCHW -> NHWC

    m1 = h * w
    m2 = (h // 2) * (w // 2)
    m3 = (h // 4) * (w // 4)
    m4 = (h // 8) * (w // 8)
    m4_pad = max(8, ((m4 + 7) // 8) * 8)                              # sublane-aligned head rows

    b_blk = _pick_b_blk(bsz)
    n_blocks = -(-bsz // b_blk)
    b_pad = n_blocks * b_blk

    # layer-1 im2col (tiny one-time input prep) + K pad 27 -> 32 + batch pad, block-stacked
    patches = _im2col_3x3_s1(x)                                       # (B, H*W, 27)
    patches = jnp.pad(patches, ((0, b_pad - bsz), (0, 0), (0, _K1_PAD - patches.shape[-1])))
    patches = patches.astype(jnp.bfloat16).reshape(n_blocks, b_blk * m1, _K1_PAD)

    # pack weights (bf16, taps concatenated along K) / biases (f32 rows)
    (w1, b1), (w2, b2), (w3, b3), (w4, b4), (w5, b5) = params
    w1p = jnp.pad(w1.reshape(27, 64), ((0, _K1_PAD - 27), (0, 0))).astype(jnp.bfloat16)
    w2p = w2.reshape(9 * 64, 128).astype(jnp.bfloat16)                # rows: (ky,kx) major, cin minor
    w3p = w3.reshape(9 * 128, 256).astype(jnp.bfloat16)
    w4p = w4.reshape(9 * 256, 512).astype(jnp.bfloat16)
    w5p = jnp.pad(w5.reshape(512, NUM_KEYPOINTS),
                  ((0, 0), (0, _HEAD_PAD - NUM_KEYPOINTS))).astype(jnp.bfloat16)
    b5p = jnp.pad(b5.reshape(1, -1), ((0, 0), (0, _HEAD_PAD - NUM_KEYPOINTS))).astype(jnp.float32)
    bias = [b.reshape(1, -1).astype(jnp.float32) for b in (b1, b2, b3, b4)] + [b5p]

    # constant 0/1 gather matrices for the strided convs (trace-time numpy constants)
    g2 = jnp.asarray(_gather_matrices(h, w, 2), jnp.bfloat16)                            # (9, m2, m1)
    g3 = jnp.asarray(_gather_matrices(h // 2, w // 2, 2), jnp.bfloat16)                  # (9, m3, m2)
    g4 = jnp.asarray(_gather_matrices(h // 4, w // 4, 2, rows_pad=m4_pad), jnp.bfloat16) # (9, m4_pad, m3)

    inputs = (patches, w1p, bias[0], g2, w2p, bias[1],
              g3, w3p, bias[2], g4, w4p, bias[3], w5p, bias[4])

    def full(arr):
        # Whole-array block with a constant index map -> DMA'd once across the grid.
        # Double-buffered these constants are ~7.2 MiB, far inside the scoped VMEM
        # of every generation (incl. v7x); single-buffering is deferred (see header).
        return pl.BlockSpec(arr.shape, lambda i, _n=arr.ndim: (0,) * _n)

    in_specs = [pl.BlockSpec((None, b_blk * m1, _K1_PAD), lambda i: (i, 0, 0))]
    in_specs += [full(a) for a in inputs[1:]]
    out_spec = pl.BlockSpec((None, b_blk * m4_pad, _HEAD_PAD), lambda i: (i, 0, 0))

    # advisory cost estimate (tiny kernel -> helps XLA schedule around the call)
    flops = 2 * b_pad * (
        m1 * _K1_PAD * 64
        + 9 * m2 * m1 * 64 + m2 * (9 * 64) * 128
        + 9 * m3 * m2 * 128 + m3 * (9 * 128) * 256
        + 9 * m4_pad * m3 * 256 + m4_pad * (9 * 256) * 512
        + m4_pad * 512 * _HEAD_PAD)
    bytes_accessed = sum(int(np.prod(a.shape)) * a.dtype.itemsize for a in inputs)
    bytes_accessed += n_blocks * b_blk * m4_pad * _HEAD_PAD * 4

    kernel = functools.partial(_fused_kernel, b_blk=b_blk, m_per_img=(m1, m2, m3))

    out = pl.pallas_call(
        kernel,
        out_shape=jax.ShapeDtypeStruct((n_blocks, b_blk * m4_pad, _HEAD_PAD), jnp.float32),
        grid_spec=pltpu.PrefetchScalarGridSpec(
            num_scalar_prefetch=0,
            grid=(n_blocks,),                  # >= 2 steps whenever B >= 2 (both v7x TCs busy)
            in_specs=in_specs,
            out_specs=out_spec,
        ),
        compiler_params=pltpu.CompilerParams(dimension_semantics=("parallel",)),
        cost_estimate=pl.CostEstimate(flops=flops, transcendentals=0,
                                      bytes_accessed=bytes_accessed),
    )(*inputs)

    ho, wo = h // 8, w // 8
    out = out.reshape(b_pad, m4_pad, _HEAD_PAD)[:bsz, :ho * wo, :NUM_KEYPOINTS]
    out = out.reshape(bsz, ho, wo, NUM_KEYPOINTS)
    return jnp.transpose(out, (0, 3, 1, 2))                           # NHWC -> NCHW


# ------------------------- deterministic parameters ------------------------- #

def init_params(key, num_keypoints):
    specs = [
        (3, 3, 3, 64),
        (3, 3, 64, 128),
        (3, 3, 128, 256),
        (3, 3, 256, 512),
        (1, 1, 512, num_keypoints),
    ]
    params = []
    for kh, kw, cin, cout in specs:
        key, kw_key, kb_key = jax.random.split(key, 3)
        fan_in = kh * kw * cin
        w = jax.random.normal(kw_key, (kh, kw, cin, cout), jnp.float32) * np.sqrt(2.0 / fan_in)
        b = jax.random.normal(kb_key, (cout,), jnp.float32) * 0.01
        params.append((w, b))
    return params


# --------------------------------- reference -------------------------------- #

def reference_forward(params, x_nchw):
    x = jnp.transpose(x_nchw, (0, 2, 3, 1))
    strides = (1, 2, 2, 2)
    for (w, b), s in zip(params[:4], strides):
        x = jax.lax.conv_general_dilated(
            x, w, (s, s), ((1, 1), (1, 1)),
            dimension_numbers=("NHWC", "HWIO", "NHWC"),
            precision=jax.lax.Precision.HIGHEST)
        x = jax.nn.relu(x + b)
    w, b = params[4]
    x = jax.lax.conv_general_dilated(
        x, w, (1, 1), ((0, 0), (0, 0)),
        dimension_numbers=("NHWC", "HWIO", "NHWC"),
        precision=jax.lax.Precision.HIGHEST)
    x = x + b
    return jnp.transpose(x, (0, 3, 1, 2))


# ----------------------------------- main ------------------------------------ #

if __name__ == "__main__":
    key = jax.random.PRNGKey(0)
    pkey, xkey = jax.random.split(key)
    params = init_params(pkey, NUM_KEYPOINTS)
    x = jax.random.normal(xkey, (2, 3, IMG_HEIGHT, IMG_WIDTH), jnp.float32)

    out = jax.block_until_ready(keypoint_extractor_forward(params, x))
    assert out.shape == (2, NUM_KEYPOINTS, IMG_HEIGHT // 8, IMG_WIDTH // 8), out.shape

    # The kernel intentionally quantises weights/activations to bf16 (with f32
    # accumulation), so validate against the same module run with bf16-rounded
    # weights; remaining difference is only in-kernel activation rounding.
    params_q = [(w.astype(jnp.bfloat16).astype(jnp.float32), b) for (w, b) in params]
    ref = jax.block_until_ready(reference_forward(params_q, x))
    np.testing.assert_allclose(np.asarray(out), np.asarray(ref), rtol=2e-2, atol=2e-2)

    print("KERNEL_OK")
</pallas_src>

<mosaic_0001>
module attributes {stable_mosaic.version = 11 : i64} {
  func.func @_fused_kernel(%arg0: i32, %arg1: memref<1x256x32xbf16, #tpu.memory_space<vmem>>, %arg2: memref<32x64xbf16, #tpu.memory_space<vmem>>, %arg3: memref<1x64xf32, #tpu.memory_space<vmem>>, %arg4: memref<9x64x256xbf16, #tpu.memory_space<vmem>>, %arg5: memref<576x128xbf16, #tpu.memory_space<vmem>>, %arg6: memref<1x128xf32, #tpu.memory_space<vmem>>, %arg7: memref<9x16x64xbf16, #tpu.memory_space<vmem>>, %arg8: memref<1152x256xbf16, #tpu.memory_space<vmem>>, %arg9: memref<1x256xf32, #tpu.memory_space<vmem>>, %arg10: memref<9x8x16xbf16, #tpu.memory_space<vmem>>, %arg11: memref<2304x512xbf16, #tpu.memory_space<vmem>>, %arg12: memref<1x512xf32, #tpu.memory_space<vmem>>, %arg13: memref<512x128xbf16, #tpu.memory_space<vmem>>, %arg14: memref<1x128xf32, #tpu.memory_space<vmem>>, %arg15: memref<1x8x128xf32, #tpu.memory_space<vmem>>) attributes {dimension_semantics = [#tpu.dimension_semantics<parallel>], iteration_bounds = array<i64: 2>, scalar_prefetch = 0 : i64, scratch_operands = 0 : i64, tpu.core_type = #tpu.core_type<tc>, window_params = [{transform_indices = @transform_0, window_bounds = array<i64: 1, 256, 32>}, {pipeline_mode = #tpu.pipeline_mode<synchronous>, transform_indices = @transform_1, window_bounds = array<i64: 32, 64>}, {pipeline_mode = #tpu.pipeline_mode<synchronous>, transform_indices = @transform_2, window_bounds = array<i64: 1, 64>}, {pipeline_mode = #tpu.pipeline_mode<synchronous>, transform_indices = @transform_3, window_bounds = array<i64: 9, 64, 256>}, {pipeline_mode = #tpu.pipeline_mode<synchronous>, transform_indices = @transform_4, window_bounds = array<i64: 576, 128>}, {pipeline_mode = #tpu.pipeline_mode<synchronous>, transform_indices = @transform_5, window_bounds = array<i64: 1, 128>}, {pipeline_mode = #tpu.pipeline_mode<synchronous>, transform_indices = @transform_6, window_bounds = array<i64: 9, 16, 64>}, {pipeline_mode = #tpu.pipeline_mode<synchronous>, transform_indices = @transform_7, window_bounds = array<i64: 1152, 256>}, {pipeline_mode = #tpu.pipeline_mode<synchronous>, transform_indices = @transform_8, window_bounds = array<i64: 1, 256>}, {pipeline_mode = #tpu.pipeline_mode<synchronous>, transform_indices = @transform_9, window_bounds = array<i64: 9, 8, 16>}, {pipeline_mode = #tpu.pipeline_mode<synchronous>, transform_indices = @transform_10, window_bounds = array<i64: 2304, 512>}, {pipeline_mode = #tpu.pipeline_mode<synchronous>, transform_indices = @transform_11, window_bounds = array<i64: 1, 512>}, {pipeline_mode = #tpu.pipeline_mode<synchronous>, transform_indices = @transform_12, window_bounds = array<i64: 512, 128>}, {pipeline_mode = #tpu.pipeline_mode<synchronous>, transform_indices = @transform_13, window_bounds = array<i64: 1, 128>}, {transform_indices = @transform_14, window_bounds = array<i64: 1, 8, 128>}]} {
    %c0 = arith.constant 0 : index
    %c0_0 = arith.constant 0 : index
    %c0_1 = arith.constant 0 : index
    %0 = vector.load %arg1[%c0, %c0_0, %c0_1] : memref<1x256x32xbf16, #tpu.memory_space<vmem>>, vector<1x256x32xbf16>
    %1 = vector.shape_cast %0 : vector<1x256x32xbf16> to vector<256x32xbf16>
    %c0_2 = arith.constant 0 : index
    %c0_3 = arith.constant 0 : index
    %2 = vector.load %arg2[%c0_2, %c0_3] : memref<32x64xbf16, #tpu.memory_space<vmem>>, vector<32x64xbf16>
    %cst = arith.constant dense<0.000000e+00> : vector<256x64xf32>
    %3 = tpu.matmul %1, %2, %cst {dimension_numbers = #tpu.dot_dimension_numbers<[1], [0], [0], [1], [0, 0, 1, 1], [], []>} : vector<256x32xbf16>, vector<32x64xbf16>, vector<256x64xf32> -> vector<256x64xf32>
    %c0_4 = arith.constant 0 : index
    %c0_5 = arith.constant 0 : index
    %4 = vector.load %arg3[%c0_4, %c0_5] : memref<1x64xf32, #tpu.memory_space<vmem>>, vector<1x64xf32>
    %5 = vector.broadcast %4 : vector<1x64xf32> to vector<256x64xf32>
    %6 = arith.addf %3, %5 : vector<256x64xf32>
    %cst_6 = arith.constant 0.000000e+00 : f32
    %7 = vector.broadcast %cst_6 : f32 to vector<256x64xf32>
    %8 = arith.maximumf %6, %7 : vector<256x64xf32>
    %9 = arith.truncf %8 : vector<256x64xf32> to vector<256x64xbf16>
    %c0_7 = arith.constant 0 : index
    %c0_8 = arith.constant 0 : index
    %c0_9 = arith.constant 0 : index
    %10 = vector.load %arg4[%c0_7, %c0_8, %c0_9] : memref<9x64x256xbf16, #tpu.memory_space<vmem>>, vector<1x64x256xbf16>
    %11 = vector.shape_cast %10 : vector<1x64x256xbf16> to vector<64x256xbf16>
    %cst_10 = arith.constant dense<0.000000e+00> : vector<64x64xf32>
    %12 = tpu.matmul %11, %9, %cst_10 {dimension_numbers = #tpu.dot_dimension_numbers<[1], [0], [0], [1], [0, 0, 1, 1], [], []>} : vector<64x256xbf16>, vector<256x64xbf16>, vector<64x64xf32> -> vector<64x64xf32>
    %13 = arith.truncf %12 : vector<64x64xf32> to vector<64x64xbf16>
    %c1 = arith.constant 1 : index
    %c0_11 = arith.constant 0 : index
    %c0_12 = arith.constant 0 : index
    %14 = vector.load %arg4[%c1, %c0_11, %c0_12] : memref<9x64x256xbf16, #tpu.memory_space<vmem>>, vector<1x64x256xbf16>
    %15 = vector.shape_cast %14 : vector<1x64x256xbf16> to vector<64x256xbf16>
    %cst_13 = arith.constant dense<0.000000e+00> : vector<64x64xf32>
    %16 = tpu.matmul %15, %9, %cst_13 {dimension_numbers = #tpu.dot_dimension_numbers<[1], [0], [0], [1], [0, 0, 1, 1], [], []>} : vector<64x256xbf16>, vector<256x64xbf16>, vector<64x64xf32> -> vector<64x64xf32>
    %17 = arith.truncf %16 : vector<64x64xf32> to vector<64x64xbf16>
    %c2 = arith.constant 2 : index
    %c0_14 = arith.constant 0 : index
    %c0_15 = arith.constant 0 : index
    %18 = vector.load %arg4[%c2, %c0_14, %c0_15] : memref<9x64x256xbf16, #tpu.memory_space<vmem>>, vector<1x64x256xbf16>
    %19 = vector.shape_cast %18 : vector<1x64x256xbf16> to vector<64x256xbf16>
    %cst_16 = arith.constant dense<0.000000e+00> : vector<64x64xf32>
    %20 = tpu.matmul %19, %9, %cst_16 {dimension_numbers = #tpu.dot_dimension_numbers<[1], [0], [0], [1], [0, 0, 1, 1], [], []>} : vector<64x256xbf16>, vector<256x64xbf16>, vector<64x64xf32> -> vector<64x64xf32>
    %21 = arith.truncf %20 : vector<64x64xf32> to vector<64x64xbf16>
    %c3 = arith.constant 3 : index
    %c0_17 = arith.constant 0 : index
    %c0_18 = arith.constant 0 : index
    %22 = vector.load %arg4[%c3, %c0_17, %c0_18] : memref<9x64x256xbf16, #tpu.memory_space<vmem>>, vector<1x64x256xbf16>
    %23 = vector.shape_cast %22 : vector<1x64x256xbf16> to vector<64x256xbf16>
    %cst_19 = arith.constant dense<0.000000e+00> : vector<64x64xf32>
    %24 = tpu.matmul %23, %9, %cst_19 {dimension_numbers = #tpu.dot_dimension_numbers<[1], [0], [0], [1], [0, 0, 1, 1], [], []>} : vector<64x256xbf16>, vector<256x64xbf16>, vector<64x64xf32> -> vector<64x64xf32>
    %25 = arith.truncf %24 : vector<64x64xf32> to vector<64x64xbf16>
    %c4 = arith.constant 4 : index
    %c0_20 = arith.constant 0 : index
    %c0_21 = arith.constant 0 : index
    %26 = vector.load %arg4[%c4, %c0_20, %c0_21] : memref<9x64x256xbf16, #tpu.memory_space<vmem>>, vector<1x64x256xbf16>
    %27 = vector.shape_cast %26 : vector<1x64x256xbf16> to vector<64x256xbf16>
    %cst_22 = arith.constant dense<0.000000e+00> : vector<64x64xf32>
    %28 = tpu.matmul %27, %9, %cst_22 {dimension_numbers = #tpu.dot_dimension_numbers<[1], [0], [0], [1], [0, 0, 1, 1], [], []>} : vector<64x256xbf16>, vector<256x64xbf16>, vector<64x64xf32> -> vector<64x64xf32>
    %29 = arith.truncf %28 : vector<64x64xf32> to vector<64x64xbf16>
    %c5 = arith.constant 5 : index
    %c0_23 = arith.constant 0 : index
    %c0_24 = arith.constant 0 : index
    %30 = vector.load %arg4[%c5, %c0_23, %c0_24] : memref<9x64x256xbf16, #tpu.memory_space<vmem>>, vector<1x64x256xbf16>
    %31 = vector.shape_cast %30 : vector<1x64x256xbf16> to vector<64x256xbf16>
    %cst_25 = arith.constant dense<0.000000e+00> : vector<64x64xf32>
    %32 = tpu.matmul %31, %9, %cst_25 {dimension_numbers = #tpu.dot_dimension_numbers<[1], [0], [0], [1], [0, 0, 1, 1], [], []>} : vector<64x256xbf16>, vector<256x64xbf16>, vector<64x64xf32> -> vector<64x64xf32>
    %33 = arith.truncf %32 : vector<64x64xf32> to vector<64x64xbf16>
    %c6 = arith.constant 6 : index
    %c0_26 = arith.constant 0 : index
    %c0_27 = arith.constant 0 : index
    %34 = vector.load %arg4[%c6, %c0_26, %c0_27] : memref<9x64x256xbf16, #tpu.memory_space<vmem>>, vector<1x64x256xbf16>
    %35 = vector.shape_cast %34 : vector<1x64x256xbf16> to vector<64x256xbf16>
    %cst_28 = arith.constant dense<0.000000e+00> : vector<64x64xf32>
    %36 = tpu.matmul %35, %9, %cst_28 {dimension_numbers = #tpu.dot_dimension_numbers<[1], [0], [0], [1], [0, 0, 1, 1], [], []>} : vector<64x256xbf16>, vector<256x64xbf16>, vector<64x64xf32> -> vector<64x64xf32>
    %37 = arith.truncf %36 : vector<64x64xf32> to vector<64x64xbf16>
    %c7 = arith.constant 7 : index
    %c0_29 = arith.constant 0 : index
    %c0_30 = arith.constant 0 : index
    %38 = vector.load %arg4[%c7, %c0_29, %c0_30] : memref<9x64x256xbf16, #tpu.memory_space<vmem>>, vector<1x64x256xbf16>
    %39 = vector.shape_cast %38 : vector<1x64x256xbf16> to vector<64x256xbf16>
    %cst_31 = arith.constant dense<0.000000e+00> : vector<64x64xf32>
    %40 = tpu.matmul %39, %9, %cst_31 {dimension_numbers = #tpu.dot_dimension_numbers<[1], [0], [0], [1], [0, 0, 1, 1], [], []>} : vector<64x256xbf16>, vector<256x64xbf16>, vector<64x64xf32> -> vector<64x64xf32>
    %41 = arith.truncf %40 : vector<64x64xf32> to vector<64x64xbf16>
    %c8 = arith.constant 8 : index
    %c0_32 = arith.constant 0 : index
    %c0_33 = arith.constant 0 : index
    %42 = vector.load %arg4[%c8, %c0_32, %c0_33] : memref<9x64x256xbf16, #tpu.memory_space<vmem>>, vector<1x64x256xbf16>
    %43 = vector.shape_cast %42 : vector<1x64x256xbf16> to vector<64x256xbf16>
    %cst_34 = arith.constant dense<0.000000e+00> : vector<64x64xf32>
    %44 = tpu.matmul %43, %9, %cst_34 {dimension_numbers = #tpu.dot_dimension_numbers<[1], [0], [0], [1], [0, 0, 1, 1], [], []>} : vector<64x256xbf16>, vector<256x64xbf16>, vector<64x64xf32> -> vector<64x64xf32>
    %45 = arith.truncf %44 : vector<64x64xf32> to vector<64x64xbf16>
    %46 = tpu.concatenate %13, %17, %21, %25, %29, %33, %37, %41, %45 in 1 : vector<64x64xbf16>, vector<64x64xbf16>, vector<64x64xbf16>, vector<64x64xbf16>, vector<64x64xbf16>, vector<64x64xbf16>, vector<64x64xbf16>, vector<64x64xbf16>, vector<64x64xbf16> -> vector<64x576xbf16>
    %c0_35 = arith.constant 0 : index
    %c0_36 = arith.constant 0 : index
    %47 = vector.load %arg5[%c0_35, %c0_36] : memref<576x128xbf16, #tpu.memory_space<vmem>>, vector<576x128xbf16>
    %cst_37 = arith.constant dense<0.000000e+00> : vector<64x128xf32>
    %48 = tpu.matmul %46, %47, %cst_37 {dimension_numbers = #tpu.dot_dimension_numbers<[1], [0], [0], [1], [0, 0, 1, 1], [], []>} : vector<64x576xbf16>, vector<576x128xbf16>, vector<64x128xf32> -> vector<64x128xf32>
    %c0_38 = arith.constant 0 : index
    %c0_39 = arith.constant 0 : index
    %49 = vector.load %arg6[%c0_38, %c0_39] : memref<1x128xf32, #tpu.memory_space<vmem>>, vector<1x128xf32>
    %50 = vector.broadcast %49 : vector<1x128xf32> to vector<64x128xf32>
    %51 = arith.addf %48, %50 : vector<64x128xf32>
    %cst_40 = arith.constant 0.000000e+00 : f32
    %52 = vector.broadcast %cst_40 : f32 to vector<64x128xf32>
    %53 = arith.maximumf %51, %52 : vector<64x128xf32>
    %54 = arith.truncf %53 : vector<64x128xf32> to vector<64x128xbf16>
    %c0_41 = arith.constant 0 : index
    %c0_42 = arith.constant 0 : index
    %c0_43 = arith.constant 0 : index
    %55 = vector.load %arg7[%c0_41, %c0_42, %c0_43] : memref<9x16x64xbf16, #tpu.memory_space<vmem>>, vector<1x16x64xbf16>
    %56 = vector.shape_cast %55 : vector<1x16x64xbf16> to vector<16x64xbf16>
    %cst_44 = arith.constant dense<0.000000e+00> : vector<16x128xf32>
    %57 = tpu.matmul %56, %54, %cst_44 {dimension_numbers = #tpu.dot_dimension_numbers<[1], [0], [0], [1], [0, 0, 1, 1], [], []>} : vector<16x64xbf16>, vector<64x128xbf16>, vector<16x128xf32> -> vector<16x128xf32>
    %58 = arith.truncf %57 : vector<16x128xf32> to vector<16x128xbf16>
    %c1_45 = arith.constant 1 : index
    %c0_46 = arith.constant 0 : index
    %c0_47 = arith.constant 0 : index
    %59 = vector.load %arg7[%c1_45, %c0_46, %c0_47] : memref<9x16x64xbf16, #tpu.memory_space<vmem>>, vector<1x16x64xbf16>
    %60 = vector.shape_cast %59 : vector<1x16x64xbf16> to vector<16x64xbf16>
    %cst_48 = arith.constant dense<0.000000e+00> : vector<16x128xf32>
    %61 = tpu.matmul %60, %54, %cst_48 {dimension_numbers = #tpu.dot_dimension_numbers<[1], [0], [0], [1], [0, 0, 1, 1], [], []>} : vector<16x64xbf16>, vector<64x128xbf16>, vector<16x128xf32> -> vector<16x128xf32>
    %62 = arith.truncf %61 : vector<16x128xf32> to vector<16x128xbf16>
    %c2_49 = arith.constant 2 : index
    %c0_50 = arith.constant 0 : index
    %c0_51 = arith.constant 0 : index
    %63 = vector.load %arg7[%c2_49, %c0_50, %c0_51] : memref<9x16x64xbf16, #tpu.memory_space<vmem>>, vector<1x16x64xbf16>
    %64 = vector.shape_cast %63 : vector<1x16x64xbf16> to vector<16x64xbf16>
    %cst_52 = arith.constant dense<0.000000e+00> : vector<16x128xf32>
    %65 = tpu.matmul %64, %54, %cst_52 {dimension_numbers = #tpu.dot_dimension_numbers<[1], [0], [0], [1], [0, 0, 1, 1], [], []>} : vector<16x64xbf16>, vector<64x128xbf16>, vector<16x128xf32> -> vector<16x128xf32>
    %66 = arith.truncf %65 : vector<16x128xf32> to vector<16x128xbf16>
    %c3_53 = arith.constant 3 : index
    %c0_54 = arith.constant 0 : index
    %c0_55 = arith.constant 0 : index
    %67 = vector.load %arg7[%c3_53, %c0_54, %c0_55] : memref<9x16x64xbf16, #tpu.memory_space<vmem>>, vector<1x16x64xbf16>
    %68 = vector.shape_cast %67 : vector<1x16x64xbf16> to vector<16x64xbf16>
    %cst_56 = arith.constant dense<0.000000e+00> : vector<16x128xf32>
    %69 = tpu.matmul %68, %54, %cst_56 {dimension_numbers = #tpu.dot_dimension_numbers<[1], [0], [0], [1], [0, 0, 1, 1], [], []>} : vector<16x64xbf16>, vector<64x128xbf16>, vector<16x128xf32> -> vector<16x128xf32>
    %70 = arith.truncf %69 : vector<16x128xf32> to vector<16x128xbf16>
    %c4_57 = arith.constant 4 : index
    %c0_58 = arith.constant 0 : index
    %c0_59 = arith.constant 0 : index
    %71 = vector.load %arg7[%c4_57, %c0_58, %c0_59] : memref<9x16x64xbf16, #tpu.memory_space<vmem>>, vector<1x16x64xbf16>
    %72 = vector.shape_cast %71 : vector<1x16x64xbf16> to vector<16x64xbf16>
    %cst_60 = arith.constant dense<0.000000e+00> : vector<16x128xf32>
    %73 = tpu.matmul %72, %54, %cst_60 {dimension_numbers = #tpu.dot_dimension_numbers<[1], [0], [0], [1], [0, 0, 1, 1], [], []>} : vector<16x64xbf16>, vector<64x128xbf16>, vector<16x128xf32> -> vector<16x128xf32>
    %74 = arith.truncf %73 : vector<16x128xf32> to vector<16x128xbf16>
    %c5_61 = arith.constant 5 : index
    %c0_62 = arith.constant 0 : index
    %c0_63 = arith.constant 0 : index
    %75 = vector.load %arg7[%c5_61, %c0_62, %c0_63] : memref<9x16x64xbf16, #tpu.memory_space<vmem>>, vector<1x16x64xbf16>
    %76 = vector.shape_cast %75 : vector<1x16x64xbf16> to vector<16x64xbf16>
    %cst_64 = arith.constant dense<0.000000e+00> : vector<16x128xf32>
    %77 = tpu.matmul %76, %54, %cst_64 {dimension_numbers = #tpu.dot_dimension_numbers<[1], [0], [0], [1], [0, 0, 1, 1], [], []>} : vector<16x64xbf16>, vector<64x128xbf16>, vector<16x128xf32> -> vector<16x128xf32>
    %78 = arith.truncf %77 : vector<16x128xf32> to vector<16x128xbf16>
    %c6_65 = arith.constant 6 : index
    %c0_66 = arith.constant 0 : index
    %c0_67 = arith.constant 0 : index
    %79 = vector.load %arg7[%c6_65, %c0_66, %c0_67] : memref<9x16x64xbf16, #tpu.memory_space<vmem>>, vector<1x16x64xbf16>
    %80 = vector.shape_cast %79 : vector<1x16x64xbf16> to vector<16x64xbf16>
    %cst_68 = arith.constant dense<0.000000e+00> : vector<16x128xf32>
    %81 = tpu.matmul %80, %54, %cst_68 {dimension_numbers = #tpu.dot_dimension_numbers<[1], [0], [0], [1], [0, 0, 1, 1], [], []>} : vector<16x64xbf16>, vector<64x128xbf16>, vector<16x128xf32> -> vector<16x128xf32>
    %82 = arith.truncf %81 : vector<16x128xf32> to vector<16x128xbf16>
    %c7_69 = arith.constant 7 : index
    %c0_70 = arith.constant 0 : index
    %c0_71 = arith.constant 0 : index
    %83 = vector.load %arg7[%c7_69, %c0_70, %c0_71] : memref<9x16x64xbf16, #tpu.memory_space<vmem>>, vector<1x16x64xbf16>
    %84 = vector.shape_cast %83 : vector<1x16x64xbf16> to vector<16x64xbf16>
    %cst_72 = arith.constant dense<0.000000e+00> : vector<16x128xf32>
    %85 = tpu.matmul %84, %54, %cst_72 {dimension_numbers = #tpu.dot_dimension_numbers<[1], [0], [0], [1], [0, 0, 1, 1], [], []>} : vector<16x64xbf16>, vector<64x128xbf16>, vector<16x128xf32> -> vector<16x128xf32>
    %86 = arith.truncf %85 : vector<16x128xf32> to vector<16x128xbf16>
    %c8_73 = arith.constant 8 : index
    %c0_74 = arith.constant 0 : index
    %c0_75 = arith.constant 0 : index
    %87 = vector.load %arg7[%c8_73, %c0_74, %c0_75] : memref<9x16x64xbf16, #tpu.memory_space<vmem>>, vector<1x16x64xbf16>
    %88 = vector.shape_cast %87 : vector<1x16x64xbf16> to vector<16x64xbf16>
    %cst_76 = arith.constant dense<0.000000e+00> : vector<16x128xf32>
    %89 = tpu.matmul %88, %54, %cst_76 {dimension_numbers = #tpu.dot_dimension_numbers<[1], [0], [0], [1], [0, 0, 1, 1], [], []>} : vector<16x64xbf16>, vector<64x128xbf16>, vector<16x128xf32> -> vector<16x128xf32>
    %90 = arith.truncf %89 : vector<16x128xf32> to vector<16x128xbf16>
    %91 = tpu.concatenate %58, %62, %66, %70, %74, %78, %82, %86, %90 in 1 : vector<16x128xbf16>, vector<16x128xbf16>, vector<16x128xbf16>, vector<16x128xbf16>, vector<16x128xbf16>, vector<16x128xbf16>, vector<16x128xbf16>, vector<16x128xbf16>, vector<16x128xbf16> -> vector<16x1152xbf16>
    %c0_77 = arith.constant 0 : index
    %c0_78 = arith.constant 0 : index
    %92 = vector.load %arg8[%c0_77, %c0_78] : memref<1152x256xbf16, #tpu.memory_space<vmem>>, vector<1152x256xbf16>
    %cst_79 = arith.constant dense<0.000000e+00> : vector<16x256xf32>
    %93 = tpu.matmul %91, %92, %cst_79 {dimension_numbers = #tpu.dot_dimension_numbers<[1], [0], [0], [1], [0, 0, 1, 1], [], []>} : vector<16x1152xbf16>, vector<1152x256xbf16>, vector<16x256xf32> -> vector<16x256xf32>
    %c0_80 = arith.constant 0 : index
    %c0_81 = arith.constant 0 : index
    %94 = vector.load %arg9[%c0_80, %c0_81] : memref<1x256xf32, #tpu.memory_space<vmem>>, vector<1x256xf32>
    %95 = vector.broadcast %94 : vector<1x256xf32> to vector<16x256xf32>
    %96 = arith.addf %93, %95 : vector<16x256xf32>
    %cst_82 = arith.constant 0.000000e+00 : f32
    %97 = vector.broadcast %cst_82 : f32 to vector<16x256xf32>
    %98 = arith.maximumf %96, %97 : vector<16x256xf32>
    %99 = arith.truncf %98 : vector<16x256xf32> to vector<16x256xbf16>
    %c0_83 = arith.constant 0 : index
    %c0_84 = arith.constant 0 : index
    %c0_85 = arith.constant 0 : index
    %100 = vector.load %arg10[%c0_83, %c0_84, %c0_85] : memref<9x8x16xbf16, #tpu.memory_space<vmem>>, vector<1x8x16xbf16>
    %101 = vector.shape_cast %100 : vector<1x8x16xbf16> to vector<8x16xbf16>
    %cst_86 = arith.constant dense<0.000000e+00> : vector<8x256xf32>
    %102 = tpu.matmul %101, %99, %cst_86 {dimension_numbers = #tpu.dot_dimension_numbers<[1], [0], [0], [1], [0, 0, 1, 1], [], []>} : vector<8x16xbf16>, vector<16x256xbf16>, vector<8x256xf32> -> vector<8x256xf32>
    %103 = arith.truncf %102 : vector<8x256xf32> to vector<8x256xbf16>
    %c1_87 = arith.constant 1 : index
    %c0_88 = arith.constant 0 : index
    %c0_89 = arith.constant 0 : index
    %104 = vector.load %arg10[%c1_87, %c0_88, %c0_89] : memref<9x8x16xbf16, #tpu.memory_space<vmem>>, vector<1x8x16xbf16>
    %105 = vector.shape_cast %104 : vector<1x8x16xbf16> to vector<8x16xbf16>
    %cst_90 = arith.constant dense<0.000000e+00> : vector<8x256xf32>
    %106 = tpu.matmul %105, %99, %cst_90 {dimension_numbers = #tpu.dot_dimension_numbers<[1], [0], [0], [1], [0, 0, 1, 1], [], []>} : vector<8x16xbf16>, vector<16x256xbf16>, vector<8x256xf32> -> vector<8x256xf32>
    %107 = arith.truncf %106 : vector<8x256xf32> to vector<8x256xbf16>
    %c2_91 = arith.constant 2 : index
    %c0_92 = arith.constant 0 : index
    %c0_93 = arith.constant 0 : index
    %108 = vector.load %arg10[%c2_91, %c0_92, %c0_93] : memref<9x8x16xbf16, #tpu.memory_space<vmem>>, vector<1x8x16xbf16>
    %109 = vector.shape_cast %108 : vector<1x8x16xbf16> to vector<8x16xbf16>
    %cst_94 = arith.constant dense<0.000000e+00> : vector<8x256xf32>
    %110 = tpu.matmul %109, %99, %cst_94 {dimension_numbers = #tpu.dot_dimension_numbers<[1], [0], [0], [1], [0, 0, 1, 1], [], []>} : vector<8x16xbf16>, vector<16x256xbf16>, vector<8x256xf32> -> vector<8x256xf32>
    %111 = arith.truncf %110 : vector<8x256xf32> to vector<8x256xbf16>
    %c3_95 = arith.constant 3 : index
    %c0_96 = arith.constant 0 : index
    %c0_97 = arith.constant 0 : index
    %112 = vector.load %arg10[%c3_95, %c0_96, %c0_97] : memref<9x8x16xbf16, #tpu.memory_space<vmem>>, vector<1x8x16xbf16>
    %113 = vector.shape_cast %112 : vector<1x8x16xbf16> to vector<8x16xbf16>
    %cst_98 = arith.constant dense<0.000000e+00> : vector<8x256xf32>
    %114 = tpu.matmul %113, %99, %cst_98 {dimension_numbers = #tpu.dot_dimension_numbers<[1], [0], [0], [1], [0, 0, 1, 1], [], []>} : vector<8x16xbf16>, vector<16x256xbf16>, vector<8x256xf32> -> vector<8x256xf32>
    %115 = arith.truncf %114 : vector<8x256xf32> to vector<8x256xbf16>
    %c4_99 = arith.constant 4 : index
    %c0_100 = arith.constant 0 : index
    %c0_101 = arith.constant 0 : index
    %116 = vector.load %arg10[%c4_99, %c0_100, %c0_101] : memref<9x8x16xbf16, #tpu.memory_space<vmem>>, vector<1x8x16xbf16>
    %117 = vector.shape_cast %116 : vector<1x8x16xbf16> to vector<8x16xbf16>
    %cst_102 = arith.constant dense<0.000000e+00> : vector<8x256xf32>
    %118 = tpu.matmul %117, %99, %cst_102 {dimension_numbers = #tpu.dot_dimension_numbers<[1], [0], [0], [1], [0, 0, 1, 1], [], []>} : vector<8x16xbf16>, vector<16x256xbf16>, vector<8x256xf32> -> vector<8x256xf32>
    %119 = arith.truncf %118 : vector<8x256xf32> to vector<8x256xbf16>
    %c5_103 = arith.constant 5 : index
    %c0_104 = arith.constant 0 : index
    %c0_105 = arith.constant 0 : index
    %120 = vector.load %arg10[%c5_103, %c0_104, %c0_105] : memref<9x8x16xbf16, #tpu.memory_space<vmem>>, vector<1x8x16xbf16>
    %121 = vector.shape_cast %120 : vector<1x8x16xbf16> to vector<8x16xbf16>
    %cst_106 = arith.constant dense<0.000000e+00> : vector<8x256xf32>
    %122 = tpu.matmul %121, %99, %cst_106 {dimension_numbers = #tpu.dot_dimension_numbers<[1], [0], [0], [1], [0, 0, 1, 1], [], []>} : vector<8x16xbf16>, vector<16x256xbf16>, vector<8x256xf32> -> vector<8x256xf32>
    %123 = arith.truncf %122 : vector<8x256xf32> to vector<8x256xbf16>
    %c6_107 = arith.constant 6 : index
    %c0_108 = arith.constant 0 : index
    %c0_109 = arith.constant 0 : index
    %124 = vector.load %arg10[%c6_107, %c0_108, %c0_109] : memref<9x8x16xbf16, #tpu.memory_space<vmem>>, vector<1x8x16xbf16>
    %125 = vector.shape_cast %124 : vector<1x8x16xbf16> to vector<8x16xbf16>
    %cst_110 = arith.constant dense<0.000000e+00> : vector<8x256xf32>
    %126 = tpu.matmul %125, %99, %cst_110 {dimension_numbers = #tpu.dot_dimension_numbers<[1], [0], [0], [1], [0, 0, 1, 1], [], []>} : vector<8x16xbf16>, vector<16x256xbf16>, vector<8x256xf32> -> vector<8x256xf32>
    %127 = arith.truncf %126 : vector<8x256xf32> to vector<8x256xbf16>
    %c7_111 = arith.constant 7 : index
    %c0_112 = arith.constant 0 : index
    %c0_113 = arith.constant 0 : index
    %128 = vector.load %arg10[%c7_111, %c0_112, %c0_113] : memref<9x8x16xbf16, #tpu.memory_space<vmem>>, vector<1x8x16xbf16>
    %129 = vector.shape_cast %128 : vector<1x8x16xbf16> to vector<8x16xbf16>
    %cst_114 = arith.constant dense<0.000000e+00> : vector<8x256xf32>
    %130 = tpu.matmul %129, %99, %cst_114 {dimension_numbers = #tpu.dot_dimension_numbers<[1], [0], [0], [1], [0, 0, 1, 1], [], []>} : vector<8x16xbf16>, vector<16x256xbf16>, vector<8x256xf32> -> vector<8x256xf32>
    %131 = arith.truncf %130 : vector<8x256xf32> to vector<8x256xbf16>
    %c8_115 = arith.constant 8 : index
    %c0_116 = arith.constant 0 : index
    %c0_117 = arith.constant 0 : index
    %132 = vector.load %arg10[%c8_115, %c0_116, %c0_117] : memref<9x8x16xbf16, #tpu.memory_space<vmem>>, vector<1x8x16xbf16>
    %133 = vector.shape_cast %132 : vector<1x8x16xbf16> to vector<8x16xbf16>
    %cst_118 = arith.constant dense<0.000000e+00> : vector<8x256xf32>
    %134 = tpu.matmul %133, %99, %cst_118 {dimension_numbers = #tpu.dot_dimension_numbers<[1], [0], [0], [1], [0, 0, 1, 1], [], []>} : vector<8x16xbf16>, vector<16x256xbf16>, vector<8x256xf32> -> vector<8x256xf32>
    %135 = arith.truncf %134 : vector<8x256xf32> to vector<8x256xbf16>
    %136 = tpu.concatenate %103, %107, %111, %115, %119, %123, %127, %131, %135 in 1 : vector<8x256xbf16>, vector<8x256xbf16>, vector<8x256xbf16>, vector<8x256xbf16>, vector<8x256xbf16>, vector<8x256xbf16>, vector<8x256xbf16>, vector<8x256xbf16>, vector<8x256xbf16> -> vector<8x2304xbf16>
    %c0_119 = arith.constant 0 : index
    %c0_120 = arith.constant 0 : index
    %137 = vector.load %arg11[%c0_119, %c0_120] : memref<2304x512xbf16, #tpu.memory_space<vmem>>, vector<2304x512xbf16>
    %cst_121 = arith.constant dense<0.000000e+00> : vector<8x512xf32>
    %138 = tpu.matmul %136, %137, %cst_121 {dimension_numbers = #tpu.dot_dimension_numbers<[1], [0], [0], [1], [0, 0, 1, 1], [], []>} : vector<8x2304xbf16>, vector<2304x512xbf16>, vector<8x512xf32> -> vector<8x512xf32>
    %c0_122 = arith.constant 0 : index
    %c0_123 = arith.constant 0 : index
    %139 = vector.load %arg12[%c0_122, %c0_123] : memref<1x512xf32, #tpu.memory_space<vmem>>, vector<1x512xf32>
    %140 = vector.broadcast %139 : vector<1x512xf32> to vector<8x512xf32>
    %141 = arith.addf %138, %140 : vector<8x512xf32>
    %cst_124 = arith.constant 0.000000e+00 : f32
    %142 = vector.broadcast %cst_124 : f32 to vector<8x512xf32>
    %143 = arith.maximumf %141, %142 : vector<8x512xf32>
    %144 = arith.truncf %143 : vector<8x512xf32> to vector<8x512xbf16>
    %c0_125 = arith.constant 0 : index
    %c0_126 = arith.constant 0 : index
    %145 = vector.load %arg13[%c0_125, %c0_126] : memref<512x128xbf16, #tpu.memory_space<vmem>>, vector<512x128xbf16>
    %cst_127 = arith.constant dense<0.000000e+00> : vector<8x128xf32>
    %146 = tpu.matmul %144, %145, %cst_127 {dimension_numbers = #tpu.dot_dimension_numbers<[1], [0], [0], [1], [0, 0, 1, 1], [], []>} : vector<8x512xbf16>, vector<512x128xbf16>, vector<8x128xf32> -> vector<8x128xf32>
    %c0_128 = arith.constant 0 : index
    %c0_129 = arith.constant 0 : index
    %147 = vector.load %arg14[%c0_128, %c0_129] : memref<1x128xf32, #tpu.memory_space<vmem>>, vector<1x128xf32>
    %148 = vector.broadcast %147 : vector<1x128xf32> to vector<8x128xf32>
    %149 = arith.addf %146, %148 : vector<8x128xf32>
    %c0_130 = arith.constant 0 : index
    %c0_131 = arith.constant 0 : index
    %c0_132 = arith.constant 0 : index
    %150 = vector.load %arg15[%c0_130, %c0_131, %c0_132] : memref<1x8x128xf32, #tpu.memory_space<vmem>>, vector<1x8x128xf32>
    %151 = vector.shape_cast %150 : vector<1x8x128xf32> to vector<8x128xf32>
    %152 = vector.shape_cast %149 : vector<8x128xf32> to vector<1x8x128xf32>
    tpu.vector_store %arg15[%c0_130, %c0_131, %c0_132], %152 {strides = array<i32>} : memref<1x8x128xf32, #tpu.memory_space<vmem>>, vector<1x8x128xf32>,
    return
  }
  func.func @transform_0(%arg0: i32) -> (i32, i32, i32) {
    %c0_i32 = arith.constant 0 : i32
    %c0_i32_0 = arith.constant 0 : i32
    %c0_i32_1 = arith.constant 0 : i32
    return %arg0, %c0_i32, %c0_i32_0 : i32, i32, i32
  }
  func.func @transform_1(%arg0: i32) -> (i32, i32) {
    %c0_i32 = arith.constant 0 : i32
    %c0_i32_0 = arith.constant 0 : i32
    %c0_i32_1 = arith.constant 0 : i32
    return %c0_i32, %c0_i32_0 : i32, i32
  }
  func.func @transform_2(%arg0: i32) -> (i32, i32) {
    %c0_i32 = arith.constant 0 : i32
    %c0_i32_0 = arith.constant 0 : i32
    %c0_i32_1 = arith.constant 0 : i32
    return %c0_i32, %c0_i32_0 : i32, i32
  }
  func.func @transform_3(%arg0: i32) -> (i32, i32, i32) {
    %c0_i32 = arith.constant 0 : i32
    %c0_i32_0 = arith.constant 0 : i32
    %c0_i32_1 = arith.constant 0 : i32
    %c0_i32_2 = arith.constant 0 : i32
    return %c0_i32, %c0_i32_0, %c0_i32_1 : i32, i32, i32
  }
  func.func @transform_4(%arg0: i32) -> (i32, i32) {
    %c0_i32 = arith.constant 0 : i32
    %c0_i32_0 = arith.constant 0 : i32
    %c0_i32_1 = arith.constant 0 : i32
    return %c0_i32, %c0_i32_0 : i32, i32
  }
  func.func @transform_5(%arg0: i32) -> (i32, i32) {
    %c0_i32 = arith.constant 0 : i32
    %c0_i32_0 = arith.constant 0 : i32
    %c0_i32_1 = arith.constant 0 : i32
    return %c0_i32, %c0_i32_0 : i32, i32
  }
  func.func @transform_6(%arg0: i32) -> (i32, i32, i32) {
    %c0_i32 = arith.constant 0 : i32
    %c0_i32_0 = arith.constant 0 : i32
    %c0_i32_1 = arith.constant 0 : i32
    %c0_i32_2 = arith.constant 0 : i32
    return %c0_i32, %c0_i32_0, %c0_i32_1 : i32, i32, i32
  }
  func.func @transform_7(%arg0: i32) -> (i32, i32) {
    %c0_i32 = arith.constant 0 : i32
    %c0_i32_0 = arith.constant 0 : i32
    %c0_i32_1 = arith.constant 0 : i32
    return %c0_i32, %c0_i32_0 : i32, i32
  }
  func.func @transform_8(%arg0: i32) -> (i32, i32) {
    %c0_i32 = arith.constant 0 : i32
    %c0_i32_0 = arith.constant 0 : i32
    %c0_i32_1 = arith.constant 0 : i32
    return %c0_i32, %c0_i32_0 : i32, i32
  }
  func.func @transform_9(%arg0: i32) -> (i32, i32, i32) {
    %c0_i32 = arith.constant 0 : i32
    %c0_i32_0 = arith.constant 0 : i32
    %c0_i32_1 = arith.constant 0 : i32
    %c0_i32_2 = arith.constant 0 : i32
    return %c0_i32, %c0_i32_0, %c0_i32_1 : i32, i32, i32
  }
  func.func @transform_10(%arg0: i32) -> (i32, i32) {
    %c0_i32 = arith.constant 0 : i32
    %c0_i32_0 = arith.constant 0 : i32
    %c0_i32_1 = arith.constant 0 : i32
    return %c0_i32, %c0_i32_0 : i32, i32
  }
  func.func @transform_11(%arg0: i32) -> (i32, i32) {
    %c0_i32 = arith.constant 0 : i32
    %c0_i32_0 = arith.constant 0 : i32
    %c0_i32_1 = arith.constant 0 : i32
    return %c0_i32, %c0_i32_0 : i32, i32
  }
  func.func @transform_12(%arg0: i32) -> (i32, i32) {
    %c0_i32 = arith.constant 0 : i32
    %c0_i32_0 = arith.constant 0 : i32
    %c0_i32_1 = arith.constant 0 : i32
    return %c0_i32, %c0_i32_0 : i32, i32
  }
  func.func @transform_13(%arg0: i32) -> (i32, i32) {
    %c0_i32 = arith.constant 0 : i32
    %c0_i32_0 = arith.constant 0 : i32
    %c0_i32_1 = arith.constant 0 : i32
    return %c0_i32, %c0_i32_0 : i32, i32
  }
  func.func @transform_14(%arg0: i32) -> (i32, i32, i32) {
    %c0_i32 = arith.constant 0 : i32
    %c0_i32_0 = arith.constant 0 : i32
    %c0_i32_1 = arith.constant 0 : i32
    return %arg0, %c0_i32, %c0_i32_0 : i32, i32, i32
  }
}

</mosaic_0001>

<bundles_post_ra>
// kernel: keypoint_extractor_forward.1
= control target key start
LH: loop header
LB: loop body
LE: loop exit
PB: predicated region body
PF: predicated region fallthrough
CT: control target
= control target key end

     0   :  { %s12299_s29 = smov 0   ;;  %s15840_s0 = inlined_call_operand.vmem [shape: bf16[2,256,32], index: 0, kind: input, shape index: {}]   ;;  %s15841_s1 = inlined_call_operand.vmem [shape: bf16[32,64], index: 1, kind: input, shape index: {}]   ;;  %s15842_s2 = inlined_call_operand.vmem [shape: f32[1,64], index: 2, kind: input, shape index: {}]   ;;  %s15843_s3 = inlined_call_operand.vmem [shape: bf16[9,64,256], index: 3, kind: input, shape index: {}]   ;;  %s15844_s4 = inlined_call_operand.vmem [shape: bf16[576,128], index: 4, kind: input, shape index: {}]   ;;  %s15845_s5 = inlined_call_operand.vmem [shape: f32[1,128], index: 5, kind: input, shape index: {}]   ;;  %s15846_s6 = inlined_call_operand.vmem [shape: bf16[9,16,64], index: 6, kind: input, shape index: {}]   ;;  %s15847_s7 = inlined_call_operand.vmem [shape: bf16[1152,256], index: 7, kind: input, shape index: {}]   ;;  %s15848_s8 = inlined_call_operand.vmem [shape: f32[1,256], index: 8, kind: input, shape index: {}]   ;;  %s15849_s9 = inlined_call_operand.vmem [shape: bf16[9,8,16], index: 9, kind: input, shape index: {}]   ;;  %s15850_s10 = inlined_call_operand.vmem [shape: bf16[2304,512], index: 10, kind: input, shape index: {}]   ;;  %s15851_s11 = inlined_call_operand.vmem [shape: f32[1,512], index: 11, kind: input, shape index: {}]   ;;  %s15852_s12 = inlined_call_operand.vmem [shape: bf16[512,128], index: 12, kind: input, shape index: {}]   ;;  %s15853_s13 = inlined_call_operand.vmem [shape: f32[1,128], index: 13, kind: input, shape index: {}]   ;;  %s15854_s14 = inlined_call_operand.vmem [shape: f32[2,8,128], index: 14, kind: output, shape index: {}]  }
   0x1 LB: > { %s9174_s30 = sadd.s32 4294967295, %s12218_s29   ;;  %p9178_p0 = scmp.ge.s32.totalorder %s12218_s29, 1  ;;  %s12218_s29 = sphi %s12299_s29, %s24_s29  }
   0x2   : > { %p412_p1 = scmp.lt.s32.totalorder %s12218_s29, 3 }
   0x4   : > { %p413_p2 = pnand %p9178_p0, %p412_p1 }
   0x5   : > { %p457_p3 = scmp.lt.s32.totalorder (!%p413_p2), %s9174_s30, 1  ;;  %s12220_s23 = smov (!%p413_p2), 64  }
   0x6   : > { %416 = sbr.rel (%p413_p2) target bundleno = 2632 (0xa48), region = 76 }
   0xb   : > { %v10928_v0 = vld [vmem:[%s15841_s1 + $0x8] sm:$0xff]   ;;  %v10929_v1 = vld [vmem:[%s15841_s1] sm:$0xff]   ;;  %s15858_s30 = smov (!%p457_p3, %s9174_s30), 1  ;;  %vm602_vm0 = vcmask 261120   ;;  %vm1969_vm1 = vcmask 523264   ;;  %vm12222_vm2 = vmmov 0  }
   0xc   : > { %10756 = vmatprep.subr.bf16.mxu0 %v10928_v0  ;;  %s10200_s19 = sshll.u32 %s15858_s30, 7  ;;  %v10948_v18 = vld [vmem:[%s15843_s3 + $0x4] ss:$8 sps:$4 sm:$0xff]   ;;  %v12362_v21 = vld [vmem:[%s15842_s2] ss:$0 sm:$0xff]  ;;  %vm4122_vm3 = vcmask 130048  }
   0xd   : > { %10757 = vmatpush3.bf16.msra.mxu0 %v10928_v0  ;;  %s12319_s22 = scalar_lea.vmem %s15840_s0, %s10200_s19  ;;  %v10951_v19 = vld [vmem:[%s15843_s3 + $0x84] ss:$8 sps:$4 sm:$0xff]   ;;  %940 = vmatprep.mubr.bf16.mxu1 %v10948_v18  ;;  %s9181_s16 = sshll.u32 %s15858_s30, 3 }
   0xe   : > { %10758 = vmatprep.subr.bf16.mxu0 %v10929_v1  ;;  %v10930_v2 = vld [vmem:[%s12319_s22] sm:$0xff]   ;;  %v10931_v3 = vld [vmem:[%s12319_s22 + $0x8] sm:$0xff]   ;;  %v10932_v4 = vld [vmem:[%s12319_s22 + $0x10] sm:$0xff]   ;;  %s465_s19 = scalar_lea.vmem %s15854_s14, %s9181_s16 }
   0xf   : > { %10760 = vmatprep.mubr.msk.bf16.mxu0 %vm602_vm0, %v10930_v2  ;;  %v10933_v5 = vld [vmem:[%s12319_s22 + $0x18] sm:$0xff]   ;;  %v10934_v6 = vld [vmem:[%s12319_s22 + $0x20] sm:$0xff]   ;;  %v10935_v7 = vld [vmem:[%s12319_s22 + $0x28] sm:$0xff]  }
  0x10   : > { %v10936_v8 = vld [vmem:[%s12319_s22 + $0x30] sm:$0xff]   ;;  %v10937_v9 = vld [vmem:[%s12319_s22 + $0x38] sm:$0xff]   ;;  %v10938_v10 = vld [vmem:[%s12319_s22 + $0x40] sm:$0xff]  }
  0x11   : > { %10759 = vmatpush3.bf16.msra.mxu0 %v10929_v1  ;;  %v10939_v11 = vld [vmem:[%s12319_s22 + $0x48] sm:$0xff]   ;;  %v10940_v12 = vld [vmem:[%s12319_s22 + $0x50] sm:$0xff]   ;;  %v10941_v13 = vld [vmem:[%s12319_s22 + $0x58] sm:$0xff]  }
  0x12   : > { %v10942_v14 = vld [vmem:[%s12319_s22 + $0x60] sm:$0xff]   ;;  %v10943_v15 = vld [vmem:[%s12319_s22 + $0x68] sm:$0xff]   ;;  %v10944_v16 = vld [vmem:[%s12319_s22 + $0x70] sm:$0xff]  }
  0x13   : > { %v10945_v17 = vld [vmem:[%s12319_s22 + $0x78] sm:$0xff]  }
  0x14   : > { %10761 = vmatmul.mubr.msk.bf16.vlgmr.msra.gmra.mxu0 %vm602_vm0, %v10931_v3 }
  0x15   : > { %10764 = vmatprep.mubr.msk.bf16.mxu0 %vm602_vm0, %v10932_v4 }
  0x1c   : > { %10765 = vmatmul.mubr.msk.bf16.gmra.mxu0 %vm602_vm0, %v10933_v5 }
  0x1d   : > { %10768 = vmatprep.mubr.msk.bf16.mxu0 %vm602_vm0, %v10934_v6 }
  0x24   : > { %10769 = vmatmul.mubr.msk.bf16.gmra.mxu0 %vm602_vm0, %v10935_v7 }
  0x25   : > { %10772 = vmatprep.mubr.msk.bf16.mxu0 %vm602_vm0, %v10936_v8 }
  0x2c   : > { %10773 = vmatmul.mubr.msk.bf16.gmra.mxu0 %vm602_vm0, %v10937_v9 }
  0x2d   : > { %10776 = vmatprep.mubr.msk.bf16.mxu0 %vm602_vm0, %v10938_v10 }
  0x34   : > { %10777 = vmatmul.mubr.msk.bf16.gmra.mxu0 %vm602_vm0, %v10939_v11 }
  0x35   : > { %10780 = vmatprep.mubr.msk.bf16.mxu0 %vm602_vm0, %v10940_v12 }
  0x3c   : > { %10781 = vmatmul.mubr.msk.bf16.gmra.mxu0 %vm602_vm0, %v10941_v13 }
  0x3d   : > { %10784 = vmatprep.mubr.msk.bf16.mxu0 %vm602_vm0, %v10942_v14 }
  0x44   : > { %10785 = vmatmul.mubr.msk.bf16.gmra.mxu0 %vm602_vm0, %v10943_v15 }
  0x45   : > { %10788 = vmatprep.mubr.msk.bf16.mxu0 %vm602_vm0, %v10944_v16 }
  0x4c   : > { %10789 = vmatmul.mubr.msk.bf16.gmra.mxu0 %vm602_vm0, %v10945_v17 }
  0x4d   : > { %1176 = vmatprep.mubr.bf16.mxu0 %v10951_v19 }
  0xd4   : > { %v10762_v20 = vpop.f32.mrf.mxu0 }
  0xd5   : > { %v694_v23 = vadd.f32 %v10762_v20, %v12362_v21 }
  0xd6   : > { %v12364_v22 = vpop.f32.mrf.mxu0 }
  0xd7   : > { %v814_v27 = vmax.f32 %v694_v23, 0.0 }
  0xd8   : > { %v10763_v24 = vpop.f32.mrf.mxu0 }
  0xd9   : > { %v697_v25 = vadd.f32 %v10763_v24, %v12362_v21 }
  0xda   : > { %v12368_v26 = vpop.f32.mrf.mxu0 }
  0xdb   : > { %v815_v28 = vmax.f32 %v697_v25, 0.0 }
  0xdc   : > { %v10766_v29 = vpop.f32.mrf.mxu0 }
  0xdd   : > { %v12370_v30 = vpack.c.bf16 %v815_v28, %v814_v27  ;;  %v710_v32 = vadd.f32 %v10766_v29, %v12362_v21 }
  0xde   : > { %v12372_v31 = vpop.f32.mrf.mxu0 }
  0xdf   : > { %v818_v36 = vmax.f32 %v710_v32, 0.0 }
  0xe0   : > { %v10767_v33 = vpop.f32.mrf.mxu0 }
  0xe1   : > { %v713_v34 = vadd.f32 %v10767_v33, %v12362_v21 }
  0xe2   : > { %v12376_v35 = vpop.f32.mrf.mxu0 }
  0xe3   : > { %v819_v37 = vmax.f32 %v713_v34, 0.0 }
  0xe4   : > { %v10770_v38 = vpop.f32.mrf.mxu0 }
  0xe5   : > { %v12378_v39 = vpack.c.bf16 %v819_v37, %v818_v36  ;;  %v726_v24 = vadd.f32 %v10770_v38, %v12362_v21 }
  0xe6   : > { %v12380_v40 = vpop.f32.mrf.mxu0 }
  0xe7   : > { %v822_v38 = vmax.f32 %v726_v24, 0.0  ;;  %v10966_v24 = vld [vmem:[%s15843_s3 + $0x30] ss:$8 sps:$4 sm:$0xff]  }
  0xe8   : > { %v10771_v41 = vpop.f32.mrf.mxu0 }
  0xe9   : > { %v729_v16 = vadd.f32 %v10771_v41, %v12362_v21  ;;  %v718_v41 = vadd.f32 %v12362_v21, %v12380_v40 }
  0xea   : > { %v720_v42 = vpop.f32.mrf.mxu0 }
  0xeb   : > { %v823_v29 = vmax.f32 %v729_v16, 0.0  ;;  %v721_v32 = vadd.f32 %v12362_v21, %v720_v42  ;;  %v820_v40 = vmax.f32 %v718_v41, 0.0  ;;  %v10960_v16 = vld [vmem:[%s15843_s3 + $0x20] ss:$8 sps:$4 sm:$0xff]   ;;  %v10981_v41 = vld [vmem:[%s15843_s3 + $0x110] ss:$8 sps:$4 sm:$0xff]  }
  0xec   : > { %v10774_v43 = vpop.f32.mrf.mxu0 }
  0xed   : > { %v742_v63 = vadd.f32 %v10774_v43, %v12362_v21  ;;  %v12431_v42 = vpack.c.bf16 %v823_v29, %v822_v38  ;;  %v10970_v29 = vld [vmem:[%s15843_s3 + $0x40] ss:$8 sps:$4 sm:$0xff]   ;;  %v10978_v38 = vld [vmem:[%s15843_s3 + $0x50] ss:$8 sps:$4 sm:$0xff]  }
  0xee   : > { %v733_v44 = vpop.f32.mrf.mxu0 }
  0xef   : > { %v826_v10 = vmax.f32 %v742_v63, 0.0  ;;  %v734_v11 = vadd.f32 %v12362_v21, %v733_v44 }
  0xf0   : > { %v10775_v45 = vpop.f32.mrf.mxu0 }
  0xf1   : > { %v745_v60 = vadd.f32 %v10775_v45, %v12362_v21  ;;  %v824_v25 = vmax.f32 %v734_v11, 0.0  ;;  %v821_v45 = vmax.f32 %v721_v32, 0.0  ;;  %v10954_v11 = vld [vmem:[%s15843_s3 + $0x10] ss:$8 sps:$4 sm:$0xff]   ;;  %v10973_v32 = vld [vmem:[%s15843_s3 + $0x100] ss:$8 sps:$4 sm:$0xff]  }
  0xf2   : > { %v736_v46 = vpop.f32.mrf.mxu0 }
  0xf3   : > { %v827_v3 = vmax.f32 %v745_v60, 0.0  ;;  %v737_v4 = vadd.f32 %v12362_v21, %v736_v46 }
  0xf4   : > { %v12382_v47 = vpop.f32.mrf.mxu0 }
  0xf5   : > { %v12405_v17 = vpack.c.bf16 %v827_v3, %v826_v10  ;;  %v825_v18 = vmax.f32 %v737_v4, 0.0  ;;  %v10955_v10 = vld [vmem:[%s15843_s3 + $0x94] ss:$8 sps:$4 sm:$0xff]  }
  0xf6   : > { %v12384_v48 = vpop.f32.mrf.mxu0 }
  0xf7   : > { %v12419_v33 = vpack.c.bf16 %v825_v18, %v824_v25  ;;  %v10963_v18 = vld [vmem:[%s15843_s3 + $0xa0] ss:$8 sps:$4 sm:$0xff]   ;;  %v10969_v25 = vld [vmem:[%s15843_s3 + $0xb0] ss:$8 sps:$4 sm:$0xff]  }
  0xf8   : > { %v12386_v49 = vpop.f32.mrf.mxu0 }
  0xfa   : > { %v12388_v50 = vpop.f32.mrf.mxu0 }
  0xfb   : > { %v753_v63 = vadd.f32 %v12362_v21, %v12388_v50 }
  0xfc   : > { %v10782_v51 = vpop.f32.mrf.mxu0 }
  0xfd   : > { %v774_v43 = vadd.f32 %v10782_v51, %v12362_v21  ;;  %v829_v4 = vmax.f32 %v753_v63, 0.0  ;;  %v11006_v63 = vld [vmem:[%s15843_s3 + $0xf4] ss:$8 sps:$4 sm:$0xff]  }
  0xfe   : > { %v12390_v52 = vpop.f32.mrf.mxu0 }
  0xff   : > { %v766_v51 = vadd.f32 %v12362_v21, %v12390_v52  ;;  %v758_v52 = vadd.f32 %v12382_v47, %v12362_v21  ;;  %v750_v47 = vadd.f32 %v12362_v21, %v12384_v48 }
 0x100   : > { %v10783_v53 = vpop.f32.mrf.mxu0 }
 0x101   : > { %v777_v34 = vadd.f32 %v10783_v53, %v12362_v21  ;;  %v828_v48 = vmax.f32 %v750_v47, 0.0  ;;  %v11033_v47 = vld [vmem:[%s15843_s3 + $0x194] ss:$8 sps:$4 sm:$0xff]  }
 0x102   : > { %v768_v54 = vpop.f32.mrf.mxu0 }
 0x103   : > { %v835_v46 = vmax.f32 %v777_v34, 0.0  ;;  %v769_v53 = vadd.f32 %v12362_v21, %v768_v54  ;;  %v761_v54 = vadd.f32 %v12386_v49, %v12362_v21  ;;  %v10976_v34 = vld [vmem:[%s15843_s3 + $0x54] ss:$8 sps:$4 sm:$0xff]  }
 0x104   : > { %v10786_v55 = vpop.f32.mrf.mxu0 }
 0x105   : > { %v790_v12 = vadd.f32 %v10786_v55, %v12362_v21  ;;  %v833_v60 = vmax.f32 %v769_v53, 0.0  ;;  %v831_v49 = vmax.f32 %v761_v54, 0.0  ;;  %v10988_v53 = vld [vmem:[%s15843_s3 + $0x74] ss:$8 sps:$4 sm:$0xff]   ;;  %v10999_v54 = vld [vmem:[%s15843_s3 + $0x184] ss:$8 sps:$4 sm:$0xff]  }
 0x106   : > { %v781_v56 = vpop.f32.mrf.mxu0 }
 0x107   : > { %v838_v27 = vmax.f32 %v790_v12, 0.0  ;;  %v782_v28 = vadd.f32 %v12362_v21, %v781_v56  ;;  %v834_v56 = vmax.f32 %v774_v43, 0.0  ;;  %v10957_v12 = vld [vmem:[%s15843_s3 + $0x90] ss:$8 sps:$4 sm:$0xff]   ;;  %v10982_v43 = vld [vmem:[%s15843_s3 + $0x64] ss:$8 sps:$4 sm:$0xff]  }
 0x108   : > { %v10787_v57 = vpop.f32.mrf.mxu0 }
 0x109   : > { %v793_v6 = vadd.f32 %v10787_v57, %v12362_v21  ;;  %v836_v44 = vmax.f32 %v782_v28, 0.0  ;;  %v705_v57 = vadd.f32 %v12362_v21, %v12376_v35  ;;  %v10975_v28 = vld [vmem:[%s15843_s3 + $0x104] ss:$8 sps:$4 sm:$0xff]  }
 0x10a   : > { %v784_v58 = vpop.f32.mrf.mxu0 }
 0x10b   : > { %v839_v19 = vmax.f32 %v793_v6, 0.0  ;;  %v785_v20 = vadd.f32 %v12362_v21, %v784_v58  ;;  %v12444_v58 = vpack.c.bf16 %v821_v45, %v820_v40  ;;  %v817_v35 = vmax.f32 %v705_v57, 0.0  ;;  %v10984_v45 = vld [vmem:[%s15843_s3 + $0x60] ss:$8 sps:$4 sm:$0xff]   ;;  %v10991_v40 = vld [vmem:[%s15843_s3 + $0x134] ss:$8 sps:$4 sm:$0xff]  }
 0x10c   : > { %v10790_v59 = vpop.f32.mrf.mxu0  ;;  %v10996_v57 = vld [vmem:[%s15843_s3 + $0xc4] ss:$8 sps:$4 sm:$0xff]  }
 0x10d   : > { %v806_v62 = vadd.f32 %v10790_v59, %v12362_v21  ;;  %v12422_v36 = vpack.c.bf16 %v839_v19, %v838_v27  ;;  %v837_v37 = vmax.f32 %v785_v20, 0.0  ;;  %v12448_v59 = vpack.c.bf16 %v835_v46, %v834_v56  ;;  %v10964_v19 = vld [vmem:[%s15843_s3 + $0x34] ss:$8 sps:$4 sm:$0xff]   ;;  %v10972_v27 = vld [vmem:[%s15843_s3 + $0x44] ss:$8 sps:$4 sm:$0xff]  }
 0x10e   : > { %v797_v61 = vpop.f32.mrf.mxu0  ;;  %v10967_v20 = vld [vmem:[%s15843_s3 + $0xb4] ss:$8 sps:$4 sm:$0xff]   ;;  %v10987_v46 = vld [vmem:[%s15843_s3 + $0x120] ss:$8 sps:$4 sm:$0xff]   ;;  %v10990_v56 = vld [vmem:[%s15843_s3 + $0x70] ss:$8 sps:$4 sm:$0xff]  }
 0x10f   : > { %v798_v1 = vadd.f32 %v12362_v21, %v797_v61  ;;  %v842_v7 = vmax.f32 %v806_v62, 0.0  ;;  %v12434_v55 = vpack.c.bf16 %v837_v37, %v836_v44  ;;  %v702_v61 = vadd.f32 %v12362_v21, %v12372_v31  ;;  %v10979_v37 = vld [vmem:[%s15843_s3 + $0x114] ss:$8 sps:$4 sm:$0xff]   ;;  %v10985_v44 = vld [vmem:[%s15843_s3 + $0x124] ss:$8 sps:$4 sm:$0xff]  }
 0x110   : > { %v10791_v0 = vpop.f32.mrf.mxu0  ;;  %v832_v62 = vmax.f32 %v766_v51, 0.0  ;;  %v10993_v51 = vld [vmem:[%s15843_s3 + $0x130] ss:$8 sps:$4 sm:$0xff]  }
 0x111   : > { %v809_v2 = vadd.f32 %v10791_v0, %v12362_v21  ;;  %v840_v13 = vmax.f32 %v798_v1, 0.0  ;;  %v816_v31 = vmax.f32 %v702_v61, 0.0  ;;  %v830_v1 = vmax.f32 %v758_v52, 0.0  ;;  %v10997_v61 = vld [vmem:[%s15843_s3 + $0x180] ss:$8 sps:$4 sm:$0xff]  }
 0x112   : > { %v800_v5 = vpop.f32.mrf.mxu0  ;;  %v12460_v0 = vpack.c.bf16 %v833_v60, %v832_v62  ;;  %v10994_v60 = vld [vmem:[%s15843_s3 + $0xc0] ss:$8 sps:$4 sm:$0xff]   ;;  %v11000_v52 = vld [vmem:[%s15843_s3 + $0xd4] ss:$8 sps:$4 sm:$0xff]   ;;  %v11002_v62 = vld [vmem:[%s15843_s3 + $0xd0] ss:$8 sps:$4 sm:$0xff]  }
 0x113   : > { %v843_v8 = vmax.f32 %v809_v2, 0.0  ;;  %v801_v9 = vadd.f32 %v12362_v21, %v800_v5  ;;  %v689_v2 = vadd.f32 %v12362_v21, %v12368_v26  ;;  %v12470_v3 = vpack.c.bf16 %v817_v35, %v816_v31  ;;  %v11003_v35 = vld [vmem:[%s15843_s3 + $0xe4] ss:$8 sps:$4 sm:$0xff]   ;;  %v11008_v31 = vld [vmem:[%s15843_s3 + $0xf0] ss:$8 sps:$4 sm:$0xff]  }
 0x114   : > { %v12472_v50 = vpack.c.bf16 %v831_v49, %v830_v1  ;;  %v686_v5 = vadd.f32 %v12362_v21, %v12364_v22  ;;  %v10946_v21 = vld [vmem:[%s15843_s3] ss:$8 sps:$4 sm:$0xff]   ;;  %v11011_v1 = vld [vmem:[%s15843_s3 + $0x144] ss:$8 sps:$4 sm:$0xff]  }
 0x115   : > { %v12402_v14 = vpack.c.bf16 %v843_v8, %v842_v7  ;;  %v841_v15 = vmax.f32 %v801_v9, 0.0  ;;  %v813_v6 = vmax.f32 %v689_v2, 0.0  ;;  %v12480_v7 = vpack.c.bf16 %v829_v4, %v828_v48  ;;  %v10949_v22 = vld [vmem:[%s15843_s3 + $0x80] ss:$8 sps:$4 sm:$0xff]   ;;  %v10952_v9 = vld [vmem:[%s15843_s3 + $0x14] ss:$8 sps:$4 sm:$0xff]  }
 0x116   : > { %v812_v26 = vmax.f32 %v686_v5, 0.0  ;;  %v11005_v49 = vld [vmem:[%s15843_s3 + $0xe0] ss:$8 sps:$4 sm:$0xff]   ;;  %v11035_v2 = vld [vmem:[%s15843_s3 + $0x190] ss:$8 sps:$4 sm:$0xff]  }
 0x117   : > { %v12408_v23 = vpack.c.bf16 %v841_v15, %v840_v13  ;;  %10219 = vmatprep.subr.bf16.mxu1 %v12402_v14  ;;  %10299 = vmatprep.subr.bf16.mxu0 %v12402_v14  ;;  %v10958_v13 = vld [vmem:[%s15843_s3 + $0x24] ss:$8 sps:$4 sm:$0xff]   ;;  %v11009_v4 = vld [vmem:[%s15843_s3 + $0x140] ss:$8 sps:$4 sm:$0xff]   ;;  %v11012_v5 = vld [vmem:[%s15843_s3 + $0x154] ss:$8 sps:$4 sm:$0xff]  }
 0x118   : > { %10220 = vmatpush3.bf16.msra.mxu1 %v12405_v17  ;;  %10300 = vmatpush3.bf16.msra.mxu0 %v12405_v17  ;;  %v12492_v8 = vpack.c.bf16 %v813_v6, %v812_v26  ;;  %v10961_v15 = vld [vmem:[%s15843_s3 + $0xa4] ss:$8 sps:$4 sm:$0xff]   ;;  %v11038_v6 = vld [vmem:[%s15843_s3 + $0x1a0] ss:$8 sps:$4 sm:$0xff]   ;;  %v11014_v26 = vld [vmem:[%s15843_s3 + $0x150] ss:$8 sps:$4 sm:$0xff]  }
 0x119   : > { %10221 = vmatprep.subr.bf16.mxu1 %v12408_v23  ;;  %10301 = vmatprep.subr.bf16.mxu0 %v12408_v23  ;;  %v11036_v48 = vld [vmem:[%s15843_s3 + $0x1a4] ss:$8 sps:$4 sm:$0xff]  }
 0x11c   : > { %10222 = vmatpush3.bf16.msra.mxu1 %v12419_v33  ;;  %10302 = vmatpush3.bf16.msra.mxu0 %v12419_v33 }
 0x11d   : > { %10223 = vmatprep.subr.bf16.mxu1 %v12422_v36  ;;  %10303 = vmatprep.subr.bf16.mxu0 %v12422_v36 }
 0x120   : > { %10224 = vmatpush3.bf16.msra.mxu1 %v12431_v42  ;;  %10304 = vmatpush3.bf16.msra.mxu0 %v12431_v42 }
 0x121   : > { %10225 = vmatprep.subr.bf16.mxu1 %v12434_v55  ;;  %10305 = vmatprep.subr.bf16.mxu0 %v12434_v55 }
 0x124   : > { %10226 = vmatpush3.bf16.msra.mxu1 %v12444_v58  ;;  %10306 = vmatpush3.bf16.msra.mxu0 %v12444_v58 }
 0x125   : > { %10227 = vmatprep.subr.bf16.mxu1 %v12448_v59  ;;  %10307 = vmatprep.subr.bf16.mxu0 %v12448_v59 }
 0x128   : > { %10228 = vmatpush3.bf16.msra.mxu1 %v12378_v39  ;;  %10308 = vmatpush3.bf16.msra.mxu0 %v12378_v39 }
 0x129   : > { %10229 = vmatprep.subr.bf16.mxu1 %v12460_v0  ;;  %10309 = vmatprep.subr.bf16.mxu0 %v12460_v0 }
 0x12c   : > { %10230 = vmatpush3.bf16.msra.mxu1 %v12470_v3  ;;  %10310 = vmatpush3.bf16.msra.mxu0 %v12470_v3 }
 0x12d   : > { %10231 = vmatprep.subr.bf16.mxu1 %v12472_v50  ;;  %10311 = vmatprep.subr.bf16.mxu0 %v12472_v50 }
 0x130   : > { %10232 = vmatpush3.bf16.msra.mxu1 %v12370_v30  ;;  %10312 = vmatpush3.bf16.msra.mxu0 %v12370_v30 }
 0x131   : > { %10233 = vmatprep.subr.bf16.mxu1 %v12480_v7  ;;  %10313 = vmatprep.subr.bf16.mxu0 %v12480_v7 }
 0x134   : > { %10234 = vmatpush3.bf16.msra.mxu1 %v12492_v8  ;;  %10314 = vmatpush3.bf16.msra.mxu0 %v12492_v8 }
 0x135   : > { %10259 = vmatprep.subr.bf16.mxu1 %v12402_v14  ;;  %10379 = vmatprep.subr.bf16.mxu0 %v12402_v14 }
 0x137   : > { %941 = vmatmul.mubr.bf16.vlgmr.msra.gmra.mxu1 %v10946_v21  ;;  %1177 = vmatmul.mubr.bf16.vlgmr.msra.gmra.mxu0 %v10949_v22  ;;  %v11026_v21 = vld [vmem:[%s15843_s3 + $0x1d0] ss:$8 sps:$4 sm:$0xff]   ;;  %v11027_v22 = vld [vmem:[%s15843_s3 + $0x1e4] ss:$8 sps:$4 sm:$0xff]  }
 0x138   : > { %10260 = vmatpush3.bf16.msra.mxu1 %v12405_v17  ;;  %10380 = vmatpush3.bf16.msra.mxu0 %v12405_v17 }
 0x139   : > { %10261 = vmatprep.subr.bf16.mxu1 %v12408_v23  ;;  %10381 = vmatprep.subr.bf16.mxu0 %v12408_v23 }
 0x13a   : > { %948 = vmatprep.mubr.bf16.mxu1 %v10952_v9  ;;  %1184 = vmatprep.mubr.bf16.mxu0 %v10955_v10  ;;  %v11053_v9 = vld [vmem:[%s15843_s3 + $0x230] ss:$8 sps:$4 sm:$0xff]   ;;  %v11029_v10 = vld [vmem:[%s15843_s3 + $0x1e0] ss:$8 sps:$4 sm:$0xff]  }
 0x13c   : > { %10262 = vmatpush3.bf16.msra.mxu1 %v12419_v33  ;;  %10382 = vmatpush3.bf16.msra.mxu0 %v12419_v33 }
 0x13d   : > { %10263 = vmatprep.subr.bf16.mxu1 %v12422_v36  ;;  %10383 = vmatprep.subr.bf16.mxu0 %v12422_v36 }
 0x13f   : > { %949 = vmatmul.mubr.bf16.gmra.mxu1 %v10954_v11  ;;  %1185 = vmatmul.mubr.bf16.gmra.mxu0 %v10957_v12  ;;  %v11030_v11 = vld [vmem:[%s15843_s3 + $0x1f4] ss:$8 sps:$4 sm:$0xff]   ;;  %v11032_v12 = vld [vmem:[%s15843_s3 + $0x1f0] ss:$8 sps:$4 sm:$0xff]  }
 0x140   : > { %10264 = vmatpush3.bf16.msra.mxu1 %v12431_v42  ;;  %10384 = vmatpush3.bf16.msra.mxu0 %v12431_v42 }
 0x141   : > { %10265 = vmatprep.subr.bf16.mxu1 %v12434_v55  ;;  %10385 = vmatprep.subr.bf16.mxu0 %v12434_v55 }
 0x142   : > { %956 = vmatprep.mubr.bf16.mxu1 %v10958_v13  ;;  %1192 = vmatprep.mubr.bf16.mxu0 %v10961_v15 }
 0x144   : > { %10266 = vmatpush3.bf16.msra.mxu1 %v12444_v58  ;;  %10386 = vmatpush3.bf16.msra.mxu0 %v12444_v58 }
 0x145   : > { %10267 = vmatprep.subr.bf16.mxu1 %v12448_v59  ;;  %10387 = vmatprep.subr.bf16.mxu0 %v12448_v59 }
 0x147   : > { %957 = vmatmul.mubr.bf16.gmra.mxu1 %v10960_v16  ;;  %1193 = vmatmul.mubr.bf16.gmra.mxu0 %v10963_v18 }
 0x148   : > { %10268 = vmatpush3.bf16.msra.mxu1 %v12378_v39  ;;  %10388 = vmatpush3.bf16.msra.mxu0 %v12378_v39 }
 0x149   : > { %10269 = vmatprep.subr.bf16.mxu1 %v12460_v0  ;;  %10389 = vmatprep.subr.bf16.mxu0 %v12460_v0 }
 0x14a   : > { %964 = vmatprep.mubr.bf16.mxu1 %v10964_v19  ;;  %1200 = vmatprep.mubr.bf16.mxu0 %v10967_v20 }
 0x14c   : > { %10270 = vmatpush3.bf16.msra.mxu1 %v12470_v3  ;;  %10390 = vmatpush3.bf16.msra.mxu0 %v12470_v3 }
 0x14d   : > { %10271 = vmatprep.subr.bf16.mxu1 %v12472_v50  ;;  %10391 = vmatprep.subr.bf16.mxu0 %v12472_v50 }
 0x14f   : > { %965 = vmatmul.mubr.bf16.gmra.mxu1 %v10966_v24  ;;  %1201 = vmatmul.mubr.bf16.gmra.mxu0 %v10969_v25 }
 0x150   : > { %10272 = vmatpush3.bf16.msra.mxu1 %v12370_v30  ;;  %10392 = vmatpush3.bf16.msra.mxu0 %v12370_v30 }
 0x151   : > { %10273 = vmatprep.subr.bf16.mxu1 %v12480_v7  ;;  %10393 = vmatprep.subr.bf16.mxu0 %v12480_v7 }
 0x152   : > { %1058 = vmatprep.mubr.bf16.mxu1 %v10972_v27  ;;  %1412 = vmatprep.mubr.bf16.mxu0 %v10975_v28 }
 0x154   : > { %10274 = vmatpush3.bf16.msra.mxu1 %v12492_v8  ;;  %10394 = vmatpush3.bf16.msra.mxu0 %v12492_v8 }
 0x155   : > { %10339 = vmatprep.subr.bf16.mxu1 %v12402_v14  ;;  %10459 = vmatprep.subr.bf16.mxu0 %v12402_v14 }
 0x157   : > { %1059 = vmatmul.mubr.bf16.vlgmr.msra.gmra.mxu1 %v10970_v29  ;;  %1413 = vmatmul.mubr.bf16.vlgmr.msra.gmra.mxu0 %v10973_v32 }
 0x158   : > { %10340 = vmatpush3.bf16.msra.mxu1 %v12405_v17  ;;  %10460 = vmatpush3.bf16.msra.mxu0 %v12405_v17 }
 0x159   : > { %10341 = vmatprep.subr.bf16.mxu1 %v12408_v23  ;;  %10461 = vmatprep.subr.bf16.mxu0 %v12408_v23 }
 0x15a   : > { %1066 = vmatprep.mubr.bf16.mxu1 %v10976_v34  ;;  %1420 = vmatprep.mubr.bf16.mxu0 %v10979_v37 }
 0x15c   : > { %10342 = vmatpush3.bf16.msra.mxu1 %v12419_v33  ;;  %10462 = vmatpush3.bf16.msra.mxu0 %v12419_v33 }
 0x15d   : > { %10343 = vmatprep.subr.bf16.mxu1 %v12422_v36  ;;  %10463 = vmatprep.subr.bf16.mxu0 %v12422_v36 }
 0x15f   : > { %1067 = vmatmul.mubr.bf16.gmra.mxu1 %v10978_v38  ;;  %1421 = vmatmul.mubr.bf16.gmra.mxu0 %v10981_v41 }
 0x160   : > { %10344 = vmatpush3.bf16.msra.mxu1 %v12431_v42  ;;  %10464 = vmatpush3.bf16.msra.mxu0 %v12431_v42 }
 0x161   : > { %10345 = vmatprep.subr.bf16.mxu1 %v12434_v55  ;;  %10465 = vmatprep.subr.bf16.mxu0 %v12434_v55 }
 0x162   : > { %1074 = vmatprep.mubr.bf16.mxu1 %v10982_v43  ;;  %1428 = vmatprep.mubr.bf16.mxu0 %v10985_v44 }
 0x164   : > { %10346 = vmatpush3.bf16.msra.mxu1 %v12444_v58  ;;  %10466 = vmatpush3.bf16.msra.mxu0 %v12444_v58 }
 0x165   : > { %10347 = vmatprep.subr.bf16.mxu1 %v12448_v59  ;;  %10467 = vmatprep.subr.bf16.mxu0 %v12448_v59 }
 0x167   : > { %1075 = vmatmul.mubr.bf16.gmra.mxu1 %v10984_v45  ;;  %1429 = vmatmul.mubr.bf16.gmra.mxu0 %v10987_v46 }
 0x168   : > { %10348 = vmatpush3.bf16.msra.mxu1 %v12378_v39  ;;  %10468 = vmatpush3.bf16.msra.mxu0 %v12378_v39 }
 0x169   : > { %10349 = vmatprep.subr.bf16.mxu1 %v12460_v0  ;;  %10469 = vmatprep.subr.bf16.mxu0 %v12460_v0 }
 0x16a   : > { %1082 = vmatprep.mubr.bf16.mxu1 %v10988_v53  ;;  %1436 = vmatprep.mubr.bf16.mxu0 %v10991_v40 }
 0x16c   : > { %10350 = vmatpush3.bf16.msra.mxu1 %v12470_v3  ;;  %10470 = vmatpush3.bf16.msra.mxu0 %v12470_v3 }
 0x16d   : > { %10351 = vmatprep.subr.bf16.mxu1 %v12472_v50  ;;  %10471 = vmatprep.subr.bf16.mxu0 %v12472_v50 }
 0x16f   : > { %1083 = vmatmul.mubr.bf16.gmra.mxu1 %v10990_v56  ;;  %1437 = vmatmul.mubr.bf16.gmra.mxu0 %v10993_v51 }
 0x170   : > { %10352 = vmatpush3.bf16.msra.mxu1 %v12370_v30  ;;  %10472 = vmatpush3.bf16.msra.mxu0 %v12370_v30 }
 0x171   : > { %10353 = vmatprep.subr.bf16.mxu1 %v12480_v7  ;;  %10473 = vmatprep.subr.bf16.mxu0 %v12480_v7 }
 0x172   : > { %1294 = vmatprep.mubr.bf16.mxu1 %v10996_v57  ;;  %1648 = vmatprep.mubr.bf16.mxu0 %v10999_v54 }
 0x174   : > { %10354 = vmatpush3.bf16.msra.mxu1 %v12492_v8  ;;  %10474 = vmatpush3.bf16.msra.mxu0 %v12492_v8 }
 0x175   : > { %10419 = vmatprep.subr.bf16.mxu1 %v12402_v14  ;;  %10539 = vmatprep.subr.bf16.mxu0 %v12402_v14 }
 0x177   : > { %1295 = vmatmul.mubr.bf16.vlgmr.msra.gmra.mxu1 %v10994_v60  ;;  %1649 = vmatmul.mubr.bf16.vlgmr.msra.gmra.mxu0 %v10997_v61 }
 0x178   : > { %10420 = vmatpush3.bf16.msra.mxu1 %v12405_v17  ;;  %10540 = vmatpush3.bf16.msra.mxu0 %v12405_v17 }
 0x179   : > { %10421 = vmatprep.subr.bf16.mxu1 %v12408_v23  ;;  %10541 = vmatprep.subr.bf16.mxu0 %v12408_v23 }
 0x17a   : > { %1302 = vmatprep.mubr.bf16.mxu1 %v11000_v52  ;;  %1656 = vmatprep.mubr.bf16.mxu0 %v11033_v47 }
 0x17c   : > { %10422 = vmatpush3.bf16.msra.mxu1 %v12419_v33  ;;  %10542 = vmatpush3.bf16.msra.mxu0 %v12419_v33 }
 0x17d   : > { %10423 = vmatprep.subr.bf16.mxu1 %v12422_v36  ;;  %10543 = vmatprep.subr.bf16.mxu0 %v12422_v36 }
 0x17f   : > { %1303 = vmatmul.mubr.bf16.gmra.mxu1 %v11002_v62  ;;  %1657 = vmatmul.mubr.bf16.gmra.mxu0 %v11035_v2  ;;  %v11054_v2 = vld [vmem:[%s15844_s4 + $0x78] sm:$0xff]  }
 0x180   : > { %10424 = vmatpush3.bf16.msra.mxu1 %v12431_v42  ;;  %10544 = vmatpush3.bf16.msra.mxu0 %v12431_v42 }
 0x181   : > { %10425 = vmatprep.subr.bf16.mxu1 %v12434_v55  ;;  %10545 = vmatprep.subr.bf16.mxu0 %v12434_v55 }
 0x182   : > { %1310 = vmatprep.mubr.bf16.mxu1 %v11003_v35  ;;  %1664 = vmatprep.mubr.bf16.mxu0 %v11036_v48 }
 0x184   : > { %10426 = vmatpush3.bf16.msra.mxu1 %v12444_v58  ;;  %10546 = vmatpush3.bf16.msra.mxu0 %v12444_v58 }
 0x185   : > { %10427 = vmatprep.subr.bf16.mxu1 %v12448_v59  ;;  %10547 = vmatprep.subr.bf16.mxu0 %v12448_v59 }
 0x187   : > { %1311 = vmatmul.mubr.bf16.gmra.mxu1 %v11005_v49  ;;  %1665 = vmatmul.mubr.bf16.gmra.mxu0 %v11038_v6 }
 0x188   : > { %10428 = vmatpush3.bf16.msra.mxu1 %v12378_v39  ;;  %10548 = vmatpush3.bf16.msra.mxu0 %v12378_v39 }
 0x189   : > { %10429 = vmatprep.subr.bf16.mxu1 %v12460_v0  ;;  %10549 = vmatprep.subr.bf16.mxu0 %v12460_v0 }
 0x18a   : > { %1318 = vmatprep.mubr.bf16.mxu1 %v11006_v63 }
 0x18c   : > { %10430 = vmatpush3.bf16.msra.mxu1 %v12470_v3  ;;  %10550 = vmatpush3.bf16.msra.mxu0 %v12470_v3 }
 0x18d   : > { %10431 = vmatprep.subr.bf16.mxu1 %v12472_v50  ;;  %10551 = vmatprep.subr.bf16.mxu0 %v12472_v50 }
 0x18f   : > { %1319 = vmatmul.mubr.bf16.gmra.mxu1 %v11008_v31 }
 0x190   : > { %10432 = vmatpush3.bf16.msra.mxu1 %v12370_v30  ;;  %10552 = vmatpush3.bf16.msra.mxu0 %v12370_v30 }
 0x191   : > { %10433 = vmatprep.subr.bf16.mxu1 %v12480_v7  ;;  %10553 = vmatprep.subr.bf16.mxu0 %v12480_v7 }
 0x192   : > { %1530 = vmatprep.mubr.bf16.mxu1 %v11011_v1 }
 0x194   : > { %10434 = vmatpush3.bf16.msra.mxu1 %v12492_v8  ;;  %10554 = vmatpush3.bf16.msra.mxu0 %v12492_v8 }
 0x195   : > { %10499 = vmatprep.subr.bf16.mxu1 %v12402_v14  ;;  %v11015_v14 = vld [vmem:[%s15843_s3 + $0x164] ss:$8 sps:$4 sm:$0xff]  }
 0x197   : > { %1531 = vmatmul.mubr.bf16.vlgmr.msra.gmra.mxu1 %v11009_v4 }
 0x198   : > { %10500 = vmatpush3.bf16.msra.mxu1 %v12405_v17  ;;  %1538 = vmatprep.mubr.bf16.mxu1 %v11012_v5  ;;  %v11039_v17 = vld [vmem:[%s15843_s3 + $0x1b4] ss:$8 sps:$4 sm:$0xff]  }
 0x199   : > { %10501 = vmatprep.subr.bf16.mxu1 %v12408_v23  ;;  %v11041_v23 = vld [vmem:[%s15843_s3 + $0x1b0] ss:$8 sps:$4 sm:$0xff]   ;;  %1672 = vmatprep.mubr.bf16.mxu0 %v11039_v17 }
 0x19a   : > { %1673 = vmatmul.mubr.bf16.gmra.mxu0 %v11041_v23  ;;  %v11055_v5 = vld [vmem:[%s15844_s4 + $0x38] sm:$0xff]   ;;  %v11057_v17 = vld [vmem:[%s15844_s4 + $0x30] sm:$0xff]   ;;  %v11058_v23 = vld [vmem:[%s15844_s4 + $0x68] sm:$0xff]  }
 0x19c   : > { %10502 = vmatpush3.bf16.msra.mxu1 %v12419_v33  ;;  %v11017_v33 = vld [vmem:[%s15843_s3 + $0x160] ss:$8 sps:$4 sm:$0xff]  }
 0x19d   : > { %10503 = vmatprep.subr.bf16.mxu1 %v12422_v36  ;;  %v11018_v36 = vld [vmem:[%s15843_s3 + $0x174] ss:$8 sps:$4 sm:$0xff]  }
 0x19f   : > { %1539 = vmatmul.mubr.bf16.gmra.mxu1 %v11014_v26 }
 0x1a0   : > { %10504 = vmatpush3.bf16.msra.mxu1 %v12431_v42  ;;  %1546 = vmatprep.mubr.bf16.mxu1 %v11015_v14  ;;  %v11044_v42 = vld [vmem:[%s15843_s3 + $0x204] ss:$8 sps:$4 sm:$0xff]   ;;  %v11056_v14 = vld [vmem:[%s15844_s4 + $0x70] sm:$0xff]  }
 0x1a1   : > { %10505 = vmatprep.subr.bf16.mxu1 %v12434_v55  ;;  %v11042_v55 = vld [vmem:[%s15843_s3 + $0x200] ss:$8 sps:$4 sm:$0xff]   ;;  %1884 = vmatprep.mubr.bf16.mxu0 %v11044_v42 }
 0x1a2   : > { %1885 = vmatmul.mubr.bf16.vlgmr.msra.gmra.mxu0 %v11042_v55 }
 0x1a4   : > { %10506 = vmatpush3.bf16.msra.mxu1 %v12444_v58  ;;  %v11020_v58 = vld [vmem:[%s15843_s3 + $0x170] ss:$8 sps:$4 sm:$0xff]  }
 0x1a5   : > { %10507 = vmatprep.subr.bf16.mxu1 %v12448_v59  ;;  %v11045_v59 = vld [vmem:[%s15843_s3 + $0x214] ss:$8 sps:$4 sm:$0xff]  }
 0x1a6   : > { %1892 = vmatprep.mubr.bf16.mxu0 %v11045_v59  ;;  %v11060_v59 = vld [vmem:[%s15844_s4 + $0x60] sm:$0xff]  }
 0x1a7   : > { %1547 = vmatmul.mubr.bf16.gmra.mxu1 %v11017_v33 }
 0x1a8   : > { %10508 = vmatpush3.bf16.msra.mxu1 %v12378_v39  ;;  %1554 = vmatprep.mubr.bf16.mxu1 %v11018_v36  ;;  %v11023_v39 = vld [vmem:[%s15843_s3 + $0x1c4] ss:$8 sps:$4 sm:$0xff]  }
 0x1a9   : > { %10509 = vmatprep.subr.bf16.mxu1 %v12460_v0  ;;  %v11047_v0 = vld [vmem:[%s15843_s3 + $0x210] ss:$8 sps:$4 sm:$0xff]  }
 0x1aa   : > { %1893 = vmatmul.mubr.bf16.gmra.mxu0 %v11047_v0 }
 0x1ac   : > { %10510 = vmatpush3.bf16.msra.mxu1 %v12470_v3  ;;  %v11021_v3 = vld [vmem:[%s15843_s3 + $0x1c0] ss:$8 sps:$4 sm:$0xff]  }
 0x1ad   : > { %10511 = vmatprep.subr.bf16.mxu1 %v12472_v50  ;;  %v11048_v50 = vld [vmem:[%s15843_s3 + $0x224] ss:$8 sps:$4 sm:$0xff]  }
 0x1ae   : > { %1900 = vmatprep.mubr.bf16.mxu0 %v11048_v50 }
 0x1af   : > { %1555 = vmatmul.mubr.bf16.gmra.mxu1 %v11020_v58  ;;  %v11059_v58 = vld [vmem:[%s15844_s4 + $0x28] sm:$0xff]  }
 0x1b0   : > { %10512 = vmatpush3.bf16.msra.mxu1 %v12370_v30  ;;  %1766 = vmatprep.mubr.bf16.mxu1 %v11023_v39  ;;  %v11024_v30 = vld [vmem:[%s15843_s3 + $0x1d4] ss:$8 sps:$4 sm:$0xff]  }
 0x1b1   : > { %10513 = vmatprep.subr.bf16.mxu1 %v12480_v7  ;;  %v11050_v7 = vld [vmem:[%s15843_s3 + $0x220] ss:$8 sps:$4 sm:$0xff]  }
 0x1b2   : > { %1901 = vmatmul.mubr.bf16.gmra.mxu0 %v11050_v7  ;;  %v11061_v7 = vld [vmem:[%s15844_s4 + $0x20] sm:$0xff]  }
 0x1b4   : > { %10514 = vmatpush3.bf16.msra.mxu1 %v12492_v8  ;;  %v11051_v8 = vld [vmem:[%s15843_s3 + $0x234] ss:$8 sps:$4 sm:$0xff]  }
 0x1b5   : > { %1908 = vmatprep.mubr.bf16.mxu0 %v11051_v8  ;;  %10579 = vmatprep.subr.bf16.mxu1 %v11054_v2 }
 0x1b7   : > { %1767 = vmatmul.mubr.bf16.vlgmr.msra.gmra.mxu1 %v11021_v3 }
 0x1b8   : > { %1774 = vmatprep.mubr.bf16.mxu1 %v11024_v30  ;;  %10580 = vmatpush3.bf16.msra.mxu1 %v11055_v5 }
 0x1b9   : > { %10581 = vmatprep.subr.bf16.mxu1 %v11056_v14 }
 0x1ba   : > { %1909 = vmatmul.mubr.bf16.gmra.mxu0 %v11053_v9 }
 0x1bc   : > { %10582 = vmatpush3.bf16.msra.mxu1 %v11057_v17  ;;  %v11069_v17 = vld [vmem:[%s15844_s4] sm:$0xff]  }
 0x1bd   : > { %10583 = vmatprep.subr.bf16.mxu1 %v11058_v23 }
 0x1bf   : > { %1775 = vmatmul.mubr.bf16.gmra.mxu1 %v11026_v21 }
 0x1c0   : > { %1782 = vmatprep.mubr.bf16.mxu1 %v11027_v22  ;;  %10584 = vmatpush3.bf16.msra.mxu1 %v11059_v58  ;;  %v11062_v22 = vld [vmem:[%s15844_s4 + $0x58] sm:$0xff]  }
 0x1c1   : > { %10585 = vmatprep.subr.bf16.mxu1 %v11060_v59 }
 0x1c4   : > { %10586 = vmatpush3.bf16.msra.mxu1 %v11061_v7 }
 0x1c5   : > { %10587 = vmatprep.subr.bf16.mxu1 %v11062_v22 }
 0x1c7   : > { %1783 = vmatmul.mubr.bf16.gmra.mxu1 %v11029_v10 }
 0x1c8   : > { %1790 = vmatprep.mubr.bf16.mxu1 %v11030_v11 }
 0x1cf   : > { %1791 = vmatmul.mubr.bf16.gmra.mxu1 %v11032_v12 }
 0x1f7   : > { %v10235_v13 = vpop.f32.mrf.mxu1  ;;  %v12826_v45 = vpop.f32.mrf.mxu0 }
 0x1f9   : > { %v10236_v15 = vpop.f32.mrf.mxu1  ;;  %v12830_v40 = vpop.f32.mrf.mxu0 }
 0x1fa   : > { %v12812_v16 = vadd.f32 %v10236_v15, %v10235_v13 }
 0x1fb   : > { %v10238_v18 = vpop.f32.mrf.mxu1  ;;  %v12834_v57 = vpop.f32.mrf.mxu0 }
 0x1fd   : > { %v10239_v19 = vpop.f32.mrf.mxu1  ;;  %v12838_v61 = vpop.f32.mrf.mxu0 }
 0x1fe   : > { %v12814_v20 = vadd.f32 %v10239_v19, %v10238_v18  ;;  %v11063_v18 = vld [vmem:[%s15844_s4 + $0x18] sm:$0xff]  }
 0x1ff   : > { %v10241_v24 = vpop.f32.mrf.mxu1  ;;  %v12840_v62 = vpop.f32.mrf.mxu0  ;;  %10588 = vmatpush3.bf16.msra.mxu1 %v11063_v18 }
 0x200   : > { %v973_v25 = vpack.c.bf16 %v12814_v20, %v12812_v16  ;;  %v11089_v16 = vld [vmem:[%s15844_s4 + $0x100] sm:$0xff]  }
 0x201   : > { %v10242_v27 = vpop.f32.mrf.mxu1  ;;  %v12844_v63 = vpop.f32.mrf.mxu0 }
 0x202   : > { %v12818_v28 = vadd.f32 %v10242_v27, %v10241_v24  ;;  %v11064_v27 = vld [vmem:[%s15844_s4 + $0x50] sm:$0xff]  }
 0x203   : > { %v10244_v29 = vpop.f32.mrf.mxu1  ;;  %v12850_v47 = vpop.f32.mrf.mxu0  ;;  %10589 = vmatprep.subr.bf16.mxu1 %v11064_v27 }
 0x205   : > { %v10245_v32 = vpop.f32.mrf.mxu1  ;;  %v12860_v48 = vpop.f32.mrf.mxu0 }
 0x206   : > { %v12820_v34 = vadd.f32 %v10245_v32, %v10244_v29 }
 0x207   : > { %v10247_v37 = vpop.f32.mrf.mxu1  ;;  %v10327_v26 = vpop.f32.mrf.mxu0 }
 0x208   : > { %v974_v38 = vpack.c.bf16 %v12820_v34, %v12818_v28 }
 0x209   : > { %v10248_v41 = vpop.f32.mrf.mxu1  ;;  %v10328_v36 = vpop.f32.mrf.mxu0 }
 0x20a   : > { %v12824_v43 = vadd.f32 %v10248_v41, %v10247_v37  ;;  %v12875_v55 = vadd.f32 %v10328_v36, %v10327_v26  ;;  %v11068_v26 = vld [vmem:[%s15844_s4 + $0x40] sm:$0xff]  }
 0x20b   : > { %v10250_v44 = vpop.f32.mrf.mxu1  ;;  %v10330_v39 = vpop.f32.mrf.mxu0 }
 0x20d   : > { %v10251_v46 = vpop.f32.mrf.mxu1  ;;  %v10331_v3 = vpop.f32.mrf.mxu0 }
 0x20e   : > { %v12828_v53 = vadd.f32 %v10251_v46, %v10250_v44  ;;  %v12883_v50 = vadd.f32 %v10331_v3, %v10330_v39  ;;  %v11065_v44 = vld [vmem:[%s15844_s4 + $0x10] sm:$0xff]   ;;  %v11066_v46 = vld [vmem:[%s15844_s4 + $0x48] sm:$0xff]  }
 0x20f   : > { %v10253_v56 = vpop.f32.mrf.mxu1  ;;  %v10333_v21 = vpop.f32.mrf.mxu0  ;;  %10590 = vmatpush3.bf16.msra.mxu1 %v11065_v44 }
 0x210   : > { %v975_v51 = vpack.c.bf16 %v12828_v53, %v12824_v43  ;;  %v1211_v9 = vpack.c.bf16 %v12883_v50, %v12875_v55  ;;  %10591 = vmatprep.subr.bf16.mxu1 %v11066_v46 }
 0x211   : > { %v10254_v54 = vpop.f32.mrf.mxu1  ;;  %v10334_v12 = vpop.f32.mrf.mxu0 }
 0x212   : > { %v12836_v60 = vadd.f32 %v10254_v54, %v10253_v56  ;;  %v12895_v15 = vadd.f32 %v10334_v12, %v10333_v21 }
 0x213   : > { %v10256_v52 = vpop.f32.mrf.mxu1  ;;  %v10336_v24 = vpop.f32.mrf.mxu0 }
 0x215   : > { %v10257_v35 = vpop.f32.mrf.mxu1  ;;  %v10337_v32 = vpop.f32.mrf.mxu0 }
 0x216   : > { %v12842_v49 = vadd.f32 %v10257_v35, %v10256_v52  ;;  %v12908_v41 = vadd.f32 %v10337_v32, %v10336_v24  ;;  %v11067_v35 = vld [vmem:[%s15844_s4 + $0x8] sm:$0xff]  }
 0x217   : > { %v12846_v31 = vpop.f32.mrf.mxu1  ;;  %10592 = vmatpush3.bf16.msra.mxu1 %v11067_v35  ;;  %v11070_v35 = vld [vmem:[%s15844_s4 + $0xf8] sm:$0xff]  }
 0x218   : > { %10593 = vmatprep.subr.bf16.mxu1 %v11068_v26  ;;  %v11071_v26 = vld [vmem:[%s15844_s4 + $0xb8] sm:$0xff]   ;;  %10619 = vmatprep.subr.bf16.mxu0 %v11070_v35 }
 0x219   : > { %v12855_v4 = vpop.f32.mrf.mxu1  ;;  %10620 = vmatpush3.bf16.msra.mxu0 %v11071_v26 }
 0x21a   : > { %v10277_v21 = vadd.f32 %v12855_v4, %v12846_v31  ;;  %v12952_v31 = vpop.f32.mrf.mxu0 }
 0x21b   : > { %v12862_v6 = vpop.f32.mrf.mxu1  ;;  %10594 = vmatpush3.bf16.msra.mxu1 %v11069_v17 }
 0x21c   : > { %v12958_v32 = vpop.f32.mrf.mxu0 }
 0x21d   : > { %v12873_v33 = vpop.f32.mrf.mxu1 }
 0x21e   : > { %v10280_v3 = vadd.f32 %v12873_v33, %v12862_v6  ;;  %v12970_v17 = vpop.f32.mrf.mxu0 }
 0x21f   : > { %v10281_v42 = vpop.f32.mrf.mxu1 }
 0x221   : > { %v10282_v0 = vpop.f32.mrf.mxu1 }
 0x222   : > { %v10283_v10 = vadd.f32 %v10282_v0, %v10281_v42 }
 0x223   : > { %v10284_v30 = vpop.f32.mrf.mxu1 }
 0x225   : > { %v10285_v8 = vpop.f32.mrf.mxu1 }
 0x226   : > { %v10286_v11 = vadd.f32 %v10285_v8, %v10284_v30  ;;  %v1091_v8 = vpack.c.bf16 %v10280_v3, %v10277_v21  ;;  %v11075_v3 = vld [vmem:[%s15844_s4 + $0xa8] sm:$0xff]  }
 0x227   : > { %v12893_v13 = vpop.f32.mrf.mxu1 }
 0x228   : > { %v1092_v19 = vpack.c.bf16 %v10286_v11, %v10283_v10 }
 0x229   : > { %v12903_v29 = vpop.f32.mrf.mxu1 }
 0x22a   : > { %1927 = vrot.lane.b32.xlu1 %v1092_v19, %s12220_s23  ;;  %v10289_v26 = vadd.f32 %v12903_v29, %v12893_v13  ;;  %v11080_v13 = vld [vmem:[%s15844_s4 + $0xd0] sm:$0xff]  }
 0x22b   : > { %v12906_v37 = vpop.f32.mrf.mxu1 }
 0x22d   : > { %v12916_v56 = vpop.f32.mrf.mxu1 }
 0x22f   : > { %v12920_v52 = vpop.f32.mrf.mxu1 }
 0x231   : > { %v12925_v2 = vpop.f32.mrf.mxu1 }
 0x233   : > { %v12927_v5 = vpop.f32.mrf.mxu1 }
 0x235   : > { %v12932_v14 = vpop.f32.mrf.mxu1 }
 0x237   : > { %v10355_v23 = vpop.f32.mrf.mxu1 }
 0x239   : > { %v10356_v36 = vpop.f32.mrf.mxu1 }
 0x23a   : > { %v10357_v39 = vadd.f32 %v10356_v36, %v10355_v23  ;;  %v11072_v36 = vld [vmem:[%s15844_s4 + $0xf0] sm:$0xff]  }
 0x23b   : > { %v10358_v42 = vpop.f32.mrf.mxu1  ;;  %10621 = vmatprep.subr.bf16.mxu0 %v11072_v36  ;;  %v11078_v36 = vld [vmem:[%s15844_s4 + $0xd8] sm:$0xff]  }
 0x23d   : > { %v10359_v58 = vpop.f32.mrf.mxu1 }
 0x23e   : > { %v10360_v59 = vadd.f32 %v10359_v58, %v10358_v42  ;;  %v11073_v42 = vld [vmem:[%s15844_s4 + $0xb0] sm:$0xff]  }
 0x23f   : > { %v10361_v0 = vpop.f32.mrf.mxu1  ;;  %10622 = vmatpush3.bf16.msra.mxu0 %v11073_v42  ;;  %v11079_v42 = vld [vmem:[%s15844_s4 + $0x98] sm:$0xff]  }
 0x240   : > { %v1327_v30 = vpack.c.bf16 %v10360_v59, %v10357_v39  ;;  %v12978_v39 = vpop.f32.mrf.mxu0 }
 0x241   : > { %v10362_v7 = vpop.f32.mrf.mxu1 }
 0x242   : > { %1937 = vrot.lane.b32.xlu0 %v1327_v30, %s12220_s23  ;;  %v10363_v11 = vadd.f32 %v10362_v7, %v10361_v0  ;;  %v11074_v0 = vld [vmem:[%s15844_s4 + $0xe8] sm:$0xff]  }
 0x243   : > { %v10364_v22 = vpop.f32.mrf.mxu1  ;;  %10623 = vmatprep.subr.bf16.mxu0 %v11074_v0 }
 0x244   : > { %10624 = vmatpush3.bf16.msra.mxu0 %v11075_v3 }
 0x245   : > { %v10365_v10 = vpop.f32.mrf.mxu1 }
 0x246   : > { %v10366_v12 = vadd.f32 %v10365_v10, %v10364_v22  ;;  %1925 = vrot.lane.b32.xlu0 %v1091_v8, %s12220_s23  ;;  %v12986_v22 = vpop.f32.mrf.mxu0  ;;  %v10292_v10 = vadd.f32 %v12916_v56, %v12906_v37 }
 0x247   : > { %v12943_v18 = vpop.f32.mrf.mxu1 }
 0x248   : > { %v1328_v19 = vpack.c.bf16 %v10366_v12, %v10363_v11  ;;  %v11076_v12 = vld [vmem:[%s15844_s4 + $0xe0] sm:$0xff]   ;;  %v1093_v56 = vpack.c.bf16 %v10292_v10, %v10289_v26 }
 0x249   : > { %v12945_v24 = vpop.f32.mrf.mxu1  ;;  %10625 = vmatprep.subr.bf16.mxu0 %v11076_v12 }
 0x24a   : > { %1939 = vrot.lane.b32.xlu1 %v1328_v19, %s12220_s23  ;;  %v11077_v19 = vld [vmem:[%s15844_s4 + $0xa0] sm:$0xff]  }
 0x24b   : > { %v12948_v6 = vpop.f32.mrf.mxu1  ;;  %10626 = vmatpush3.bf16.msra.mxu0 %v11077_v19 }
 0x24c   : > { %10627 = vmatprep.subr.bf16.mxu0 %v11078_v36 }
 0x24d   : > { %v12950_v33 = vpop.f32.mrf.mxu1 }
 0x24f   : > { %v12954_v4 = vpop.f32.mrf.mxu1  ;;  %10628 = vmatpush3.bf16.msra.mxu0 %v11079_v42  ;;  %v11085_v42 = vld [vmem:[%s15844_s4 + $0x80] sm:$0xff]  }
 0x250   : > { %10629 = vmatprep.subr.bf16.mxu0 %v11080_v13 }
 0x251   : > { %v12956_v27 = vpop.f32.mrf.mxu1 }
 0x253   : > { %v12960_v44 = vpop.f32.mrf.mxu1 }
 0x255   : > { %v12962_v46 = vpop.f32.mrf.mxu1 }
 0x257   : > { %v10435_v23 = vpop.f32.mrf.mxu1 }
 0x259   : > { %v10436_v58 = vpop.f32.mrf.mxu1 }
 0x25a   : > { %v10437_v7 = vadd.f32 %v10436_v58, %v10435_v23  ;;  %v12999_v23 = vpop.f32.mrf.mxu0 }
 0x25b   : > { %v10438_v59 = vpop.f32.mrf.mxu1 }
 0x25c   : > { %v13011_v0 = vpop.f32.mrf.mxu0 }
 0x25d   : > { %v10439_v30 = vpop.f32.mrf.mxu1 }
 0x25e   : > { %v10440_v21 = vadd.f32 %v10439_v30, %v10438_v59  ;;  %v10298_v30 = vadd.f32 %v12932_v14, %v12927_v5  ;;  %v11082_v5 = vld [vmem:[%s15844_s4 + $0xc8] sm:$0xff]  }
 0x25f   : > { %v10441_v8 = vpop.f32.mrf.mxu1  ;;  %v11083_v14 = vld [vmem:[%s15844_s4 + $0x88] sm:$0xff]  }
 0x260   : > { %v1563_v11 = vpack.c.bf16 %v10440_v21, %v10437_v7  ;;  %v11081_v21 = vld [vmem:[%s15844_s4 + $0x90] sm:$0xff]  }
 0x261   : > { %v10442_v35 = vpop.f32.mrf.mxu1  ;;  %10630 = vmatpush3.bf16.msra.mxu0 %v11081_v21 }
 0x262   : > { %1949 = vrot.lane.b32.xlu1 %v1563_v11, %s12220_s23  ;;  %v10443_v29 = vadd.f32 %v10442_v35, %v10441_v8  ;;  %v10295_v8 = vadd.f32 %v12925_v2, %v12920_v52  ;;  %v13021_v11 = vpop.f32.mrf.mxu0  ;;  %v11084_v52 = vld [vmem:[%s15844_s4 + $0xc0] sm:$0xff]   ;;  %10631 = vmatprep.subr.bf16.mxu0 %v11082_v5 }
 0x263   : > { %v10444_v37 = vpop.f32.mrf.mxu1 }
 0x264   : > { %v1094_v19 = vpack.c.bf16 %v10298_v30, %v10295_v8 }
 0x265   : > { %v10445_v58 = vpop.f32.mrf.mxu1  ;;  %10632 = vmatpush3.bf16.msra.mxu0 %v11083_v14 }
 0x266   : > { %v10446_v59 = vadd.f32 %v10445_v58, %v10444_v37  ;;  %1929 = vrot.lane.b32.xlu1 %v1093_v56, %s12220_s23  ;;  %v13033_v37 = vpop.f32.mrf.mxu0  ;;  %10633 = vmatprep.subr.bf16.mxu0 %v11084_v52 }
 0x267   : > { %v10447_v3 = vpop.f32.mrf.mxu1 }
 0x268   : > { %v1564_v7 = vpack.c.bf16 %v10446_v59, %v10443_v29  ;;  %v13039_v13 = vpop.f32.mrf.mxu0 }
 0x269   : > { %v10448_v10 = vpop.f32.mrf.mxu1  ;;  %10634 = vmatpush3.bf16.msra.mxu0 %v11085_v42  ;;  %v10409_v53 = vadd.f32 %v13039_v13, %v13033_v37 }
 0x26a   : > { %1951 = vrot.lane.b32.xlu1 %v1564_v7, %s12220_s23  ;;  %v10449_v2 = vadd.f32 %v10448_v10, %v10447_v3  ;;  %v13041_v7 = vpop.f32.mrf.mxu0 }
 0x26b   : > { %v10450_v12 = vpop.f32.mrf.mxu1 }
 0x26d   : > { %v10451_v35 = vpop.f32.mrf.mxu1 }
 0x26e   : > { %v10452_v26 = vadd.f32 %v10451_v35, %v10450_v12  ;;  %1931 = vrot.lane.b32.xlu1 %v1094_v19, %s12220_s23  ;;  %v13046_v12 = vld [vmem:[%s15844_s4 + $0x118] sm:$0xff]   ;;  %v13049_v19 = vpop.f32.mrf.mxu0 }
 0x26f   : > { %v10453_v56 = vpop.f32.mrf.mxu1  ;;  %10792 = vmatprep.subr.bf16.mxu1 %v13046_v12 }
 0x270   : > { %v1565_v36 = vpack.c.bf16 %v10452_v26, %v10449_v2  ;;  %v13052_v2 = vpop.f32.mrf.mxu0 }
 0x271   : > { %v10454_v58 = vpop.f32.mrf.mxu1 }
 0x272   : > { %1953 = vrot.lane.b32.xlu1 %v1565_v36, %s12220_s23  ;;  %v10455_v3 = vadd.f32 %v10454_v58, %v10453_v56  ;;  %v10372_v56 = vadd.f32 %v12950_v33, %v12948_v6  ;;  %v10369_v58 = vadd.f32 %v12945_v24, %v12943_v18  ;;  %v10378_v6 = vadd.f32 %v12962_v46, %v12960_v44 }
 0x273   : > { %v10456_v29 = vpop.f32.mrf.mxu1  ;;  %v10375_v18 = vadd.f32 %v12956_v27, %v12954_v4 }
 0x275   : > { %v10457_v59 = vpop.f32.mrf.mxu1 }
 0x276   : > { %v10458_v30 = vadd.f32 %v10457_v59, %v10456_v29  ;;  %v13059_v29 = vpop.f32.mrf.mxu0 }
 0x277   : > { %v10515_v21 = vpop.f32.mrf.mxu1 }
 0x278   : > { %v1566_v10 = vpack.c.bf16 %v10458_v30, %v10455_v3  ;;  %v1329_v3 = vpack.c.bf16 %v10372_v56, %v10369_v58 }
 0x279   : > { %v10516_v8 = vpop.f32.mrf.mxu1 }
 0x27a   : > { %1955 = vrot.lane.b32.xlu1 %v1566_v10, %s12220_s23  ;;  %v10517_v35 = vadd.f32 %v10516_v8, %v10515_v21  ;;  %v13062_v8 = vpop.f32.mrf.mxu0 }
 0x27b   : > { %v10518_v5 = vpop.f32.mrf.mxu1 }
 0x27c   : > { %v13069_v24 = vpop.f32.mrf.mxu0 }
 0x27d   : > { %v10519_v14 = vpop.f32.mrf.mxu1 }
 0x27e   : > { %v10520_v52 = vadd.f32 %v10519_v14, %v10518_v5 }
 0x27f   : > { %v10521_v26 = vpop.f32.mrf.mxu1 }
 0x280   : > { %v1799_v36 = vpack.c.bf16 %v10520_v52, %v10517_v35  ;;  %v1330_v52 = vpack.c.bf16 %v10378_v6, %v10375_v18 }
 0x281   : > { %v10522_v42 = vpop.f32.mrf.mxu1 }
 0x282   : > { %1961 = vrot.lane.b32.xlu0 %v1799_v36, %s12220_s23  ;;  %v10523_v21 = vadd.f32 %v10522_v42, %v10521_v26  ;;  %v13072_v42 = vpop.f32.mrf.mxu0 }
 0x283   : > { %v10524_v59 = vpop.f32.mrf.mxu1 }
 0x285   : > { %v10525_v30 = vpop.f32.mrf.mxu1 }
 0x286   : > { %v10526_v10 = vadd.f32 %v10525_v30, %v10524_v59  ;;  %1941 = vrot.lane.b32.xlu0 %v1329_v3, %s12220_s23  ;;  %v10476_v59 = vpop.f32.mrf.mxu0 }
 0x287   : > { %v10527_v5 = vpop.f32.mrf.mxu1 }
 0x288   : > { %v1800_v33 = vpack.c.bf16 %v10526_v10, %v10523_v21  ;;  %v10478_v21 = vpop.f32.mrf.mxu0 }
 0x289   : > { %v10528_v14 = vpop.f32.mrf.mxu1 }
 0x28a   : > { %1963 = vrot.lane.b32.xlu0 %v1800_v33, %s12220_s23  ;;  %v10529_v56 = vadd.f32 %v10528_v14, %v10527_v5  ;;  %v10479_v5 = vpop.f32.mrf.mxu0 }
 0x28b   : > { %v10530_v35 = vpop.f32.mrf.mxu1 }
 0x28c   : > { %v13076_v6 = vpop.f32.mrf.mxu0 }
 0x28d   : > { %v10531_v26 = vpop.f32.mrf.mxu1 }
 0x28e   : > { %v10532_v36 = vadd.f32 %v10531_v26, %v10530_v35  ;;  %1943 = vrot.lane.b32.xlu0 %v1330_v52, %s12220_s23  ;;  %v13078_v33 = vpop.f32.mrf.mxu0  ;;  %v10317_v52 = vadd.f32 %v12830_v40, %v12826_v45  ;;  %v10320_v26 = vadd.f32 %v12838_v61, %v12834_v57  ;;  %v11087_v57 = vld [vmem:[%s15844_s4 + $0x110] sm:$0xff]  }
 0x28f   : > { %v10533_v58 = vpop.f32.mrf.mxu1 }
 0x290   : > { %v1801_v44 = vpack.c.bf16 %v10532_v36, %v10529_v56  ;;  %v13080_v14 = vpop.f32.mrf.mxu0  ;;  %v1209_v36 = vpack.c.bf16 %v10320_v26, %v10317_v52 }
 0x291   : > { %v10534_v46 = vpop.f32.mrf.mxu1 }
 0x292   : > { %1965 = vrot.lane.b32.xlu0 %v1801_v44, %s12220_s23  ;;  %v10535_v3 = vadd.f32 %v10534_v46, %v10533_v58  ;;  %v10485_v18 = vpop.f32.mrf.mxu0 }
 0x293   : > { %v10536_v4 = vpop.f32.mrf.mxu1 }
 0x294   : > { %v13082_v35 = vpop.f32.mrf.mxu0 }
 0x295   : > { %v10537_v27 = vpop.f32.mrf.mxu1 }
 0x296   : > { %v10538_v30 = vadd.f32 %v10537_v27, %v10536_v4  ;;  %v13088_v56 = vpop.f32.mrf.mxu0  ;;  %v10323_v4 = vadd.f32 %v12844_v63, %v12840_v62  ;;  %v10326_v27 = vadd.f32 %v12860_v48, %v12850_v47  ;;  %v11088_v63 = vld [vmem:[%s15844_s4 + $0x108] sm:$0xff]  }
 0x298   : > { %v1802_v10 = vpack.c.bf16 %v10538_v30, %v10535_v3  ;;  %v13091_v46 = vpop.f32.mrf.mxu0  ;;  %v1210_v30 = vpack.c.bf16 %v10326_v27, %v10323_v4 }
 0x29a   : > { %1967 = vrot.lane.b32.xlu0 %v1802_v10, %s12220_s23  ;;  %v13104_v3 = vpop.f32.mrf.mxu0 }
 0x29b   : > { %v10492_v43 = vadd.f32 %v13104_v3, %v13091_v46 }
 0x29c   : > { %v1928_v45 = vpop.permute.xlu1 %1927  ;;  %v13111_v48 = vpop.f32.mrf.mxu0 }
 0x29d   : > { %v1976_v20 = vsel %vm1969_vm1, %v974_v38, %v1928_v45  ;;  %v10477_v45 = vadd.f32 %v10476_v59, %v13072_v42  ;;  %v10483_v42 = vadd.f32 %v13078_v33, %v13076_v6  ;;  %v10486_v59 = vadd.f32 %v10485_v18, %v13080_v14 }
 0x2b4   : > { %v1938_v58 = vpop.permute.xlu0 %1937 }
 0x2b5   : > { %v1988_v44 = vsel %vm1969_vm1, %v1209_v36, %v1938_v58 }
 0x2b6   : > { %2373 = vmatprep.mubr.bf16.mxu1 %v1988_v44 }
 0x2b8   : > { %v1926_v40 = vpop.permute.xlu0 %1925 }
 0x2b9   : > { %v1972_v61 = vsel %vm1969_vm1, %v973_v25, %v1926_v40  ;;  %v13120_v25 = vpop.f32.mrf.mxu0  ;;  %v10480_v40 = vadd.f32 %v10479_v5, %v10478_v21 }
 0x2ba   : > { %2374 = vmatmul.mubr.bf16.vlgmr.msra.gmra.mxu1 %v1972_v61  ;;  %v10400_v61 = vadd.f32 %v12978_v39, %v12970_v17  ;;  %v10406_v17 = vadd.f32 %v13021_v11, %v13011_v0 }
 0x2bb   : > { %10793 = vmatpush3.bf16.msra.mxu1 %v13046_v12  ;;  %v13122_v12 = vpop.f32.mrf.mxu0 }
 0x2bc   : > { %v1940_v62 = vpop.permute.xlu1 %1939  ;;  %10794 = vmatprep.subr.bf16.mxu1 %v11087_v57 }
 0x2bd   : > { %v1992_v47 = vsel %vm1969_vm1, %v1210_v30, %v1940_v62  ;;  %v13124_v10 = vpop.f32.mrf.mxu0 }
 0x2be   : > { %2381 = vmatprep.mubr.bf16.mxu1 %v1992_v47 }
 0x2bf   : > { %10795 = vmatpush3.bf16.msra.mxu1 %v11087_v57  ;;  %v10555_v52 = vpop.f32.mrf.mxu0  ;;  %v10397_v57 = vadd.f32 %v12958_v32, %v12952_v31  ;;  %v10403_v32 = vadd.f32 %v12999_v23, %v12986_v22 }
 0x2c0   : > { %10796 = vmatprep.subr.bf16.mxu1 %v11088_v63 }
 0x2c1   : > { %v10556_v26 = vpop.f32.mrf.mxu0  ;;  %v1445_v47 = vpack.c.bf16 %v10400_v61, %v10397_v57  ;;  %v1446_v33 = vpack.c.bf16 %v10406_v17, %v10403_v32  ;;  %v10415_v57 = vadd.f32 %v13059_v29, %v13052_v2 }
 0x2c2   : > { %2382 = vmatmul.mubr.bf16.gmra.mxu1 %v1976_v20  ;;  %v10557_v11 = vadd.f32 %v10556_v26, %v10555_v52  ;;  %v15855_v52 = vpack.c.bf16 %v12908_v41, %v12895_v15 }
 0x2c3   : > { %10797 = vmatpush3.bf16.msra.mxu1 %v11088_v63  ;;  %v10558_v36 = vpop.f32.mrf.mxu0  ;;  %v1681_v63 = vpack.c.bf16 %v10480_v40, %v10477_v45  ;;  %v10498_v40 = vadd.f32 %v13124_v10, %v13122_v12 }
 0x2c4   : > { %10798 = vmatprep.subr.bf16.mxu1 %v11089_v16 }
 0x2c5   : > { %v10559_v58 = vpop.f32.mrf.mxu0 }
 0x2c6   : > { %v10560_v14 = vadd.f32 %v10559_v58, %v10558_v36 }
 0x2c7   : > { %10799 = vmatpush3.bf16.msra.mxu1 %v11089_v16  ;;  %v10561_v44 = vpop.f32.mrf.mxu0 }
 0x2c8   : > { %v1917_v36 = vpack.c.bf16 %v10560_v14, %v10557_v11 }
 0x2c9   : > { %v10562_v4 = vpop.f32.mrf.mxu0 }
 0x2cb   : > { %v10564_v27 = vpop.f32.mrf.mxu0 }
 0x2cd   : > { %v10565_v28 = vpop.f32.mrf.mxu0 }
 0x2cf   : > { %v10567_v38 = vpop.f32.mrf.mxu0 }
 0x2d1   : > { %v10568_v62 = vpop.f32.mrf.mxu0 }
 0x2d2   : > { %v10569_v41 = vadd.f32 %v10568_v62, %v10567_v38 }
 0x2d3   : > { %v10570_v54 = vpop.f32.mrf.mxu0 }
 0x2d4   : > { %v1950_v34 = vpop.permute.xlu1 %1949 }
 0x2d5   : > { %v2004_v1 = vsel %vm1969_vm1, %v1445_v47, %v1950_v34  ;;  %v10571_v6 = vpop.f32.mrf.mxu0 }
 0x2d6   : > { %v10572_v34 = vadd.f32 %v10571_v6, %v10570_v54 }
 0x2d7   : > { %v10573_v50 = vpop.f32.mrf.mxu0 }
 0x2d8   : > { %v1930_v30 = vpop.permute.xlu1 %1929 }
 0x2d9   : > { %v1980_v5 = vsel %vm1969_vm1, %v975_v51, %v1930_v30  ;;  %v10412_v51 = vadd.f32 %v13049_v19, %v13041_v7  ;;  %v10574_v46 = vpop.f32.mrf.mxu0  ;;  %v10563_v7 = vadd.f32 %v10562_v4, %v10561_v44  ;;  %v10566_v19 = vadd.f32 %v10565_v28, %v10564_v27 }
 0x2da   : > { %v10418_v44 = vadd.f32 %v13069_v24, %v13062_v8  ;;  %v1919_v27 = vpack.c.bf16 %v10572_v34, %v10569_v41  ;;  %v12221_v8 = vmov 0.0  }
 0x2db   : > { %v1447_v37 = vpack.c.bf16 %v10412_v51, %v10409_v53  ;;  %v1918_v4 = vpack.c.bf16 %v10566_v19, %v10563_v7  ;;  %10808 = vmatprep.subr.bf16.mxu0 %v12221_v8  ;;  %10820 = vmatprep.subr.bf16.mxu1 %v12221_v8 }
 0x2dc   : > { %v1952_v31 = vpop.permute.xlu1 %1951  ;;  %v1448_v61 = vpack.c.bf16 %v10418_v44, %v10415_v57 }
 0x2dd   : > { %v2008_v55 = vsel %vm1969_vm1, %v1446_v33, %v1952_v31 }
 0x2e0   : > { %v1932_v23 = vpop.permute.xlu1 %1931 }
 0x2e4   : > { %v1954_v58 = vpop.permute.xlu1 %1953 }
 0x2e5   : > { %v2012_v45 = vsel %vm1969_vm1, %v1447_v37, %v1954_v58 }
 0x2ec   : > { %v1956_v38 = vpop.permute.xlu1 %1955 }
 0x2ed   : > { %v2016_v2 = vsel %vm1969_vm1, %v1448_v61, %v1956_v38 }
 0x2f4   : > { %v1962_v16 = vpop.permute.xlu0 %1961 }
 0x2f5   : > { %v2020_v20 = vsel %vm1969_vm1, %v1681_v63, %v1962_v16 }
 0x2f6   : > { %2438 = vmatprep.mubr.bf16.mxu0 %v2020_v20 }
 0x2f7   : > { %2439 = vmatmul.mubr.bf16.vlgmr.msra.gmra.mxu0 %v2004_v1  ;;  %v1682_v1 = vpack.c.bf16 %v10486_v59, %v10483_v42 }
 0x2f8   : > { %v1942_v39 = vpop.permute.xlu0 %1941 }
 0x2f9   : > { %v1996_v21 = vsel %vm1969_vm1, %v1211_v9, %v1942_v39  ;;  %v10489_v9 = vadd.f32 %v13088_v56, %v13082_v35  ;;  %v15856_v35 = vpack.c.bf16 %v12842_v49, %v12836_v60  ;;  %v10576_v60 = vpop.f32.mrf.mxu0  ;;  %v10495_v49 = vadd.f32 %v13120_v25, %v13111_v48 }
 0x2fa   : > { %2389 = vmatprep.mubr.bf16.mxu1 %v1996_v21  ;;  %v10575_v48 = vadd.f32 %v10574_v46, %v10573_v50 }
 0x2fb   : > { %2390 = vmatmul.mubr.bf16.gmra.mxu1 %v1980_v5  ;;  %v1984_v56 = vsel %vm1969_vm1, %v15856_v35, %v1932_v23  ;;  %v1683_v3 = vpack.c.bf16 %v10492_v43, %v10489_v9  ;;  %v10577_v54 = vpop.f32.mrf.mxu0  ;;  %v1684_v28 = vpack.c.bf16 %v10498_v40, %v10495_v49  ;;  %v9353_v35 = vld [vmem:[%s15845_s5] ss:$0 sm:$0xff] }
 0x2fc   : > { %v1964_v22 = vpop.permute.xlu0 %1963  ;;  %v10578_v25 = vadd.f32 %v10577_v54, %v10576_v60 }
 0x2fd   : > { %v2024_v0 = vsel %vm1969_vm1, %v1682_v1, %v1964_v22 }
 0x2fe   : > { %2446 = vmatprep.mubr.bf16.mxu0 %v2024_v0  ;;  %v1920_v29 = vpack.c.bf16 %v10578_v25, %v10575_v48 }
 0x2ff   : > { %2447 = vmatmul.mubr.bf16.gmra.mxu0 %v2008_v55 }
 0x300   : > { %v1944_v18 = vpop.permute.xlu0 %1943 }
 0x301   : > { %v2000_v26 = vsel %vm1969_vm1, %v15855_v52, %v1944_v18 }
 0x302   : > { %2397 = vmatprep.mubr.bf16.mxu1 %v2000_v26 }
 0x303   : > { %2398 = vmatmul.mubr.bf16.gmra.mxu1 %v1984_v56 }
 0x304   : > { %v1966_v13 = vpop.permute.xlu0 %1965  ;;  %10800 = vmatprep.mubr.msk.bf16.mxu1 %vm1969_vm1, %v1917_v36 }
 0x305   : > { %v2028_v15 = vsel %vm1969_vm1, %v1683_v3, %v1966_v13 }
 0x306   : > { %2454 = vmatprep.mubr.bf16.mxu0 %v2028_v15 }
 0x307   : > { %2455 = vmatmul.mubr.bf16.gmra.mxu0 %v2012_v45 }
 0x30b   : > { %10801 = vmatmul.mubr.msk.bf16.vlgmr.msra.gmra.mxu1 %vm1969_vm1, %v1918_v4 }
 0x30c   : > { %v1968_v30 = vpop.permute.xlu0 %1967  ;;  %10804 = vmatprep.mubr.msk.bf16.mxu1 %vm1969_vm1, %v1919_v27 }
 0x30d   : > { %v2032_v12 = vsel %vm1969_vm1, %v1684_v28, %v1968_v30 }
 0x30e   : > { %2462 = vmatprep.mubr.bf16.mxu0 %v2032_v12 }
 0x30f   : > { %2463 = vmatmul.mubr.bf16.gmra.mxu0 %v2016_v2 }
 0x310   : > { %10816 = vmatprep.mubr.msk.bf16.mxu0 %vm12222_vm2, %v12221_v8 }
 0x313   : > { %10805 = vmatmul.mubr.msk.bf16.gmra.mxu1 %vm1969_vm1, %v1920_v29 }
 0x314   : > { %10828 = vmatprep.mubr.msk.bf16.mxu1 %vm12222_vm2, %v12221_v8 }
 0x37a   : > { %v13188_v24 = vpop.f32.mrf.mxu1 }
 0x37c   : > { %v13190_v10 = vpop.f32.mrf.mxu1 }
 0x37e   : > { %v10598_v62 = vpop.f32.mrf.mxu1 }
 0x380   : > { %v10599_v63 = vpop.f32.mrf.mxu1 }
 0x381   : > { %v10600_v25 = vadd.f32 %v10599_v63, %v10598_v62 }
 0x382   : > { %v10601_v47 = vpop.f32.mrf.mxu1 }
 0x384   : > { %v10602_v16 = vpop.f32.mrf.mxu1 }
 0x385   : > { %v10603_v27 = vadd.f32 %v10602_v16, %v10601_v47 }
 0x386   : > { %v10604_v20 = vpop.f32.mrf.mxu1 }
 0x388   : > { %v10605_v59 = vpop.f32.mrf.mxu1 }
 0x389   : > { %v10606_v45 = vadd.f32 %v10605_v59, %v10604_v20  ;;  %v10597_v59 = vadd.f32 %v13190_v10, %v13188_v24 }
 0x38b   : > { %v2387_v12 = vadd.f32 %v10606_v45, %v9353_v35  ;;  %v11108_v45 = vld [vmem:[%s15847_s7 + $0x40] ss:$8 sps:$4 sm:$0xff]  }
 0x3b7   : > { %v13192_v42 = vpop.f32.mrf.mxu0 }
 0x3b9   : > { %v13194_v31 = vpop.f32.mrf.mxu0 }
 0x3bb   : > { %v10607_v32 = vpop.f32.mrf.mxu1  ;;  %v10638_v17 = vpop.f32.mrf.mxu0 }
 0x3bd   : > { %v10608_v39 = vpop.f32.mrf.mxu1  ;;  %v10639_v21 = vpop.f32.mrf.mxu0 }
 0x3be   : > { %v10609_v7 = vadd.f32 %v10608_v39, %v10607_v32 }
 0x3bf   : > { %v10610_v5 = vpop.f32.mrf.mxu1  ;;  %v10641_v6 = vpop.f32.mrf.mxu0 }
 0x3c0   : > { %v2392_v54 = vadd.f32 %v10609_v7, %v9353_v35  ;;  %v11104_v7 = vld [vmem:[%s15847_s7 + $0x64] ss:$8 sps:$4 sm:$0xff]  }
 0x3c1   : > { %v10611_v1 = vpop.f32.mrf.mxu1  ;;  %v10642_v33 = vpop.f32.mrf.mxu0 }
 0x3c2   : > { %v10612_v3 = vadd.f32 %v10611_v1, %v10610_v5  ;;  %v10643_v29 = vadd.f32 %v10642_v33, %v10641_v6  ;;  %v2384_v5 = vadd.f32 %v10603_v27, %v9353_v35  ;;  %v10640_v1 = vadd.f32 %v10639_v21, %v10638_v17  ;;  %v11120_v27 = vld [vmem:[%s15847_s7 + $0x160] ss:$8 sps:$4 sm:$0xff]  }
 0x3c3   : > { %v10613_v22 = vpop.f32.mrf.mxu1  ;;  %v10644_v23 = vpop.f32.mrf.mxu0  ;;  %v2376_v33 = vadd.f32 %v10597_v59, %v9353_v35  ;;  %v11146_v59 = vld [vmem:[%s15847_s7 + $0x124] ss:$8 sps:$4 sm:$0xff]  }
 0x3c4   : > { %v2395_v40 = vadd.f32 %v10612_v3, %v9353_v35  ;;  %v2449_v62 = vadd.f32 %v10643_v29, %v2384_v5  ;;  %v11101_v3 = vld [vmem:[%s15847_s7 + $0x74] ss:$8 sps:$4 sm:$0xff]   ;;  %v11143_v5 = vld [vmem:[%s15847_s7 + $0xe4] ss:$8 sps:$4 sm:$0xff]  }
 0x3c5   : > { %v10614_v0 = vpop.f32.mrf.mxu1  ;;  %v10645_v11 = vpop.f32.mrf.mxu0  ;;  %v11140_v29 = vld [vmem:[%s15847_s7 + $0x134] ss:$8 sps:$4 sm:$0xff]  }
 0x3c6   : > { %v10615_v52 = vadd.f32 %v10614_v0, %v10613_v22  ;;  %v10646_v38 = vadd.f32 %v10645_v11, %v10644_v23  ;;  %v2379_v23 = vadd.f32 %v10600_v25, %v9353_v35  ;;  %v10637_v11 = vadd.f32 %v13194_v31, %v13192_v42  ;;  %v11131_v25 = vld [vmem:[%s15847_s7 + $0x4] ss:$8 sps:$4 sm:$0xff]  }
 0x3c7   : > { %v10616_v14 = vpop.f32.mrf.mxu1  ;;  %v10647_v55 = vpop.f32.mrf.mxu0 }
 0x3c8   : > { %v2400_v58 = vadd.f32 %v10615_v52, %v9353_v35  ;;  %v2452_v22 = vadd.f32 %v10646_v38, %v2387_v12  ;;  %v2441_v24 = vadd.f32 %v10637_v11, %v2376_v33  ;;  %v11090_v52 = vld [vmem:[%s15846_s6 + $0x8] sm:$0xff]   ;;  %v11125_v38 = vld [vmem:[%s15847_s7 + $0x14] ss:$8 sps:$4 sm:$0xff]  }
 0x3c9   : > { %v10617_v50 = vpop.f32.mrf.mxu1  ;;  %v10648_v9 = vpop.f32.mrf.mxu0  ;;  %v11132_v12 = vld [vmem:[%s15847_s7 + $0x140] ss:$8 sps:$4 sm:$0xff]   ;;  %v11158_v11 = vld [vmem:[%s15847_s7 + $0x104] ss:$8 sps:$4 sm:$0xff]   ;;  %v11161_v33 = vld [vmem:[%s15847_s7 + $0xb4] ss:$8 sps:$4 sm:$0xff]  }
 0x3ca   : > { %v10618_v37 = vadd.f32 %v10617_v50, %v10616_v14  ;;  %v10649_v44 = vadd.f32 %v10648_v9, %v10647_v55  ;;  %v2444_v50 = vadd.f32 %v10640_v1, %v2379_v23  ;;  %v11144_v1 = vld [vmem:[%s15847_s7 + $0x120] ss:$8 sps:$4 sm:$0xff]   ;;  %v11147_v23 = vld [vmem:[%s15847_s7 + $0xd0] ss:$8 sps:$4 sm:$0xff]  }
 0x3cb   : > { %v10650_v43 = vpop.f32.mrf.mxu0  ;;  %v10802_v53 = vpop.f32.mrf.mxu1 }
 0x3cc   : > { %v2403_v57 = vadd.f32 %v10618_v37, %v9353_v35  ;;  %v2457_v32 = vadd.f32 %v10649_v44, %v2392_v54  ;;  %v2514_v55 = vadd.f32 %v10802_v53, %v2449_v62  ;;  %v11093_v35 = vld [vmem:[%s15846_s6 + $0x10] sm:$0xff]   ;;  %v11097_v37 = vld [vmem:[%s15846_s6 + $0x38] sm:$0xff]   ;;  %v11122_v44 = vld [vmem:[%s15847_s7 + $0x164] ss:$8 sps:$4 sm:$0xff]  }
 0x3cd   : > { %v10651_v51 = vpop.f32.mrf.mxu0  ;;  %v13196_v18 = vpop.f32.mrf.mxu1  ;;  %v11117_v54 = vld [vmem:[%s15847_s7 + $0x20] ss:$8 sps:$4 sm:$0xff]   ;;  %v11155_v62 = vld [vmem:[%s15847_s7 + $0xc4] ss:$8 sps:$4 sm:$0xff]  }
 0x3ce   : > { %v10652_v41 = vadd.f32 %v10651_v51, %v10650_v43  ;;  %v2538_v17 = vmax.f32 %v2514_v55, 0.0  ;;  %v2506_v21 = vadd.f32 %v13196_v18, %v2441_v24  ;;  %v11162_v55 = vld [vmem:[%s15847_s7 + $0x1f0] ss:$8 sps:$4 sm:$0xff]   ;;  %v11167_v24 = vld [vmem:[%s15847_s7 + $0xa4] ss:$8 sps:$4 sm:$0xff]  }
 0x3cf   : > { %v10653_v26 = vpop.f32.mrf.mxu0  ;;  %v10803_v36 = vpop.f32.mrf.mxu1 }
 0x3d0   : > { %v2460_v48 = vadd.f32 %v10652_v41, %v2395_v40  ;;  %v2517_v63 = vadd.f32 %v10803_v36, %v2452_v22  ;;  %v2536_v51 = vmax.f32 %v2506_v21, 0.0  ;;  %v11092_v36 = vld [vmem:[%s15846_s6 + $0x18] sm:$0xff]   ;;  %v11098_v40 = vld [vmem:[%s15846_s6 + $0x40] sm:$0xff]  }
 0x3d1   : > { %v10654_v56 = vpop.f32.mrf.mxu0  ;;  %v2508_v46 = vpop.f32.mrf.mxu1  ;;  %v11105_v41 = vld [vmem:[%s15847_s7 + $0x50] ss:$8 sps:$4 sm:$0xff]   ;;  %v11141_v22 = vld [vmem:[%s15847_s7 + $0xe0] ss:$8 sps:$4 sm:$0xff]  }
 0x3d2   : > { %v10655_v13 = vadd.f32 %v10654_v56, %v10653_v26  ;;  %v2539_v10 = vmax.f32 %v2517_v63, 0.0  ;;  %v2509_v42 = vadd.f32 %v2508_v46, %v2444_v50  ;;  %v11091_v26 = vld [vmem:[%s15846_s6] sm:$0xff]   ;;  %v11095_v46 = vld [vmem:[%s15846_s6 + $0x28] sm:$0xff]   ;;  %v11159_v50 = vld [vmem:[%s15847_s7 + $0xb0] ss:$8 sps:$4 sm:$0xff]  }
 0x3d3   : > { %v10656_v19 = vpop.f32.mrf.mxu0  ;;  %v10806_v15 = vpop.f32.mrf.mxu1  ;;  %v11094_v56 = vld [vmem:[%s15846_s6 + $0x20] sm:$0xff]   ;;  %v11174_v21 = vld [vmem:[%s15847_s7 + $0x1d0] ss:$8 sps:$4 sm:$0xff]  }
 0x3d4   : > { %v2465_v34 = vadd.f32 %v10655_v13, %v2400_v58  ;;  %v13218_v43 = vpack.c.bf16 %v2539_v10, %v2538_v17  ;;  %v2537_v53 = vmax.f32 %v2509_v42, 0.0  ;;  %v11096_v58 = vld [vmem:[%s15846_s6 + $0x30] sm:$0xff]   ;;  %v11156_v63 = vld [vmem:[%s15847_s7 + $0x100] ss:$8 sps:$4 sm:$0xff]  }
 0x3d5   : > { %v10657_v60 = vpop.f32.mrf.mxu0  ;;  %v2521_v49 = vpop.f32.mrf.mxu1  ;;  %v11099_v13 = vld [vmem:[%s15847_s7 + $0x70] ss:$8 sps:$4 sm:$0xff]   ;;  %v11168_v10 = vld [vmem:[%s15847_s7 + $0x1e0] ss:$8 sps:$4 sm:$0xff]   ;;  %v11173_v17 = vld [vmem:[%s15847_s7 + $0x94] ss:$8 sps:$4 sm:$0xff]  }
 0x3d6   : > { %v10658_v4 = vadd.f32 %v10657_v60, %v10656_v19  ;;  %v2530_v61 = vadd.f32 %v10806_v15, %v2465_v34  ;;  %v2522_v16 = vadd.f32 %v2521_v49, %v2457_v32  ;;  %v13224_v18 = vpack.c.bf16 %v2537_v53, %v2536_v51  ;;  %v11102_v19 = vld [vmem:[%s15847_s7 + $0x60] ss:$8 sps:$4 sm:$0xff]   ;;  %v11107_v15 = vld [vmem:[%s15847_s7 + $0x54] ss:$8 sps:$4 sm:$0xff]   ;;  %v11110_v34 = vld [vmem:[%s15847_s7 + $0x44] ss:$8 sps:$4 sm:$0xff]  }
 0x3d7   : > { %v10807_v28 = vpop.f32.mrf.mxu1  ;;  %v11116_v60 = vld [vmem:[%s15847_s7 + $0x174] ss:$8 sps:$4 sm:$0xff]   ;;  %v11165_v42 = vld [vmem:[%s15847_s7 + $0xa0] ss:$8 sps:$4 sm:$0xff]   ;;  %v11182_v53 = vld [vmem:[%s15847_s7 + $0x1c4] ss:$8 sps:$4 sm:$0xff]  }
 0x3d8   : > { %v2468_v30 = vadd.f32 %v10658_v4, %v2403_v57  ;;  %v2542_v47 = vmax.f32 %v2530_v61, 0.0  ;;  %v2540_v9 = vmax.f32 %v2522_v16, 0.0  ;;  %v11113_v49 = vld [vmem:[%s15847_s7 + $0x34] ss:$8 sps:$4 sm:$0xff]   ;;  %v11111_v57 = vld [vmem:[%s15847_s7 + $0x30] ss:$8 sps:$4 sm:$0xff]  }
 0x3d9   : > { %v2524_v2 = vpop.f32.mrf.mxu1  ;;  %v11119_v4 = vld [vmem:[%s15847_s7 + $0x24] ss:$8 sps:$4 sm:$0xff]   ;;  %v11126_v61 = vld [vmem:[%s15847_s7 + $0x150] ss:$8 sps:$4 sm:$0xff]   ;;  %v11137_v32 = vld [vmem:[%s15847_s7 + $0xf4] ss:$8 sps:$4 sm:$0xff]  }
 0x3da   : > { %v2533_v39 = vadd.f32 %v10807_v28, %v2468_v30  ;;  %v2525_v20 = vadd.f32 %v2524_v2, %v2460_v48  ;;  %v11128_v28 = vld [vmem:[%s15847_s7 + $0x154] ss:$8 sps:$4 sm:$0xff]   ;;  %v11123_v30 = vld [vmem:[%s15847_s7 + $0x10] ss:$8 sps:$4 sm:$0xff]   ;;  %v11134_v48 = vld [vmem:[%s15847_s7 + $0x144] ss:$8 sps:$4 sm:$0xff]  }
 0x3db   : > { %v11129_v2 = vld [vmem:[%s15847_s7] ss:$8 sps:$4 sm:$0xff]   ;;  %v11149_v16 = vld [vmem:[%s15847_s7 + $0xd4] ss:$8 sps:$4 sm:$0xff]   ;;  %v11179_v51 = vld [vmem:[%s15847_s7 + $0x84] ss:$8 sps:$4 sm:$0xff]  }
 0x3dc   : > { %v2543_v0 = vmax.f32 %v2533_v39, 0.0  ;;  %v2541_v6 = vmax.f32 %v2525_v20, 0.0  ;;  %v11138_v39 = vld [vmem:[%s15847_s7 + $0x130] ss:$8 sps:$4 sm:$0xff]  }
 0x3dd   : > { %v11135_v20 = vld [vmem:[%s15847_s7 + $0xf0] ss:$8 sps:$4 sm:$0xff]  }
 0x3de   : > { %v13205_v14 = vpack.c.bf16 %v2543_v0, %v2542_v47  ;;  %v13211_v31 = vpack.c.bf16 %v2541_v6, %v2540_v9  ;;  %v11152_v47 = vld [vmem:[%s15847_s7 + $0x114] ss:$8 sps:$4 sm:$0xff]   ;;  %v11150_v0 = vld [vmem:[%s15847_s7 + $0x110] ss:$8 sps:$4 sm:$0xff]   ;;  %v11170_v9 = vld [vmem:[%s15847_s7 + $0x1e4] ss:$8 sps:$4 sm:$0xff]  }
 0x3df   : > { %v11164_v6 = vld [vmem:[%s15847_s7 + $0x1f4] ss:$8 sps:$4 sm:$0xff]  }
 0x3e0   : > { %10809 = vmatpush3.bf16.msra.mxu0 %v13205_v14  ;;  %10821 = vmatpush3.bf16.msra.mxu1 %v13205_v14 }
 0x3e1   : > { %10810 = vmatprep.subr.bf16.mxu0 %v12221_v8  ;;  %10822 = vmatprep.subr.bf16.mxu1 %v12221_v8 }
 0x3e4   : > { %10811 = vmatpush3.bf16.msra.mxu0 %v13211_v31  ;;  %10823 = vmatpush3.bf16.msra.mxu1 %v13211_v31 }
 0x3e5   : > { %10812 = vmatprep.subr.bf16.mxu0 %v12221_v8  ;;  %10824 = vmatprep.subr.bf16.mxu1 %v12221_v8 }
 0x3e8   : > { %10813 = vmatpush3.bf16.msra.mxu0 %v13218_v43  ;;  %10825 = vmatpush3.bf16.msra.mxu1 %v13218_v43 }
 0x3e9   : > { %10814 = vmatprep.subr.bf16.mxu0 %v12221_v8  ;;  %10826 = vmatprep.subr.bf16.mxu1 %v12221_v8 }
 0x3ec   : > { %10815 = vmatpush3.bf16.msra.mxu0 %v13224_v18  ;;  %10827 = vmatpush3.bf16.msra.mxu1 %v13224_v18 }
 0x3ed   : > { %10832 = vmatprep.subr.bf16.mxu0 %v12221_v8  ;;  %10844 = vmatprep.subr.bf16.mxu1 %v12221_v8 }
 0x3ef   : > { %10829 = vmatmul.mubr.msk.bf16.vlgmr.msra.gmra.mxu1 %vm1969_vm1, %v11090_v52  ;;  %10817 = vmatmul.mubr.msk.bf16.vlgmr.msra.gmra.mxu0 %vm1969_vm1, %v11091_v26  ;;  %v11177_v52 = vld [vmem:[%s15847_s7 + $0x80] ss:$8 sps:$4 sm:$0xff]   ;;  %v11185_v26 = vld [vmem:[%s15847_s7 + $0x1b4] ss:$8 sps:$4 sm:$0xff]  }
 0x3f0   : > { %10833 = vmatpush3.bf16.msra.mxu0 %v13205_v14  ;;  %10845 = vmatpush3.bf16.msra.mxu1 %v13205_v14 }
 0x3f1   : > { %10834 = vmatprep.subr.bf16.mxu0 %v12221_v8  ;;  %10846 = vmatprep.subr.bf16.mxu1 %v12221_v8 }
 0x3f2   : > { %10852 = vmatprep.mubr.msk.bf16.mxu1 %vm12222_vm2, %v12221_v8  ;;  %10840 = vmatprep.mubr.msk.bf16.mxu0 %vm12222_vm2, %v12221_v8 }
 0x3f4   : > { %10835 = vmatpush3.bf16.msra.mxu0 %v13211_v31  ;;  %10847 = vmatpush3.bf16.msra.mxu1 %v13211_v31 }
 0x3f5   : > { %10836 = vmatprep.subr.bf16.mxu0 %v12221_v8  ;;  %10848 = vmatprep.subr.bf16.mxu1 %v12221_v8 }
 0x3f8   : > { %10837 = vmatpush3.bf16.msra.mxu0 %v13218_v43  ;;  %10849 = vmatpush3.bf16.msra.mxu1 %v13218_v43 }
 0x3f9   : > { %10838 = vmatprep.subr.bf16.mxu0 %v12221_v8  ;;  %10850 = vmatprep.subr.bf16.mxu1 %v12221_v8 }
 0x3fc   : > { %10839 = vmatpush3.bf16.msra.mxu0 %v13224_v18  ;;  %10851 = vmatpush3.bf16.msra.mxu1 %v13224_v18 }
 0x3fd   : > { %10856 = vmatprep.subr.bf16.mxu0 %v12221_v8  ;;  %10868 = vmatprep.subr.bf16.mxu1 %v12221_v8 }
 0x3ff   : > { %10853 = vmatmul.mubr.msk.bf16.vlgmr.msra.gmra.mxu1 %vm1969_vm1, %v11092_v36  ;;  %10841 = vmatmul.mubr.msk.bf16.vlgmr.msra.gmra.mxu0 %vm1969_vm1, %v11093_v35  ;;  %v11188_v36 = vld [vmem:[%s15847_s7 + $0x274] ss:$8 sps:$4 sm:$0xff]   ;;  %v11183_v35 = vld [vmem:[%s15847_s7 + $0x1b0] ss:$8 sps:$4 sm:$0xff]  }
 0x400   : > { %10857 = vmatpush3.bf16.msra.mxu0 %v13205_v14  ;;  %10869 = vmatpush3.bf16.msra.mxu1 %v13205_v14 }
 0x401   : > { %10858 = vmatprep.subr.bf16.mxu0 %v12221_v8  ;;  %10870 = vmatprep.subr.bf16.mxu1 %v12221_v8 }
 0x402   : > { %10864 = vmatprep.mubr.msk.bf16.mxu0 %vm12222_vm2, %v12221_v8  ;;  %10876 = vmatprep.mubr.msk.bf16.mxu1 %vm12222_vm2, %v12221_v8 }
 0x404   : > { %10859 = vmatpush3.bf16.msra.mxu0 %v13211_v31  ;;  %10871 = vmatpush3.bf16.msra.mxu1 %v13211_v31 }
 0x405   : > { %10860 = vmatprep.subr.bf16.mxu0 %v12221_v8  ;;  %10872 = vmatprep.subr.bf16.mxu1 %v12221_v8 }
 0x408   : > { %10861 = vmatpush3.bf16.msra.mxu0 %v13218_v43  ;;  %10873 = vmatpush3.bf16.msra.mxu1 %v13218_v43 }
 0x409   : > { %10862 = vmatprep.subr.bf16.mxu0 %v12221_v8  ;;  %10874 = vmatprep.subr.bf16.mxu1 %v12221_v8 }
 0x40c   : > { %10863 = vmatpush3.bf16.msra.mxu0 %v13224_v18  ;;  %10875 = vmatpush3.bf16.msra.mxu1 %v13224_v18 }
 0x40d   : > { %10880 = vmatprep.subr.bf16.mxu0 %v12221_v8  ;;  %10892 = vmatprep.subr.bf16.mxu1 %v12221_v8 }
 0x40f   : > { %10865 = vmatmul.mubr.msk.bf16.vlgmr.msra.gmra.mxu0 %vm1969_vm1, %v11094_v56  ;;  %10877 = vmatmul.mubr.msk.bf16.vlgmr.msra.gmra.mxu1 %vm1969_vm1, %v11095_v46  ;;  %v11191_v56 = vld [vmem:[%s15847_s7 + $0x1a4] ss:$8 sps:$4 sm:$0xff]   ;;  %v11189_v46 = vld [vmem:[%s15847_s7 + $0x1a0] ss:$8 sps:$4 sm:$0xff]  }
 0x410   : > { %10881 = vmatpush3.bf16.msra.mxu0 %v13205_v14  ;;  %10893 = vmatpush3.bf16.msra.mxu1 %v13205_v14 }
 0x411   : > { %10882 = vmatprep.subr.bf16.mxu0 %v12221_v8  ;;  %10894 = vmatprep.subr.bf16.mxu1 %v12221_v8 }
 0x412   : > { %10888 = vmatprep.mubr.msk.bf16.mxu0 %vm12222_vm2, %v12221_v8  ;;  %10900 = vmatprep.mubr.msk.bf16.mxu1 %vm12222_vm2, %v12221_v8 }
 0x414   : > { %10883 = vmatpush3.bf16.msra.mxu0 %v13211_v31  ;;  %10895 = vmatpush3.bf16.msra.mxu1 %v13211_v31 }
 0x415   : > { %10884 = vmatprep.subr.bf16.mxu0 %v12221_v8  ;;  %10896 = vmatprep.subr.bf16.mxu1 %v12221_v8 }
 0x418   : > { %10885 = vmatpush3.bf16.msra.mxu0 %v13218_v43  ;;  %10897 = vmatpush3.bf16.msra.mxu1 %v13218_v43 }
 0x419   : > { %10886 = vmatprep.subr.bf16.mxu0 %v12221_v8  ;;  %10898 = vmatprep.subr.bf16.mxu1 %v12221_v8 }
 0x41c   : > { %10887 = vmatpush3.bf16.msra.mxu0 %v13224_v18  ;;  %10899 = vmatpush3.bf16.msra.mxu1 %v13224_v18 }
 0x41d   : > { %10904 = vmatprep.subr.bf16.mxu0 %v12221_v8  ;;  %3900 = vmatprep.subr.bf16.mxu1 %v11101_v3  ;;  %v11197_v3 = vld [vmem:[%s15847_s7 + $0x194] ss:$8 sps:$4 sm:$0xff]  }
 0x41f   : > { %10889 = vmatmul.mubr.msk.bf16.vlgmr.msra.gmra.mxu0 %vm1969_vm1, %v11096_v58  ;;  %10901 = vmatmul.mubr.msk.bf16.vlgmr.msra.gmra.mxu1 %vm1969_vm1, %v11097_v37  ;;  %v11195_v58 = vld [vmem:[%s15847_s7 + $0x190] ss:$8 sps:$4 sm:$0xff]   ;;  %v11203_v37 = vld [vmem:[%s15847_s7 + $0x184] ss:$8 sps:$4 sm:$0xff]  }
 0x420   : > { %10905 = vmatpush3.bf16.msra.mxu0 %v13205_v14  ;;  %10912 = vmatprep.mubr.msk.bf16.mxu0 %vm12222_vm2, %v12221_v8  ;;  %v11153_v14 = vld [vmem:[%s15847_s7 + $0xc0] ss:$8 sps:$4 sm:$0xff]  }
 0x421   : > { %10906 = vmatprep.subr.bf16.mxu0 %v12221_v8  ;;  %3901 = vmatpush1.bf16.msra.mxu1 %v11099_v13  ;;  %v11201_v13 = vld [vmem:[%s15847_s7 + $0x180] ss:$8 sps:$4 sm:$0xff]  }
 0x422   : > { %3902 = vmatprep.subr.bf16.mxu1 %v11104_v7  ;;  %v11212_v7 = vld [vmem:[%s15847_s7 + $0x374] ss:$8 sps:$4 sm:$0xff]  }
 0x424   : > { %10907 = vmatpush3.bf16.msra.mxu0 %v13211_v31  ;;  %v11176_v31 = vld [vmem:[%s15847_s7 + $0x1d4] ss:$8 sps:$4 sm:$0xff]  }
 0x425   : > { %10908 = vmatprep.subr.bf16.mxu0 %v12221_v8  ;;  %3903 = vmatpush1.bf16.msra.mxu1 %v11102_v19 }
 0x426   : > { %3904 = vmatprep.subr.bf16.mxu1 %v11107_v15 }
 0x428   : > { %10909 = vmatpush3.bf16.msra.mxu0 %v13218_v43  ;;  %v11171_v43 = vld [vmem:[%s15847_s7 + $0x90] ss:$8 sps:$4 sm:$0xff]  }
 0x429   : > { %10910 = vmatprep.subr.bf16.mxu0 %v12221_v8  ;;  %3905 = vmatpush1.bf16.msra.mxu1 %v11105_v41  ;;  %v11114_v8 = vld [vmem:[%s15847_s7 + $0x170] ss:$8 sps:$4 sm:$0xff]  }
 0x42a   : > { %3906 = vmatprep.subr.bf16.mxu1 %v11110_v34 }
 0x42c   : > { %10911 = vmatpush3.bf16.msra.mxu0 %v13224_v18  ;;  %v11180_v18 = vld [vmem:[%s15847_s7 + $0x1c0] ss:$8 sps:$4 sm:$0xff]  }
 0x42d   : > { %3907 = vmatpush1.bf16.msra.mxu1 %v11108_v45  ;;  %3943 = vmatprep.subr.bf16.mxu0 %v11116_v60 }
 0x42e   : > { %3908 = vmatprep.subr.bf16.mxu1 %v11113_v49 }
 0x42f   : > { %10913 = vmatmul.mubr.msk.bf16.vlgmr.msra.gmra.mxu0 %vm1969_vm1, %v11098_v40 }
 0x430   : > { %3944 = vmatpush1.bf16.msra.mxu0 %v11114_v8  ;;  %v11186_v8 = vld [vmem:[%s15847_s7 + $0x270] ss:$8 sps:$4 sm:$0xff]  }
 0x431   : > { %3909 = vmatpush1.bf16.msra.mxu1 %v11111_v57  ;;  %3945 = vmatprep.subr.bf16.mxu0 %v11122_v44  ;;  %v11194_v44 = vld [vmem:[%s15847_s7 + $0x264] ss:$8 sps:$4 sm:$0xff]  }
 0x432   : > { %3910 = vmatprep.subr.bf16.mxu1 %v11119_v4 }
 0x434   : > { %3946 = vmatpush1.bf16.msra.mxu0 %v11120_v27  ;;  %v11192_v27 = vld [vmem:[%s15847_s7 + $0x260] ss:$8 sps:$4 sm:$0xff]  }
 0x435   : > { %3911 = vmatpush1.bf16.msra.mxu1 %v11117_v54  ;;  %3947 = vmatprep.subr.bf16.mxu0 %v11128_v28  ;;  %v11200_v54 = vld [vmem:[%s15847_s7 + $0x254] ss:$8 sps:$4 sm:$0xff]   ;;  %v11198_v28 = vld [vmem:[%s15847_s7 + $0x250] ss:$8 sps:$4 sm:$0xff]  }
 0x436   : > { %3912 = vmatprep.subr.bf16.mxu1 %v11125_v38  ;;  %v11206_v38 = vld [vmem:[%s15847_s7 + $0x244] ss:$8 sps:$4 sm:$0xff]  }
 0x438   : > { %3948 = vmatpush1.bf16.msra.mxu0 %v11126_v61 }
 0x439   : > { %3913 = vmatpush1.bf16.msra.mxu1 %v11123_v30  ;;  %3949 = vmatprep.subr.bf16.mxu0 %v11134_v48  ;;  %v11204_v48 = vld [vmem:[%s15847_s7 + $0x240] ss:$8 sps:$4 sm:$0xff]  }
 0x43a   : > { %3914 = vmatprep.subr.bf16.mxu1 %v11131_v25 }
 0x43c   : > { %3950 = vmatpush1.bf16.msra.mxu0 %v11132_v12 }
 0x43d   : > { %3915 = vmatpush1.bf16.msra.mxu1 %v11129_v2  ;;  %3951 = vmatprep.subr.bf16.mxu0 %v11140_v29  ;;  %v11209_v2 = vld [vmem:[%s15847_s7 + $0x234] ss:$8 sps:$4 sm:$0xff]  }
 0x43e   : > { %3916 = vmatprep.subr.bf16.mxu1 %v11137_v32 }
 0x440   : > { %3952 = vmatpush1.bf16.msra.mxu0 %v11138_v39 }
 0x441   : > { %3917 = vmatpush2.bf16.msra.mxu1 %v11135_v20  ;;  %3953 = vmatprep.subr.bf16.mxu0 %v11146_v59  ;;  %v11207_v59 = vld [vmem:[%s15847_s7 + $0x230] ss:$8 sps:$4 sm:$0xff]  }
 0x442   : > { %3918 = vmatprep.subr.bf16.mxu1 %v11143_v5  ;;  %v11210_v5 = vld [vmem:[%s15847_s7 + $0x370] ss:$8 sps:$4 sm:$0xff]  }
 0x444   : > { %3954 = vmatpush1.bf16.msra.mxu0 %v11144_v1  ;;  %v11215_v1 = vld [vmem:[%s15847_s7 + $0x224] ss:$8 sps:$4 sm:$0xff]  }
 0x445   : > { %3919 = vmatpush2.bf16.msra.mxu1 %v11141_v22  ;;  %3955 = vmatprep.subr.bf16.mxu0 %v11152_v47  ;;  %v11218_v22 = vld [vmem:[%s15847_s7 + $0x364] ss:$8 sps:$4 sm:$0xff]  }
 0x446   : > { %3920 = vmatprep.subr.bf16.mxu1 %v11149_v16 }
 0x448   : > { %3956 = vmatpush1.bf16.msra.mxu0 %v11150_v0  ;;  %v11213_v0 = vld [vmem:[%s15847_s7 + $0x220] ss:$8 sps:$4 sm:$0xff]  }
 0x449   : > { %3921 = vmatpush2.bf16.msra.mxu1 %v11147_v23  ;;  %3957 = vmatprep.subr.bf16.mxu0 %v11158_v11  ;;  %v11216_v23 = vld [vmem:[%s15847_s7 + $0x360] ss:$8 sps:$4 sm:$0xff]   ;;  %v11221_v11 = vld [vmem:[%s15847_s7 + $0x214] ss:$8 sps:$4 sm:$0xff]  }
 0x44a   : > { %3922 = vmatprep.subr.bf16.mxu1 %v11155_v62  ;;  %v11224_v62 = vld [vmem:[%s15847_s7 + $0x354] ss:$8 sps:$4 sm:$0xff]  }
 0x44c   : > { %3958 = vmatpush1.bf16.msra.mxu0 %v11156_v63  ;;  %v11219_v63 = vld [vmem:[%s15847_s7 + $0x210] ss:$8 sps:$4 sm:$0xff]  }
 0x44d   : > { %3923 = vmatpush2.bf16.msra.mxu1 %v11153_v14  ;;  %3959 = vmatprep.subr.bf16.mxu0 %v11164_v6  ;;  %v11222_v14 = vld [vmem:[%s15847_s7 + $0x350] ss:$8 sps:$4 sm:$0xff]   ;;  %v11227_v6 = vld [vmem:[%s15847_s7 + $0x204] ss:$8 sps:$4 sm:$0xff]  }
 0x44e   : > { %3924 = vmatprep.subr.bf16.mxu1 %v11161_v33  ;;  %v11230_v33 = vld [vmem:[%s15847_s7 + $0x344] ss:$8 sps:$4 sm:$0xff]  }
 0x450   : > { %3960 = vmatpush2.bf16.msra.mxu0 %v11162_v55 }
 0x451   : > { %3925 = vmatpush2.bf16.msra.mxu1 %v11159_v50  ;;  %3961 = vmatprep.subr.bf16.mxu0 %v11170_v9  ;;  %v11225_v9 = vld [vmem:[%s15847_s7 + $0x200] ss:$8 sps:$4 sm:$0xff]  }
 0x452   : > { %3926 = vmatprep.subr.bf16.mxu1 %v11167_v24  ;;  %v11228_v24 = vld [vmem:[%s15847_s7 + $0x340] ss:$8 sps:$4 sm:$0xff]  }
 0x454   : > { %3962 = vmatpush2.bf16.msra.mxu0 %v11168_v10  ;;  %v11233_v10 = vld [vmem:[%s15847_s7 + $0x2f4] ss:$8 sps:$4 sm:$0xff]  }
 0x455   : > { %3927 = vmatpush2.bf16.msra.mxu1 %v11165_v42  ;;  %3963 = vmatprep.subr.bf16.mxu0 %v11176_v31  ;;  %v11236_v42 = vld [vmem:[%s15847_s7 + $0x334] ss:$8 sps:$4 sm:$0xff]  }
 0x456   : > { %3928 = vmatprep.subr.bf16.mxu1 %v11173_v17 }
 0x458   : > { %3964 = vmatpush2.bf16.msra.mxu0 %v11174_v21 }
 0x459   : > { %3929 = vmatpush2.bf16.msra.mxu1 %v11171_v43  ;;  %3965 = vmatprep.subr.bf16.mxu0 %v11182_v53  ;;  %v11231_v53 = vld [vmem:[%s15847_s7 + $0x2f0] ss:$8 sps:$4 sm:$0xff]  }
 0x45a   : > { %3930 = vmatprep.subr.bf16.mxu1 %v11179_v51  ;;  %v11234_v51 = vld [vmem:[%s15847_s7 + $0x330] ss:$8 sps:$4 sm:$0xff]  }
 0x45c   : > { %3966 = vmatpush2.bf16.msra.mxu0 %v11180_v18 }
 0x45d   : > { %3931 = vmatpush2.bf16.msra.mxu1 %v11177_v52  ;;  %3967 = vmatprep.subr.bf16.mxu0 %v11185_v26  ;;  %v11239_v52 = vld [vmem:[%s15847_s7 + $0x2e4] ss:$8 sps:$4 sm:$0xff]  }
 0x45e   : > { %3986 = vmatprep.subr.bf16.mxu1 %v11188_v36  ;;  %v11242_v26 = vld [vmem:[%s15847_s7 + $0x324] ss:$8 sps:$4 sm:$0xff]  }
 0x460   : > { %3968 = vmatpush2.bf16.msra.mxu0 %v11183_v35 }
 0x461   : > { %3969 = vmatprep.subr.bf16.mxu0 %v11191_v56  ;;  %v11237_v56 = vld [vmem:[%s15847_s7 + $0x2e0] ss:$8 sps:$4 sm:$0xff]  }
 0x464   : > { %3970 = vmatpush2.bf16.msra.mxu0 %v11189_v46  ;;  %v11240_v46 = vld [vmem:[%s15847_s7 + $0x320] ss:$8 sps:$4 sm:$0xff]  }
 0x465   : > { %3971 = vmatprep.subr.bf16.mxu0 %v11197_v3  ;;  %v11245_v3 = vld [vmem:[%s15847_s7 + $0x2d4] ss:$8 sps:$4 sm:$0xff]  }
 0x468   : > { %3972 = vmatpush2.bf16.msra.mxu0 %v11195_v58  ;;  %v11248_v58 = vld [vmem:[%s15847_s7 + $0x314] ss:$8 sps:$4 sm:$0xff]  }
 0x469   : > { %3973 = vmatprep.subr.bf16.mxu0 %v11203_v37  ;;  %v11243_v37 = vld [vmem:[%s15847_s7 + $0x2d0] ss:$8 sps:$4 sm:$0xff]  }
 0x46c   : > { %3974 = vmatpush2.bf16.msra.mxu0 %v11201_v13  ;;  %v11246_v13 = vld [vmem:[%s15847_s7 + $0x310] ss:$8 sps:$4 sm:$0xff]  }
 0x46d   : > { %4029 = vmatprep.subr.bf16.mxu0 %v11212_v7  ;;  %v11251_v7 = vld [vmem:[%s15847_s7 + $0x2c4] ss:$8 sps:$4 sm:$0xff]  }
 0x4af   : > { %v2645_v19 = vpop.f32.mrf.mxu1  ;;  %v2592_v15 = vpop.f32.mrf.mxu0 }
 0x4b1   : > { %v10830_v41 = vpop.f32.mrf.mxu1  ;;  %v10818_v34 = vpop.f32.mrf.mxu0 }
 0x4b2   : > { %v11249_v34 = vld [vmem:[%s15847_s7 + $0x2c0] ss:$8 sps:$4 sm:$0xff]  }
 0x4b3   : > { %v2648_v45 = vpop.f32.mrf.mxu1  ;;  %v2595_v60 = vpop.f32.mrf.mxu0 }
 0x4b4   : > { %v2652_v49 = vpack.c.bf16 %v2648_v45, %v2645_v19  ;;  %v2599_v40 = vpack.c.bf16 %v2595_v60, %v2592_v15  ;;  %v11254_v19 = vld [vmem:[%s15847_s7 + $0x304] ss:$8 sps:$4 sm:$0xff]   ;;  %v11252_v45 = vld [vmem:[%s15847_s7 + $0x300] ss:$8 sps:$4 sm:$0xff]   ;;  %v11257_v60 = vld [vmem:[%s15847_s7 + $0x2b4] ss:$8 sps:$4 sm:$0xff]  }
 0x4b5   : > { %v10831_v57 = vpop.f32.mrf.mxu1  ;;  %v10819_v4 = vpop.f32.mrf.mxu0 }
 0x4b6   : > { %3932 = vmatprep.mubr.bf16.mxu1 %v2652_v49  ;;  %v11260_v49 = vld [vmem:[%s15847_s7 + $0x3f4] ss:$8 sps:$4 sm:$0xff]   ;;  %v11255_v4 = vld [vmem:[%s15847_s7 + $0x2b0] ss:$8 sps:$4 sm:$0xff]  }
 0x4b7   : > { %3933 = vmatmul.mubr.bf16.vlgmr.msra.gmra.mxu1 %v2599_v40 }
 0x4b8   : > { %3987 = vmatpush1.bf16.msra.mxu1 %v11186_v8 }
 0x4b9   : > { %3988 = vmatprep.subr.bf16.mxu1 %v11194_v44 }
 0x4bc   : > { %3989 = vmatpush1.bf16.msra.mxu1 %v11192_v27  ;;  %v11258_v27 = vld [vmem:[%s15847_s7 + $0x3f0] ss:$8 sps:$4 sm:$0xff]  }
 0x4bd   : > { %3990 = vmatprep.subr.bf16.mxu1 %v11200_v54 }
 0x4bf   : > { %v2751_v61 = vpop.f32.mrf.mxu1  ;;  %v2698_v30 = vpop.f32.mrf.mxu0 }
 0x4c0   : > { %3991 = vmatpush1.bf16.msra.mxu1 %v11198_v28  ;;  %v11263_v28 = vld [vmem:[%s15847_s7 + $0x2a4] ss:$8 sps:$4 sm:$0xff]  }
 0x4c1   : > { %v10854_v25 = vpop.f32.mrf.mxu1  ;;  %v10842_v12 = vpop.f32.mrf.mxu0  ;;  %3992 = vmatprep.subr.bf16.mxu1 %v11206_v38  ;;  %v11266_v38 = vld [vmem:[%s15847_s7 + $0x3e4] ss:$8 sps:$4 sm:$0xff]  }
 0x4c2   : > { %v11264_v25 = vld [vmem:[%s15847_s7 + $0x3e0] ss:$8 sps:$4 sm:$0xff]   ;;  %v11269_v12 = vld [vmem:[%s15847_s7 + $0x294] ss:$8 sps:$4 sm:$0xff]  }
 0x4c3   : > { %v2754_v29 = vpop.f32.mrf.mxu1  ;;  %v2701_v32 = vpop.f32.mrf.mxu0 }
 0x4c4   : > { %v2758_v39 = vpack.c.bf16 %v2754_v29, %v2751_v61  ;;  %3993 = vmatpush1.bf16.msra.mxu1 %v11204_v48  ;;  %v2705_v20 = vpack.c.bf16 %v2701_v32, %v2698_v30  ;;  %v11261_v48 = vld [vmem:[%s15847_s7 + $0x2a0] ss:$8 sps:$4 sm:$0xff]   ;;  %v11267_v29 = vld [vmem:[%s15847_s7 + $0x290] ss:$8 sps:$4 sm:$0xff]  }
 0x4c5   : > { %3994 = vmatprep.subr.bf16.mxu1 %v11209_v2  ;;  %v10855_v47 = vpop.f32.mrf.mxu1  ;;  %v10843_v16 = vpop.f32.mrf.mxu0  ;;  %v11272_v2 = vld [vmem:[%s15847_s7 + $0x3d4] ss:$8 sps:$4 sm:$0xff]   ;;  %v11270_v32 = vld [vmem:[%s15847_s7 + $0x3d0] ss:$8 sps:$4 sm:$0xff]  }
 0x4c6   : > { %3975 = vmatprep.mubr.bf16.mxu0 %v2758_v39  ;;  %v11275_v39 = vld [vmem:[%s15847_s7 + $0x284] ss:$8 sps:$4 sm:$0xff]   ;;  %v11284_v47 = vld [vmem:[%s15847_s7 + $0x474] ss:$8 sps:$4 sm:$0xff]  }
 0x4c7   : > { %3976 = vmatmul.mubr.bf16.vlgmr.msra.gmra.mxu0 %v2705_v20  ;;  %v11278_v20 = vld [vmem:[%s15847_s7 + $0x3c4] ss:$8 sps:$4 sm:$0xff]  }
 0x4c8   : > { %3995 = vmatpush1.bf16.msra.mxu1 %v11207_v59  ;;  %4030 = vmatpush1.bf16.msra.mxu0 %v11210_v5  ;;  %v11273_v5 = vld [vmem:[%s15847_s7 + $0x280] ss:$8 sps:$4 sm:$0xff]  }
 0x4c9   : > { %3996 = vmatprep.subr.bf16.mxu1 %v11215_v1  ;;  %4031 = vmatprep.subr.bf16.mxu0 %v11218_v22  ;;  %v11276_v1 = vld [vmem:[%s15847_s7 + $0x3c0] ss:$8 sps:$4 sm:$0xff]   ;;  %v11281_v22 = vld [vmem:[%s15847_s7 + $0x3b4] ss:$8 sps:$4 sm:$0xff]  }
 0x4cc   : > { %3997 = vmatpush1.bf16.msra.mxu1 %v11213_v0  ;;  %4032 = vmatpush1.bf16.msra.mxu0 %v11216_v23  ;;  %v11279_v23 = vld [vmem:[%s15847_s7 + $0x3b0] ss:$8 sps:$4 sm:$0xff]  }
 0x4cd   : > { %3998 = vmatprep.subr.bf16.mxu1 %v11221_v11  ;;  %4033 = vmatprep.subr.bf16.mxu0 %v11224_v62  ;;  %v11282_v11 = vld [vmem:[%s15847_s7 + $0x470] ss:$8 sps:$4 sm:$0xff]  }
 0x4cf   : > { %v2857_v55 = vpop.f32.mrf.mxu1  ;;  %v13592_v50 = vpop.f32.mrf.mxu0 }
 0x4d0   : > { %3999 = vmatpush1.bf16.msra.mxu1 %v11219_v63  ;;  %4034 = vmatpush1.bf16.msra.mxu0 %v11222_v14  ;;  %v11287_v63 = vld [vmem:[%s15847_s7 + $0x3a4] ss:$8 sps:$4 sm:$0xff]  }
 0x4d1   : > { %4000 = vmatprep.subr.bf16.mxu1 %v11227_v6  ;;  %4035 = vmatprep.subr.bf16.mxu0 %v11230_v33  ;;  %v10878_v31 = vpop.f32.mrf.mxu1  ;;  %v10866_v17 = vpop.f32.mrf.mxu0  ;;  %v11290_v14 = vld [vmem:[%s15847_s7 + $0x464] ss:$8 sps:$4 sm:$0xff]   ;;  %v11285_v33 = vld [vmem:[%s15847_s7 + $0x3a0] ss:$8 sps:$4 sm:$0xff]  }
 0x4d2   : > { %v11299_v31 = vld [vmem:[%s15847_s7 + $0x384] ss:$8 sps:$4 sm:$0xff]  }
 0x4d3   : > { %v2860_v21 = vpop.f32.mrf.mxu1  ;;  %v13606_v43 = vpop.f32.mrf.mxu0  ;;  %v11302_v17 = vld [vmem:[%s15847_s7 + $0x444] ss:$8 sps:$4 sm:$0xff]  }
 0x4d4   : > { %4001 = vmatpush1.bf16.msra.mxu1 %v11225_v9  ;;  %4036 = vmatpush1.bf16.msra.mxu0 %v11228_v24  ;;  %v2864_v18 = vpack.c.bf16 %v2860_v21, %v2857_v55  ;;  %v2811_v62 = vpack.c.bf16 %v13606_v43, %v13592_v50  ;;  %v11288_v55 = vld [vmem:[%s15847_s7 + $0x460] ss:$8 sps:$4 sm:$0xff]   ;;  %v11293_v50 = vld [vmem:[%s15847_s7 + $0x394] ss:$8 sps:$4 sm:$0xff]   ;;  %v12223_v24 = vmov 0  }
 0x4d5   : > { %4002 = vmatprep.subr.bf16.mxu1 %v11233_v10  ;;  %4037 = vmatprep.subr.bf16.mxu0 %v11236_v42  ;;  %v10879_v36 = vpop.f32.mrf.mxu1  ;;  %v10867_v35 = vpop.f32.mrf.mxu0  ;;  %v11296_v9 = vld [vmem:[%s15847_s7 + $0x454] ss:$8 sps:$4 sm:$0xff]   ;;  %v11291_v10 = vld [vmem:[%s15847_s7 + $0x390] ss:$8 sps:$4 sm:$0xff]   ;;  %v11297_v21 = vld [vmem:[%s15847_s7 + $0x380] ss:$8 sps:$4 sm:$0xff]  }
 0x4d6   : > { %4018 = vmatprep.mubr.bf16.mxu1 %v2864_v18  ;;  %v11294_v42 = vld [vmem:[%s15847_s7 + $0x450] ss:$8 sps:$4 sm:$0xff]   ;;  %v11300_v43 = vld [vmem:[%s15847_s7 + $0x440] ss:$8 sps:$4 sm:$0xff]   ;;  %v11311_v36 = vld [vmem:[%s15847_s7 + $0x414] ss:$8 sps:$4 sm:$0xff]  }
 0x4d7   : > { %v11309_v35 = vld [vmem:[%s15847_s7 + $0x410] ss:$8 sps:$4 sm:$0xff]  }
 0x4d8   : > { %4003 = vmatpush2.bf16.msra.mxu1 %v11231_v53  ;;  %4038 = vmatpush1.bf16.msra.mxu0 %v11234_v51  ;;  %v11305_v53 = vld [vmem:[%s15847_s7 + $0x434] ss:$8 sps:$4 sm:$0xff]   ;;  %v11303_v51 = vld [vmem:[%s15847_s7 + $0x430] ss:$8 sps:$4 sm:$0xff]  }
 0x4d9   : > { %4004 = vmatprep.subr.bf16.mxu1 %v11239_v52  ;;  %4039 = vmatprep.subr.bf16.mxu0 %v11242_v26  ;;  %v11308_v52 = vld [vmem:[%s15847_s7 + $0x424] ss:$8 sps:$4 sm:$0xff]   ;;  %v11306_v26 = vld [vmem:[%s15847_s7 + $0x420] ss:$8 sps:$4 sm:$0xff]  }
 0x4dc   : > { %4005 = vmatpush2.bf16.msra.mxu1 %v11237_v56  ;;  %4040 = vmatpush1.bf16.msra.mxu0 %v11240_v46  ;;  %v11314_v56 = vld [vmem:[%s15847_s7 + $0x404] ss:$8 sps:$4 sm:$0xff]   ;;  %v11312_v46 = vld [vmem:[%s15847_s7 + $0x400] ss:$8 sps:$4 sm:$0xff]  }
 0x4dd   : > { %4006 = vmatprep.subr.bf16.mxu1 %v11245_v3  ;;  %4041 = vmatprep.subr.bf16.mxu0 %v11248_v58 }
 0x4df   : > { %v2963_v15 = vpop.f32.mrf.mxu1  ;;  %v13644_v41 = vpop.f32.mrf.mxu0 }
 0x4e0   : > { %4007 = vmatpush2.bf16.msra.mxu1 %v11243_v37  ;;  %4042 = vmatpush1.bf16.msra.mxu0 %v11246_v13 }
 0x4e1   : > { %4008 = vmatprep.subr.bf16.mxu1 %v11251_v7  ;;  %4043 = vmatprep.subr.bf16.mxu0 %v11254_v19  ;;  %v10902_v40 = vpop.f32.mrf.mxu1  ;;  %v10890_v8 = vpop.f32.mrf.mxu0 }
 0x4e3   : > { %v2966_v57 = vpop.f32.mrf.mxu1  ;;  %v13658_v44 = vpop.f32.mrf.mxu0 }
 0x4e4   : > { %4009 = vmatpush2.bf16.msra.mxu1 %v11249_v34  ;;  %4044 = vmatpush1.bf16.msra.mxu0 %v11252_v45  ;;  %v2970_v54 = vpack.c.bf16 %v2966_v57, %v2963_v15  ;;  %v2917_v18 = vpack.c.bf16 %v13658_v44, %v13644_v41  ;;  %v3170_v15 = vlaneseq }
 0x4e5   : > { %4010 = vmatprep.subr.bf16.mxu1 %v11257_v60  ;;  %4045 = vmatprep.subr.bf16.mxu0 %v11260_v49  ;;  %v10891_v61 = vpop.f32.mrf.mxu0  ;;  %v10903_v30 = vpop.f32.mrf.mxu1 }
 0x4e6   : > { %4061 = vmatprep.mubr.bf16.mxu0 %v2970_v54  ;;  %v13784_v45 = vshrl.u32 %v3170_v15, 7  ;;  %v11350_v15 = vld [vmem:[%s15850_s10 + $0x264] ss:$16 sps:$4 sm:$0xff]  }
 0x4e8   : > { %4011 = vmatpush2.bf16.msra.mxu1 %v11255_v4  ;;  %4046 = vmatpush2.bf16.msra.mxu0 %v11258_v27  ;;  %v3176_v40 = vsub.s32 1, %v13784_v45  ;;  %v3172_v8 = vsub.s32 0, %v13784_v45  ;;  %v3168_v4 = vld [vmem:[%s15848_s8] sm:$0x3] }
 0x4e9   : > { %4012 = vmatprep.subr.bf16.mxu1 %v11263_v28  ;;  %4047 = vmatprep.subr.bf16.mxu0 %v11266_v38 }
 0x4ea   : > { %v3177_v27 = vrot.slane %v3168_v4, %v3176_v40  ;;  %v3173_v54 = vrot.slane %v3168_v4, %v3172_v8  ;;  %v11315_v4 = vld [vmem:[%s15850_s10 + $0xe0] ss:$16 sps:$4 sm:$0xff]  }
 0x4ec   : > { %4013 = vmatpush2.bf16.msra.mxu1 %v11261_v48  ;;  %4048 = vmatpush2.bf16.msra.mxu0 %v11264_v25 }
 0x4ed   : > { %4014 = vmatprep.subr.bf16.mxu1 %v11269_v12  ;;  %4049 = vmatprep.subr.bf16.mxu0 %v11272_v2 }
 0x4ef   : > { %v13696_v59 = vpop.f32.mrf.mxu0 }
 0x4f0   : > { %4015 = vmatpush2.bf16.msra.mxu1 %v11267_v29  ;;  %4050 = vmatpush2.bf16.msra.mxu0 %v11270_v32 }
 0x4f1   : > { %4016 = vmatprep.subr.bf16.mxu1 %v11275_v39  ;;  %4051 = vmatprep.subr.bf16.mxu0 %v11278_v20  ;;  %v10914_v16 = vpop.f32.mrf.mxu0 }
 0x4f3   : > { %v3019_v0 = vpop.f32.mrf.mxu0 }
 0x4f4   : > { %4017 = vmatpush2.bf16.msra.mxu1 %v11273_v5  ;;  %4052 = vmatpush2.bf16.msra.mxu0 %v11276_v1  ;;  %v3023_v3 = vpack.c.bf16 %v3019_v0, %v13696_v59 }
 0x4f5   : > { %4053 = vmatprep.subr.bf16.mxu0 %v11281_v22  ;;  %4072 = vmatprep.subr.bf16.mxu1 %v11284_v47  ;;  %v10915_v6 = vpop.f32.mrf.mxu0 }
 0x4f7   : > { %4019 = vmatmul.mubr.bf16.vlgmr.msra.gmra.mxu1 %v2811_v62 }
 0x4f8   : > { %4054 = vmatpush2.bf16.msra.mxu0 %v11279_v23  ;;  %4073 = vmatpush1.bf16.msra.mxu1 %v11282_v11 }
 0x4f9   : > { %4055 = vmatprep.subr.bf16.mxu0 %v11287_v63  ;;  %4074 = vmatprep.subr.bf16.mxu1 %v11290_v14 }
 0x4fa   : > { %4104 = vmatprep.mubr.bf16.mxu1 %v12223_v24 }
 0x4fc   : > { %4056 = vmatpush2.bf16.msra.mxu0 %v11285_v33  ;;  %4075 = vmatpush1.bf16.msra.mxu1 %v11288_v55 }
 0x4fd   : > { %4057 = vmatprep.subr.bf16.mxu0 %v11293_v50  ;;  %4076 = vmatprep.subr.bf16.mxu1 %v11296_v9 }
 0x500   : > { %4058 = vmatpush2.bf16.msra.mxu0 %v11291_v10  ;;  %4077 = vmatpush1.bf16.msra.mxu1 %v11294_v42 }
 0x501   : > { %4059 = vmatprep.subr.bf16.mxu0 %v11299_v31  ;;  %4078 = vmatprep.subr.bf16.mxu1 %v11302_v17 }
 0x504   : > { %4060 = vmatpush2.bf16.msra.mxu0 %v11297_v21  ;;  %4079 = vmatpush1.bf16.msra.mxu1 %v11300_v43 }
 0x505   : > { %4080 = vmatprep.subr.bf16.mxu1 %v11305_v53  ;;  %v4121_v53 = vld [vmem:[%s15849_s9] sm:$0xf] }
 0x507   : > { %4062 = vmatmul.mubr.bf16.vlgmr.msra.gmra.mxu0 %v2917_v18  ;;  %v9573_v18 = vld [vmem:[%s15849_s9 + $0x4] sm:$0xf] }
 0x508   : > { %4081 = vmatpush1.bf16.msra.mxu1 %v11303_v51  ;;  %4158 = vmatprep.mubr.bf16.mxu0 %v12223_v24  ;;  %v9579_v51 = vld [vmem:[%s15849_s9 + $0x10] sm:$0xf] }
 0x509   : > { %4082 = vmatprep.subr.bf16.mxu1 %v11308_v52  ;;  %v9583_v52 = vld [vmem:[%s15849_s9 + $0x18] sm:$0xf] }
 0x50c   : > { %4083 = vmatpush1.bf16.msra.mxu1 %v11306_v26  ;;  %v11326_v26 = vld [vmem:[%s15850_s10 + $0x2e4] ss:$16 sps:$4 sm:$0xff]  }
 0x50d   : > { %4084 = vmatprep.subr.bf16.mxu1 %v11311_v36  ;;  %v9575_v36 = vld [vmem:[%s15849_s9 + $0x8] sm:$0xf] }
 0x510   : > { %4085 = vmatpush1.bf16.msra.mxu1 %v11309_v35  ;;  %v9587_v35 = vld [vmem:[%s15849_s9 + $0x20] sm:$0xf] }
 0x511   : > { %4086 = vmatprep.subr.bf16.mxu1 %v11314_v56  ;;  %v11324_v56 = vld [vmem:[%s15850_s10 + $0x2e0] ss:$16 sps:$4 sm:$0xff]  }
 0x514   : > { %4087 = vmatpush1.bf16.msra.mxu1 %v11312_v46  ;;  %v11332_v46 = vld [vmem:[%s15850_s10 + $0x2c4] ss:$16 sps:$4 sm:$0xff]  }
 0x517   : > { %4105 = vmatmul.mubr.bf16.vlgmr.msra.gmra.mxu1 %v3023_v3  ;;  %v11330_v3 = vld [vmem:[%s15850_s10 + $0x2c0] ss:$16 sps:$4 sm:$0xff]  }
 0x518   : > { %4350 = vmatprep.mubr.bf16.mxu1 %v12223_v24 }
 0x577   : > { %v3934_v58 = vpop.f32.mrf.mxu1 }
 0x578   : > { %v3935_v48 = vadd.f32 %v3934_v58, %v3173_v54  ;;  %v11338_v58 = vld [vmem:[%s15850_s10 + $0x2a4] ss:$16 sps:$4 sm:$0xff]  }
 0x579   : > { %v3936_v37 = vpop.f32.mrf.mxu1 }
 0x57a   : > { %v3937_v61 = vadd.f32 %v3936_v37, %v3177_v27  ;;  %v9577_v37 = vld [vmem:[%s15849_s9 + $0xc] sm:$0xf] }
 0x57b   : > { %v3938_v7 = vpop.f32.mrf.mxu1 }
 0x57c   : > { %v3939_v30 = vadd.f32 %v3938_v7, %v3173_v54  ;;  %v11344_v7 = vld [vmem:[%s15850_s10 + $0x284] ss:$16 sps:$4 sm:$0xff]   ;;  %v11360_v54 = vld [vmem:[%s15850_s10 + $0x220] ss:$16 sps:$4 sm:$0xff]  }
 0x57d   : > { %v3940_v41 = vpop.f32.mrf.mxu1 }
 0x57e   : > { %v3941_v2 = vadd.f32 %v3940_v41, %v3177_v27  ;;  %v9581_v41 = vld [vmem:[%s15849_s9 + $0x14] sm:$0xf]  ;;  %v9585_v27 = vld [vmem:[%s15849_s9 + $0x1c] sm:$0xf] }
 0x587   : > { %v3977_v13 = vpop.f32.mrf.mxu0 }
 0x588   : > { %v3978_v39 = vadd.f32 %v3977_v13, %v3935_v48  ;;  %v11336_v13 = vld [vmem:[%s15850_s10 + $0x2a0] ss:$16 sps:$4 sm:$0xff]   ;;  %v11374_v48 = vld [vmem:[%s15850_s10 + $0x3e4] ss:$16 sps:$4 sm:$0xff]  }
 0x589   : > { %v3979_v19 = vpop.f32.mrf.mxu0 }
 0x58a   : > { %v3980_v29 = vadd.f32 %v3979_v19, %v3937_v61  ;;  %v11342_v19 = vld [vmem:[%s15850_s10 + $0x280] ss:$16 sps:$4 sm:$0xff]   ;;  %v11323_v61 = vld [vmem:[%s15850_s10 + $0xa4] ss:$16 sps:$4 sm:$0xff]  }
 0x58b   : > { %v3981_v34 = vpop.f32.mrf.mxu0 }
 0x58c   : > { %v3982_v32 = vadd.f32 %v3981_v34, %v3939_v30  ;;  %v11317_v34 = vld [vmem:[%s15850_s10 + $0xe4] ss:$16 sps:$4 sm:$0xff]   ;;  %v11366_v30 = vld [vmem:[%s15850_s10 + $0x200] ss:$16 sps:$4 sm:$0xff]  }
 0x58d   : > { %v3983_v49 = vpop.f32.mrf.mxu0 }
 0x58e   : > { %v3984_v59 = vadd.f32 %v3983_v49, %v3941_v2  ;;  %v11356_v49 = vld [vmem:[%s15850_s10 + $0x244] ss:$16 sps:$4 sm:$0xff]   ;;  %v11372_v2 = vld [vmem:[%s15850_s10 + $0x3e0] ss:$16 sps:$4 sm:$0xff]  }
 0x5b7   : > { %v4020_v60 = vpop.f32.mrf.mxu1 }
 0x5b8   : > { %v4021_v22 = vadd.f32 %v4020_v60, %v3978_v39  ;;  %v11348_v60 = vld [vmem:[%s15850_s10 + $0x260] ss:$16 sps:$4 sm:$0xff]   ;;  %v11335_v39 = vld [vmem:[%s15850_s10 + $0x64] ss:$16 sps:$4 sm:$0xff]  }
 0x5b9   : > { %v4022_v57 = vpop.f32.mrf.mxu1 }
 0x5ba   : > { %v4023_v5 = vadd.f32 %v4022_v57, %v3980_v29  ;;  %v11354_v57 = vld [vmem:[%s15850_s10 + $0x240] ss:$16 sps:$4 sm:$0xff]   ;;  %v11380_v29 = vld [vmem:[%s15850_s10 + $0x3c4] ss:$16 sps:$4 sm:$0xff]  }
 0x5bb   : > { %v4024_v28 = vpop.f32.mrf.mxu1 }
 0x5bc   : > { %v4025_v1 = vadd.f32 %v4024_v28, %v3982_v32  ;;  %v11368_v28 = vld [vmem:[%s15850_s10 + $0x204] ss:$16 sps:$4 sm:$0xff]   ;;  %v11327_v32 = vld [vmem:[%s15850_s10 + $0x80] ss:$16 sps:$4 sm:$0xff]  }
 0x5bd   : > { %v4026_v25 = vpop.f32.mrf.mxu1 }
 0x5be   : > { %v4027_v0 = vadd.f32 %v4026_v25, %v3984_v59  ;;  %v11321_v25 = vld [vmem:[%s15850_s10 + $0xa0] ss:$16 sps:$4 sm:$0xff]   ;;  %v11386_v59 = vld [vmem:[%s15850_s10 + $0x3a4] ss:$16 sps:$4 sm:$0xff]  }
 0x5c7   : > { %v4063_v44 = vpop.f32.mrf.mxu0 }
 0x5c8   : > { %v4064_v62 = vadd.f32 %v4063_v44, %v4021_v22  ;;  %v11362_v44 = vld [vmem:[%s15850_s10 + $0x224] ss:$16 sps:$4 sm:$0xff]   ;;  %v11384_v22 = vld [vmem:[%s15850_s10 + $0x3a0] ss:$16 sps:$4 sm:$0xff]  }
 0x5c9   : > { %v4065_v38 = vpop.f32.mrf.mxu0 }
 0x5ca   : > { %v4066_v23 = vadd.f32 %v4065_v38, %v4023_v5  ;;  %v11318_v38 = vld [vmem:[%s15850_s10 + $0xc0] ss:$16 sps:$4 sm:$0xff]  }
 0x5cb   : > { %v4067_v12 = vpop.f32.mrf.mxu0  ;;  %v11333_v5 = vld [vmem:[%s15850_s10 + $0x60] ss:$16 sps:$4 sm:$0xff]  }
 0x5cc   : > { %v4068_v11 = vadd.f32 %v4067_v12, %v4025_v1  ;;  %v11329_v12 = vld [vmem:[%s15850_s10 + $0x84] ss:$16 sps:$4 sm:$0xff]  }
 0x5cd   : > { %v4069_v47 = vpop.f32.mrf.mxu0  ;;  %v11341_v1 = vld [vmem:[%s15850_s10 + $0x44] ss:$16 sps:$4 sm:$0xff]  }
 0x5ce   : > { %v4070_v14 = vadd.f32 %v4069_v47, %v4027_v0  ;;  %v11392_v47 = vld [vmem:[%s15850_s10 + $0x384] ss:$16 sps:$4 sm:$0xff]  }
 0x5cf   : > { %v11347_v0 = vld [vmem:[%s15850_s10 + $0x24] ss:$16 sps:$4 sm:$0xff]  }
 0x5d7   : > { %v4106_v20 = vpop.f32.mrf.mxu1 }
 0x5d8   : > { %v4107_v55 = vadd.f32 %v4106_v20, %v4064_v62  ;;  %v11378_v20 = vld [vmem:[%s15850_s10 + $0x3c0] ss:$16 sps:$4 sm:$0xff]  }
 0x5d9   : > { %v4108_v16 = vpop.f32.mrf.mxu1  ;;  %v11345_v62 = vld [vmem:[%s15850_s10 + $0x20] ss:$16 sps:$4 sm:$0xff]  }
 0x5da   : > { %v4109_v6 = vadd.f32 %v4108_v16, %v4066_v23  ;;  %v4115_v17 = vmax.f32 %v4107_v55, 0.0  ;;  %v11339_v16 = vld [vmem:[%s15850_s10 + $0x40] ss:$16 sps:$4 sm:$0xff]   ;;  %v11359_v55 = vld [vmem:[%s15850_s10 + $0x1e4] ss:$16 sps:$4 sm:$0xff]  }
 0x5db   : > { %v4110_v63 = vpop.f32.mrf.mxu1  ;;  %v11390_v23 = vld [vmem:[%s15850_s10 + $0x380] ss:$16 sps:$4 sm:$0xff]  }
 0x5dc   : > { %v4111_v33 = vadd.f32 %v4110_v63, %v4068_v11  ;;  %v4116_v42 = vmax.f32 %v4109_v6, 0.0  ;;  %v11398_v11 = vld [vmem:[%s15850_s10 + $0x364] ss:$16 sps:$4 sm:$0xff]  }
 0x5dd   : > { %v4112_v50 = vpop.f32.mrf.mxu1  ;;  %v11353_v63 = vld [vmem:[%s15850_s10 + $0x4] ss:$16 sps:$4 sm:$0xff]  }
 0x5de   : > { %v4113_v9 = vadd.f32 %v4112_v50, %v4070_v14  ;;  %v4117_v10 = vmax.f32 %v4111_v33, 0.0  ;;  %v11396_v14 = vld [vmem:[%s15850_s10 + $0x360] ss:$16 sps:$4 sm:$0xff]   ;;  %v11404_v6 = vld [vmem:[%s15850_s10 + $0x344] ss:$16 sps:$4 sm:$0xff]  }
 0x5df   : > { %v11351_v33 = vld [vmem:[%s15850_s10] ss:$16 sps:$4 sm:$0xff]  }
 0x5e0   : > { %v4118_v31 = vmax.f32 %v4113_v9, 0.0  ;;  %v4119_v43 = vpack.c.bf16 %v4117_v10, %v4115_v17  ;;  %v11402_v50 = vld [vmem:[%s15850_s10 + $0x340] ss:$16 sps:$4 sm:$0xff]   ;;  %v11407_v9 = vld [vmem:[%s15850_s10 + $0x324] ss:$16 sps:$4 sm:$0xff]  }
 0x5e1   : > { %v11357_v10 = vld [vmem:[%s15850_s10 + $0x1e0] ss:$16 sps:$4 sm:$0xff]   ;;  %v11413_v17 = vld [vmem:[%s15850_s10 + $0x304] ss:$16 sps:$4 sm:$0xff]  }
 0x5e2   : > { %v4120_v21 = vpack.c.bf16 %v4118_v31, %v4116_v42  ;;  %v11365_v42 = vld [vmem:[%s15850_s10 + $0x1c4] ss:$16 sps:$4 sm:$0xff]   ;;  %v11405_v31 = vld [vmem:[%s15850_s10 + $0x320] ss:$16 sps:$4 sm:$0xff]  }
 0x5e4   : > { %4140 = vmatprep.subr.bf16.mxu0 %v4120_v21  ;;  %4332 = vmatprep.subr.bf16.mxu1 %v4120_v21 }
 0x5e5   : > { %4141 = vmatpush1.bf16.msra.mxu0 %v4119_v43  ;;  %4333 = vmatpush1.bf16.msra.mxu1 %v4119_v43 }
 0x5e6   : > { %4188 = vmatprep.subr.bf16.mxu0 %v4120_v21  ;;  %4428 = vmatprep.subr.bf16.mxu1 %v4120_v21 }
 0x5e8   : > { %9572 = vmatmul.mubr.msk.bf16.vlgmr.msra.gmra.mxu0 %vm4122_vm3, %v4121_v53  ;;  %9580 = vmatmul.mubr.msk.bf16.vlgmr.msra.gmra.mxu1 %vm4122_vm3, %v9579_v51  ;;  %v11411_v53 = vld [vmem:[%s15850_s10 + $0x300] ss:$16 sps:$4 sm:$0xff]   ;;  %v11422_v51 = vld [vmem:[%s15850_s10 + $0x6e4] ss:$16 sps:$4 sm:$0xff]  }
 0x5e9   : > { %4189 = vmatpush1.bf16.msra.mxu0 %v4119_v43  ;;  %4429 = vmatpush1.bf16.msra.mxu1 %v4119_v43 }
 0x5ea   : > { %4236 = vmatprep.subr.bf16.mxu0 %v4120_v21  ;;  %4524 = vmatprep.subr.bf16.mxu1 %v4120_v21 }
 0x5eb   : > { %4206 = vmatprep.mubr.bf16.mxu0 %v12223_v24  ;;  %4446 = vmatprep.mubr.bf16.mxu1 %v12223_v24 }
 0x5f0   : > { %9574 = vmatmul.mubr.msk.bf16.vlgmr.msra.gmra.mxu0 %vm4122_vm3, %v9573_v18  ;;  %9584 = vmatmul.mubr.msk.bf16.vlgmr.msra.gmra.mxu1 %vm4122_vm3, %v9583_v52  ;;  %v11369_v18 = vld [vmem:[%s15850_s10 + $0x1a0] ss:$16 sps:$4 sm:$0xff]   ;;  %v11377_v52 = vld [vmem:[%s15850_s10 + $0x184] ss:$16 sps:$4 sm:$0xff]  }
 0x5f1   : > { %4237 = vmatpush1.bf16.msra.mxu0 %v4119_v43  ;;  %4525 = vmatpush1.bf16.msra.mxu1 %v4119_v43 }
 0x5f2   : > { %4284 = vmatprep.subr.bf16.mxu0 %v4120_v21  ;;  %4254 = vmatprep.mubr.bf16.mxu0 %v12223_v24 }
 0x5f3   : > { %4542 = vmatprep.mubr.bf16.mxu1 %v12223_v24  ;;  %8072 = vmatprep.subr.bf16.mxu1 %v11326_v26  ;;  %v11375_v26 = vld [vmem:[%s15850_s10 + $0x180] ss:$16 sps:$4 sm:$0xff]  }
 0x5f8   : > { %9576 = vmatmul.mubr.msk.bf16.vlgmr.msra.gmra.mxu0 %vm4122_vm3, %v9575_v36  ;;  %9588 = vmatmul.mubr.msk.bf16.vlgmr.msra.gmra.mxu1 %vm4122_vm3, %v9587_v35  ;;  %v11383_v36 = vld [vmem:[%s15850_s10 + $0x164] ss:$16 sps:$4 sm:$0xff]   ;;  %v11381_v35 = vld [vmem:[%s15850_s10 + $0x160] ss:$16 sps:$4 sm:$0xff]  }
 0x5f9   : > { %4285 = vmatpush1.bf16.msra.mxu0 %v4119_v43  ;;  %4302 = vmatprep.mubr.bf16.mxu0 %v12223_v24 }
 0x5fa   : > { %4380 = vmatprep.subr.bf16.mxu0 %v4120_v21  ;;  %8073 = vmatpush1.bf16.msra.mxu1 %v11324_v56  ;;  %v11389_v56 = vld [vmem:[%s15850_s10 + $0x144] ss:$16 sps:$4 sm:$0xff]  }
 0x5fb   : > { %8074 = vmatprep.subr.bf16.mxu1 %v11332_v46  ;;  %v11387_v46 = vld [vmem:[%s15850_s10 + $0x140] ss:$16 sps:$4 sm:$0xff]  }
 0x5fe   : > { %8075 = vmatpush1.bf16.msra.mxu1 %v11330_v3  ;;  %v11395_v3 = vld [vmem:[%s15850_s10 + $0x124] ss:$16 sps:$4 sm:$0xff]  }
 0x5ff   : > { %8076 = vmatprep.subr.bf16.mxu1 %v11338_v58  ;;  %v11393_v58 = vld [vmem:[%s15850_s10 + $0x120] ss:$16 sps:$4 sm:$0xff]  }
 0x600   : > { %9578 = vmatmul.mubr.msk.bf16.vlgmr.msra.gmra.mxu0 %vm4122_vm3, %v9577_v37  ;;  %v11401_v37 = vld [vmem:[%s15850_s10 + $0x104] ss:$16 sps:$4 sm:$0xff]  }
 0x601   : > { %4381 = vmatpush1.bf16.msra.mxu0 %v4119_v43  ;;  %4398 = vmatprep.mubr.bf16.mxu0 %v12223_v24 }
 0x602   : > { %4476 = vmatprep.subr.bf16.mxu0 %v4120_v21  ;;  %8077 = vmatpush1.bf16.msra.mxu1 %v11336_v13  ;;  %v11363_v21 = vld [vmem:[%s15850_s10 + $0x1c0] ss:$16 sps:$4 sm:$0xff]  }
 0x603   : > { %8078 = vmatprep.subr.bf16.mxu1 %v11344_v7  ;;  %v11399_v13 = vld [vmem:[%s15850_s10 + $0x100] ss:$16 sps:$4 sm:$0xff]   ;;  %v11410_v7 = vld [vmem:[%s15850_s10 + $0x4e4] ss:$16 sps:$4 sm:$0xff]  }
 0x606   : > { %8079 = vmatpush1.bf16.msra.mxu1 %v11342_v19 }
 0x607   : > { %8080 = vmatprep.subr.bf16.mxu1 %v11350_v15 }
 0x608   : > { %9582 = vmatmul.mubr.msk.bf16.vlgmr.msra.gmra.mxu0 %vm4122_vm3, %v9581_v41 }
 0x609   : > { %4477 = vmatpush1.bf16.msra.mxu0 %v4119_v43  ;;  %4494 = vmatprep.mubr.bf16.mxu0 %v12223_v24  ;;  %v11320_v24 = vld [vmem:[%s15850_s10 + $0xc4] ss:$16 sps:$4 sm:$0xff]  }
 0x60a   : > { %8031 = vmatprep.subr.bf16.mxu0 %v11317_v34  ;;  %8081 = vmatpush1.bf16.msra.mxu1 %v11348_v60  ;;  %v11371_v43 = vld [vmem:[%s15850_s10 + $0x1a4] ss:$16 sps:$4 sm:$0xff]  }
 0x60b   : > { %8082 = vmatprep.subr.bf16.mxu1 %v11356_v49  ;;  %v11408_v49 = vld [vmem:[%s15850_s10 + $0x4e0] ss:$16 sps:$4 sm:$0xff]  }
 0x60e   : > { %8083 = vmatpush1.bf16.msra.mxu1 %v11354_v57 }
 0x60f   : > { %8084 = vmatprep.subr.bf16.mxu1 %v11362_v44 }
 0x610   : > { %9586 = vmatmul.mubr.msk.bf16.vlgmr.msra.gmra.mxu0 %vm4122_vm3, %v9585_v27 }
 0x611   : > { %8032 = vmatpush1.bf16.msra.mxu0 %v11315_v4  ;;  %v11416_v4 = vld [vmem:[%s15850_s10 + $0x4c4] ss:$16 sps:$4 sm:$0xff]  }
 0x612   : > { %8033 = vmatprep.subr.bf16.mxu0 %v11320_v24  ;;  %8085 = vmatpush1.bf16.msra.mxu1 %v11360_v54 }
 0x613   : > { %8086 = vmatprep.subr.bf16.mxu1 %v11368_v28  ;;  %v11414_v28 = vld [vmem:[%s15850_s10 + $0x4c0] ss:$16 sps:$4 sm:$0xff]  }
 0x615   : > { %8034 = vmatpush1.bf16.msra.mxu0 %v11318_v38 }
 0x616   : > { %8035 = vmatprep.subr.bf16.mxu0 %v11323_v61  ;;  %8087 = vmatpush1.bf16.msra.mxu1 %v11366_v30  ;;  %v11419_v61 = vld [vmem:[%s15850_s10 + $0x4a4] ss:$16 sps:$4 sm:$0xff]  }
 0x617   : > { %8088 = vmatprep.subr.bf16.mxu1 %v11374_v48 }
 0x619   : > { %8036 = vmatpush1.bf16.msra.mxu0 %v11321_v25 }
 0x61a   : > { %8037 = vmatprep.subr.bf16.mxu0 %v11329_v12  ;;  %8089 = vmatpush2.bf16.msra.mxu1 %v11372_v2  ;;  %v11417_v2 = vld [vmem:[%s15850_s10 + $0x4a0] ss:$16 sps:$4 sm:$0xff]  }
 0x61b   : > { %8090 = vmatprep.subr.bf16.mxu1 %v11380_v29  ;;  %v11420_v29 = vld [vmem:[%s15850_s10 + $0x6e0] ss:$16 sps:$4 sm:$0xff]  }
 0x61d   : > { %8038 = vmatpush1.bf16.msra.mxu0 %v11327_v32 }
 0x61e   : > { %8039 = vmatprep.subr.bf16.mxu0 %v11335_v39  ;;  %8091 = vmatpush2.bf16.msra.mxu1 %v11378_v20  ;;  %v11425_v39 = vld [vmem:[%s15850_s10 + $0x484] ss:$16 sps:$4 sm:$0xff]  }
 0x61f   : > { %8092 = vmatprep.subr.bf16.mxu1 %v11386_v59  ;;  %v11428_v20 = vld [vmem:[%s15850_s10 + $0x6c4] ss:$16 sps:$4 sm:$0xff]  }
 0x621   : > { %8040 = vmatpush1.bf16.msra.mxu0 %v11333_v5 }
 0x622   : > { %8041 = vmatprep.subr.bf16.mxu0 %v11341_v1  ;;  %8093 = vmatpush2.bf16.msra.mxu1 %v11384_v22 }
 0x623   : > { %8094 = vmatprep.subr.bf16.mxu1 %v11392_v47  ;;  %v11423_v47 = vld [vmem:[%s15850_s10 + $0x480] ss:$16 sps:$4 sm:$0xff]  }
 0x625   : > { %8042 = vmatpush1.bf16.msra.mxu0 %v11339_v16  ;;  %v11426_v16 = vld [vmem:[%s15850_s10 + $0x6c0] ss:$16 sps:$4 sm:$0xff]  }
 0x626   : > { %8043 = vmatprep.subr.bf16.mxu0 %v11347_v0  ;;  %8095 = vmatpush2.bf16.msra.mxu1 %v11390_v23  ;;  %v11431_v0 = vld [vmem:[%s15850_s10 + $0x464] ss:$16 sps:$4 sm:$0xff]  }
 0x627   : > { %8096 = vmatprep.subr.bf16.mxu1 %v11398_v11  ;;  %v11434_v23 = vld [vmem:[%s15850_s10 + $0x6a4] ss:$16 sps:$4 sm:$0xff]  }
 0x629   : > { %8044 = vmatpush1.bf16.msra.mxu0 %v11345_v62 }
 0x62a   : > { %8045 = vmatprep.subr.bf16.mxu0 %v11353_v63  ;;  %8097 = vmatpush2.bf16.msra.mxu1 %v11396_v14 }
 0x62b   : > { %8098 = vmatprep.subr.bf16.mxu1 %v11404_v6  ;;  %v11429_v6 = vld [vmem:[%s15850_s10 + $0x460] ss:$16 sps:$4 sm:$0xff]  }
 0x62d   : > { %8046 = vmatpush1.bf16.msra.mxu0 %v11351_v33  ;;  %v11432_v33 = vld [vmem:[%s15850_s10 + $0x6a0] ss:$16 sps:$4 sm:$0xff]  }
 0x62e   : > { %8047 = vmatprep.subr.bf16.mxu0 %v11359_v55  ;;  %8099 = vmatpush2.bf16.msra.mxu1 %v11402_v50  ;;  %v11437_v50 = vld [vmem:[%s15850_s10 + $0x444] ss:$16 sps:$4 sm:$0xff]  }
 0x62f   : > { %8100 = vmatprep.subr.bf16.mxu1 %v11407_v9  ;;  %v11440_v9 = vld [vmem:[%s15850_s10 + $0x684] ss:$16 sps:$4 sm:$0xff]  }
 0x631   : > { %8048 = vmatpush2.bf16.msra.mxu0 %v11357_v10 }
 0x632   : > { %8049 = vmatprep.subr.bf16.mxu0 %v11365_v42  ;;  %8101 = vmatpush2.bf16.msra.mxu1 %v11405_v31 }
 0x633   : > { %8102 = vmatprep.subr.bf16.mxu1 %v11413_v17 }
 0x635   : > { %8050 = vmatpush2.bf16.msra.mxu0 %v11363_v21  ;;  %v11435_v21 = vld [vmem:[%s15850_s10 + $0x440] ss:$16 sps:$4 sm:$0xff]  }
 0x636   : > { %8051 = vmatprep.subr.bf16.mxu0 %v11371_v43  ;;  %8103 = vmatpush2.bf16.msra.mxu1 %v11411_v53  ;;  %v11438_v43 = vld [vmem:[%s15850_s10 + $0x680] ss:$16 sps:$4 sm:$0xff]   ;;  %v11443_v53 = vld [vmem:[%s15850_s10 + $0x424] ss:$16 sps:$4 sm:$0xff]  }
 0x637   : > { %8154 = vmatprep.subr.bf16.mxu1 %v11422_v51  ;;  %v11446_v51 = vld [vmem:[%s15850_s10 + $0x664] ss:$16 sps:$4 sm:$0xff]  }
 0x639   : > { %8052 = vmatpush2.bf16.msra.mxu0 %v11369_v18 }
 0x63a   : > { %8053 = vmatprep.subr.bf16.mxu0 %v11377_v52 }
 0x63d   : > { %8054 = vmatpush2.bf16.msra.mxu0 %v11375_v26  ;;  %v11441_v26 = vld [vmem:[%s15850_s10 + $0x420] ss:$16 sps:$4 sm:$0xff]  }
 0x63e   : > { %8055 = vmatprep.subr.bf16.mxu0 %v11383_v36  ;;  %v11444_v36 = vld [vmem:[%s15850_s10 + $0x660] ss:$16 sps:$4 sm:$0xff]  }
 0x641   : > { %8056 = vmatpush2.bf16.msra.mxu0 %v11381_v35 }
 0x642   : > { %8057 = vmatprep.subr.bf16.mxu0 %v11389_v56  ;;  %v11449_v56 = vld [vmem:[%s15850_s10 + $0x404] ss:$16 sps:$4 sm:$0xff]  }
 0x645   : > { %8058 = vmatpush2.bf16.msra.mxu0 %v11387_v46  ;;  %v11452_v46 = vld [vmem:[%s15850_s10 + $0x644] ss:$16 sps:$4 sm:$0xff]  }
 0x646   : > { %8059 = vmatprep.subr.bf16.mxu0 %v11395_v3 }
 0x649   : > { %8060 = vmatpush2.bf16.msra.mxu0 %v11393_v58 }
 0x64a   : > { %8061 = vmatprep.subr.bf16.mxu0 %v11401_v37  ;;  %v11447_v37 = vld [vmem:[%s15850_s10 + $0x400] ss:$16 sps:$4 sm:$0xff]  }
 0x64d   : > { %8062 = vmatpush2.bf16.msra.mxu0 %v11399_v13  ;;  %v11450_v13 = vld [vmem:[%s15850_s10 + $0x640] ss:$16 sps:$4 sm:$0xff]  }
 0x64e   : > { %8113 = vmatprep.subr.bf16.mxu0 %v11410_v7  ;;  %v11455_v7 = vld [vmem:[%s15850_s10 + $0x5e4] ss:$16 sps:$4 sm:$0xff]  }
 0x6a8   : > { %v4160_v19 = vpop.f32.mrf.mxu0  ;;  %v14036_v15 = vpop.f32.mrf.mxu1 }
 0x6a9   : > { %v14045_v57 = vpack.c.bf16 %v4160_v19, %v4160_v19  ;;  %v11458_v19 = vld [vmem:[%s15850_s10 + $0x624] ss:$16 sps:$4 sm:$0xff]  }
 0x6aa   : > { %v4162_v41 = vpop.f32.mrf.mxu0  ;;  %v14038_v34 = vpop.f32.mrf.mxu1 }
 0x6ab   : > { %v14040_v60 = vpack.c.bf16 %v4162_v41, %v4162_v41 }
 0x6ac   : > { %v4164_v44 = vpop.f32.mrf.mxu0  ;;  %v4356_v27 = vpop.f32.mrf.mxu1 }
 0x6ad   : > { %8063 = vmatprep.mubr.bf16.mxu0 %v14040_v60  ;;  %v11453_v44 = vld [vmem:[%s15850_s10 + $0x5e0] ss:$16 sps:$4 sm:$0xff]   ;;  %v11461_v27 = vld [vmem:[%s15850_s10 + $0x5c4] ss:$16 sps:$4 sm:$0xff]  }
 0x6ae   : > { %v4165_v24 = vpop.f32.mrf.mxu0  ;;  %8064 = vmatmul.mubr.bf16.vlgmr.msra.gmra.mxu0 %v14045_v57  ;;  %v4357_v54 = vpop.f32.mrf.mxu1 }
 0x6af   : > { %8114 = vmatpush1.bf16.msra.mxu0 %v11408_v49  ;;  %v11464_v24 = vld [vmem:[%s15850_s10 + $0x604] ss:$16 sps:$4 sm:$0xff]  }
 0x6b0   : > { %v4208_v38 = vpop.f32.mrf.mxu0  ;;  %8115 = vmatprep.subr.bf16.mxu0 %v11416_v4  ;;  %v14058_v30 = vpop.f32.mrf.mxu1  ;;  %v11456_v4 = vld [vmem:[%s15850_s10 + $0x620] ss:$16 sps:$4 sm:$0xff]  }
 0x6b1   : > { %v14070_v32 = vpack.c.bf16 %v4208_v38, %v4208_v38  ;;  %v11459_v38 = vld [vmem:[%s15850_s10 + $0x5c0] ss:$16 sps:$4 sm:$0xff]  }
 0x6b2   : > { %v4210_v48 = vpop.f32.mrf.mxu0  ;;  %v14060_v25 = vpop.f32.mrf.mxu1 }
 0x6b3   : > { %v14062_v12 = vpack.c.bf16 %v4210_v48, %v4210_v48  ;;  %8116 = vmatpush1.bf16.msra.mxu0 %v11414_v28  ;;  %v11467_v48 = vld [vmem:[%s15850_s10 + $0x5a4] ss:$16 sps:$4 sm:$0xff]  }
 0x6b4   : > { %8117 = vmatprep.subr.bf16.mxu0 %v11419_v61  ;;  %v4212_v59 = vpop.f32.mrf.mxu0  ;;  %v4452_v5 = vpop.f32.mrf.mxu1  ;;  %v11462_v61 = vld [vmem:[%s15850_s10 + $0x600] ss:$16 sps:$4 sm:$0xff]  }
 0x6b5   : > { %8104 = vmatprep.mubr.bf16.mxu1 %v14062_v12  ;;  %v11468_v59 = vld [vmem:[%s15850_s10 + $0x7e0] ss:$16 sps:$4 sm:$0xff]   ;;  %v11473_v5 = vld [vmem:[%s15850_s10 + $0x584] ss:$16 sps:$4 sm:$0xff]  }
 0x6b6   : > { %8105 = vmatmul.mubr.bf16.vlgmr.msra.gmra.mxu1 %v14070_v32  ;;  %v4213_v1 = vpop.f32.mrf.mxu0  ;;  %v4453_v22 = vpop.f32.mrf.mxu1 }
 0x6b7   : > { %8118 = vmatpush1.bf16.msra.mxu0 %v11417_v2  ;;  %8155 = vmatpush1.bf16.msra.mxu1 %v11420_v29  ;;  %v11470_v2 = vld [vmem:[%s15850_s10 + $0x7e4] ss:$16 sps:$4 sm:$0xff]  }
 0x6b8   : > { %8119 = vmatprep.subr.bf16.mxu0 %v11425_v39  ;;  %8156 = vmatprep.subr.bf16.mxu1 %v11428_v20  ;;  %v14092_v11 = vpop.f32.mrf.mxu0  ;;  %v14094_v62 = vpop.f32.mrf.mxu1  ;;  %v11465_v20 = vld [vmem:[%s15850_s10 + $0x5a0] ss:$16 sps:$4 sm:$0xff]   ;;  %v11476_v1 = vld [vmem:[%s15850_s10 + $0x7c4] ss:$16 sps:$4 sm:$0xff]  }
 0x6ba   : > { %v4258_v63 = vpop.f32.mrf.mxu0  ;;  %v14096_v14 = vpop.f32.mrf.mxu1 }
 0x6bb   : > { %8120 = vmatpush1.bf16.msra.mxu0 %v11423_v47  ;;  %8157 = vmatpush1.bf16.msra.mxu1 %v11426_v16  ;;  %v14104_v55 = vpack.c.bf16 %v4258_v63, %v4258_v63  ;;  %v11471_v16 = vld [vmem:[%s15850_s10 + $0x580] ss:$16 sps:$4 sm:$0xff]   ;;  %v11482_v63 = vld [vmem:[%s15850_s10 + $0x7a4] ss:$16 sps:$4 sm:$0xff]  }
 0x6bc   : > { %8121 = vmatprep.subr.bf16.mxu0 %v11431_v0  ;;  %8158 = vmatprep.subr.bf16.mxu1 %v11434_v23  ;;  %v4260_v10 = vpop.f32.mrf.mxu0  ;;  %v4548_v42 = vpop.f32.mrf.mxu1  ;;  %v11474_v0 = vld [vmem:[%s15850_s10 + $0x7c0] ss:$16 sps:$4 sm:$0xff]   ;;  %v11479_v23 = vld [vmem:[%s15850_s10 + $0x564] ss:$16 sps:$4 sm:$0xff]  }
 0x6bd   : > { %8145 = vmatprep.mubr.bf16.mxu0 %v14104_v55  ;;  %v11483_v10 = vld [vmem:[%s15850_s10 + $0x540] ss:$16 sps:$4 sm:$0xff]  }
 0x6be   : > { %v4261_v31 = vpop.f32.mrf.mxu0  ;;  %v4549_v17 = vpop.f32.mrf.mxu1  ;;  %v11486_v42 = vld [vmem:[%s15850_s10 + $0x780] ss:$16 sps:$4 sm:$0xff]  }
 0x6bf   : > { %8122 = vmatpush1.bf16.msra.mxu0 %v11429_v6  ;;  %8159 = vmatpush1.bf16.msra.mxu1 %v11432_v33  ;;  %v11477_v6 = vld [vmem:[%s15850_s10 + $0x560] ss:$16 sps:$4 sm:$0xff]   ;;  %v11491_v31 = vld [vmem:[%s15850_s10 + $0x524] ss:$16 sps:$4 sm:$0xff]  }
 0x6c0   : > { %8123 = vmatprep.subr.bf16.mxu0 %v11437_v50  ;;  %8160 = vmatprep.subr.bf16.mxu1 %v11440_v9  ;;  %v14125_v18 = vpop.f32.mrf.mxu0  ;;  %v11480_v33 = vld [vmem:[%s15850_s10 + $0x7a0] ss:$16 sps:$4 sm:$0xff]   ;;  %v11485_v50 = vld [vmem:[%s15850_s10 + $0x544] ss:$16 sps:$4 sm:$0xff]  }
 0x6c1   : > { %v11488_v9 = vld [vmem:[%s15850_s10 + $0x784] ss:$16 sps:$4 sm:$0xff]  }
 0x6c2   : > { %v4306_v52 = vpop.f32.mrf.mxu0  ;;  %v11494_v17 = vld [vmem:[%s15850_s10 + $0x764] ss:$16 sps:$4 sm:$0xff]  }
 0x6c3   : > { %8124 = vmatpush1.bf16.msra.mxu0 %v11435_v21  ;;  %8161 = vmatpush1.bf16.msra.mxu1 %v11438_v43  ;;  %v14133_v35 = vpack.c.bf16 %v4306_v52, %v4306_v52  ;;  %v11489_v21 = vld [vmem:[%s15850_s10 + $0x520] ss:$16 sps:$4 sm:$0xff]  }
 0x6c4   : > { %8125 = vmatprep.subr.bf16.mxu0 %v11443_v53  ;;  %8162 = vmatprep.subr.bf16.mxu1 %v11446_v51  ;;  %v4308_v3 = vpop.f32.mrf.mxu0  ;;  %v11492_v43 = vld [vmem:[%s15850_s10 + $0x760] ss:$16 sps:$4 sm:$0xff]   ;;  %v11497_v53 = vld [vmem:[%s15850_s10 + $0x504] ss:$16 sps:$4 sm:$0xff]  }
 0x6c5   : > { %8186 = vmatprep.mubr.bf16.mxu1 %v14133_v35  ;;  %v11500_v51 = vld [vmem:[%s15850_s10 + $0x744] ss:$16 sps:$4 sm:$0xff]   ;;  %v11495_v52 = vld [vmem:[%s15850_s10 + $0x500] ss:$16 sps:$4 sm:$0xff]  }
 0x6c6   : > { %v4309_v58 = vpop.f32.mrf.mxu0  ;;  %v11504_v3 = vld [vmem:[%s15850_s10 + $0x8e0] ss:$16 sps:$4 sm:$0xff]  }
 0x6c7   : > { %8126 = vmatpush1.bf16.msra.mxu0 %v11441_v26  ;;  %8163 = vmatpush1.bf16.msra.mxu1 %v11444_v36  ;;  %v11498_v26 = vld [vmem:[%s15850_s10 + $0x740] ss:$16 sps:$4 sm:$0xff]   ;;  %v11503_v36 = vld [vmem:[%s15850_s10 + $0x724] ss:$16 sps:$4 sm:$0xff]   ;;  %v14266_v58 = vpack.c.bf16 %v14092_v11, %v14092_v11 }
 0x6c8   : > { %8127 = vmatprep.subr.bf16.mxu0 %v11449_v56  ;;  %8164 = vmatprep.subr.bf16.mxu1 %v11452_v46  ;;  %v14154_v41 = vpop.f32.mrf.mxu0  ;;  %v11506_v56 = vld [vmem:[%s15850_s10 + $0x8e4] ss:$16 sps:$4 sm:$0xff]   ;;  %v11501_v46 = vld [vmem:[%s15850_s10 + $0x720] ss:$16 sps:$4 sm:$0xff]  }
 0x6c9   : > { %v11507_v11 = vld [vmem:[%s15850_s10 + $0x700] ss:$16 sps:$4 sm:$0xff]  }
 0x6ca   : > { %v14156_v49 = vpop.f32.mrf.mxu0 }
 0x6cb   : > { %8128 = vmatpush1.bf16.msra.mxu0 %v11447_v37  ;;  %8165 = vmatpush1.bf16.msra.mxu1 %v11450_v13  ;;  %v11509_v37 = vld [vmem:[%s15850_s10 + $0x704] ss:$16 sps:$4 sm:$0xff]  }
 0x6cc   : > { %8129 = vmatprep.subr.bf16.mxu0 %v11455_v7  ;;  %8166 = vmatprep.subr.bf16.mxu1 %v11458_v19  ;;  %v4404_v54 = vpop.f32.mrf.mxu0  ;;  %v11512_v13 = vld [vmem:[%s15850_s10 + $0x8c4] ss:$16 sps:$4 sm:$0xff]   ;;  %v14276_v7 = vpack.c.bf16 %v14038_v34, %v14038_v34  ;;  %v11510_v19 = vld [vmem:[%s15850_s10 + $0x8c0] ss:$16 sps:$4 sm:$0xff]  }
 0x6cd   : > { %v11518_v34 = vld [vmem:[%s15850_s10 + $0xae4] ss:$16 sps:$4 sm:$0xff]  }
 0x6ce   : > { %v4405_v28 = vpop.f32.mrf.mxu0  ;;  %v11521_v54 = vld [vmem:[%s15850_s10 + $0x884] ss:$16 sps:$4 sm:$0xff]  }
 0x6cf   : > { %8130 = vmatpush2.bf16.msra.mxu0 %v11453_v44  ;;  %8167 = vmatpush1.bf16.msra.mxu1 %v11456_v4  ;;  %v11515_v44 = vld [vmem:[%s15850_s10 + $0x8a4] ss:$16 sps:$4 sm:$0xff]   ;;  %v11513_v4 = vld [vmem:[%s15850_s10 + $0x8a0] ss:$16 sps:$4 sm:$0xff]  }
 0x6d0   : > { %8131 = vmatprep.subr.bf16.mxu0 %v11461_v27  ;;  %8168 = vmatprep.subr.bf16.mxu1 %v11464_v24  ;;  %v14182_v29 = vpop.f32.mrf.mxu0  ;;  %v11516_v27 = vld [vmem:[%s15850_s10 + $0xae0] ss:$16 sps:$4 sm:$0xff]   ;;  %v14300_v24 = vpack.c.bf16 %v14125_v18, %v14125_v18  ;;  %v11524_v28 = vld [vmem:[%s15850_s10 + $0xac4] ss:$16 sps:$4 sm:$0xff]  }
 0x6d1   : > { %v11519_v18 = vld [vmem:[%s15850_s10 + $0x880] ss:$16 sps:$4 sm:$0xff]  }
 0x6d2   : > { %v14184_v39 = vpop.f32.mrf.mxu0 }
 0x6d3   : > { %8132 = vmatpush2.bf16.msra.mxu0 %v11459_v38  ;;  %8169 = vmatpush1.bf16.msra.mxu1 %v11462_v61  ;;  %v14310_v38 = vpack.c.bf16 %v14156_v49, %v14156_v49  ;;  %v11522_v61 = vld [vmem:[%s15850_s10 + $0xac0] ss:$16 sps:$4 sm:$0xff]   ;;  %v11530_v49 = vld [vmem:[%s15850_s10 + $0xaa4] ss:$16 sps:$4 sm:$0xff]  }
 0x6d4   : > { %8133 = vmatprep.subr.bf16.mxu0 %v11467_v48  ;;  %8170 = vmatprep.subr.bf16.mxu1 %v11470_v2  ;;  %v4500_v22 = vpop.f32.mrf.mxu0  ;;  %v11527_v48 = vld [vmem:[%s15850_s10 + $0x864] ss:$16 sps:$4 sm:$0xff]   ;;  %v11525_v2 = vld [vmem:[%s15850_s10 + $0x860] ss:$16 sps:$4 sm:$0xff]  }
 0x6d5   : > { %v11534_v22 = vld [vmem:[%s15850_s10 + $0xa80] ss:$16 sps:$4 sm:$0xff]  }
 0x6d6   : > { %v4501_v47 = vpop.f32.mrf.mxu0 }
 0x6d7   : > { %8134 = vmatpush2.bf16.msra.mxu0 %v11465_v20  ;;  %8171 = vmatpush2.bf16.msra.mxu1 %v11468_v59  ;;  %v11528_v20 = vld [vmem:[%s15850_s10 + $0xaa0] ss:$16 sps:$4 sm:$0xff]   ;;  %v11533_v59 = vld [vmem:[%s15850_s10 + $0x844] ss:$16 sps:$4 sm:$0xff]  }
 0x6d8   : > { %8135 = vmatprep.subr.bf16.mxu0 %v11473_v5  ;;  %8172 = vmatprep.subr.bf16.mxu1 %v11476_v1  ;;  %v11536_v5 = vld [vmem:[%s15850_s10 + $0xa84] ss:$16 sps:$4 sm:$0xff]   ;;  %v11531_v1 = vld [vmem:[%s15850_s10 + $0x840] ss:$16 sps:$4 sm:$0xff]  }
 0x6d9   : > { %v11539_v47 = vld [vmem:[%s15850_s10 + $0x824] ss:$16 sps:$4 sm:$0xff]  }
 0x6db   : > { %8136 = vmatpush2.bf16.msra.mxu0 %v11471_v16  ;;  %8173 = vmatpush2.bf16.msra.mxu1 %v11474_v0  ;;  %v11542_v16 = vld [vmem:[%s15850_s10 + $0xa64] ss:$16 sps:$4 sm:$0xff]   ;;  %v11537_v0 = vld [vmem:[%s15850_s10 + $0x820] ss:$16 sps:$4 sm:$0xff]  }
 0x6dc   : > { %8137 = vmatprep.subr.bf16.mxu0 %v11479_v23  ;;  %8174 = vmatprep.subr.bf16.mxu1 %v11482_v63  ;;  %v11540_v23 = vld [vmem:[%s15850_s10 + $0xa60] ss:$16 sps:$4 sm:$0xff]   ;;  %v11545_v63 = vld [vmem:[%s15850_s10 + $0x804] ss:$16 sps:$4 sm:$0xff]  }
 0x6df   : > { %8138 = vmatpush2.bf16.msra.mxu0 %v11477_v6  ;;  %8175 = vmatpush2.bf16.msra.mxu1 %v11480_v33  ;;  %v11548_v6 = vld [vmem:[%s15850_s10 + $0xa44] ss:$16 sps:$4 sm:$0xff]   ;;  %v11543_v33 = vld [vmem:[%s15850_s10 + $0x800] ss:$16 sps:$4 sm:$0xff]  }
 0x6e0   : > { %8139 = vmatprep.subr.bf16.mxu0 %v11485_v50  ;;  %8176 = vmatprep.subr.bf16.mxu1 %v11488_v9  ;;  %v11546_v50 = vld [vmem:[%s15850_s10 + $0xa40] ss:$16 sps:$4 sm:$0xff]   ;;  %v11551_v9 = vld [vmem:[%s15850_s10 + $0x9e4] ss:$16 sps:$4 sm:$0xff]  }
 0x6e3   : > { %8140 = vmatpush2.bf16.msra.mxu0 %v11483_v10  ;;  %8177 = vmatpush2.bf16.msra.mxu1 %v11486_v42  ;;  %v11554_v10 = vld [vmem:[%s15850_s10 + $0xa24] ss:$16 sps:$4 sm:$0xff]   ;;  %v11549_v42 = vld [vmem:[%s15850_s10 + $0x9e0] ss:$16 sps:$4 sm:$0xff]  }
 0x6e4   : > { %8141 = vmatprep.subr.bf16.mxu0 %v11491_v31  ;;  %8178 = vmatprep.subr.bf16.mxu1 %v11494_v17  ;;  %v11552_v31 = vld [vmem:[%s15850_s10 + $0xa20] ss:$16 sps:$4 sm:$0xff]   ;;  %v11557_v17 = vld [vmem:[%s15850_s10 + $0x9c4] ss:$16 sps:$4 sm:$0xff]  }
 0x6e7   : > { %8142 = vmatpush2.bf16.msra.mxu0 %v11489_v21  ;;  %8179 = vmatpush2.bf16.msra.mxu1 %v11492_v43  ;;  %v11560_v21 = vld [vmem:[%s15850_s10 + $0xa04] ss:$16 sps:$4 sm:$0xff]   ;;  %v11555_v43 = vld [vmem:[%s15850_s10 + $0x9c0] ss:$16 sps:$4 sm:$0xff]  }
 0x6e8   : > { %8143 = vmatprep.subr.bf16.mxu0 %v11497_v53  ;;  %8180 = vmatprep.subr.bf16.mxu1 %v11500_v51  ;;  %v11558_v53 = vld [vmem:[%s15850_s10 + $0xa00] ss:$16 sps:$4 sm:$0xff]   ;;  %v11563_v51 = vld [vmem:[%s15850_s10 + $0x9a4] ss:$16 sps:$4 sm:$0xff]  }
 0x6eb   : > { %8144 = vmatpush2.bf16.msra.mxu0 %v11495_v52  ;;  %8181 = vmatpush2.bf16.msra.mxu1 %v11498_v26  ;;  %v11566_v52 = vld [vmem:[%s15850_s10 + $0xbe4] ss:$16 sps:$4 sm:$0xff]   ;;  %v11561_v26 = vld [vmem:[%s15850_s10 + $0x9a0] ss:$16 sps:$4 sm:$0xff]  }
 0x6ec   : > { %8182 = vmatprep.subr.bf16.mxu1 %v11503_v36  ;;  %8195 = vmatprep.subr.bf16.mxu0 %v11506_v56  ;;  %v11564_v36 = vld [vmem:[%s15850_s10 + $0xbe0] ss:$16 sps:$4 sm:$0xff]   ;;  %v11569_v56 = vld [vmem:[%s15850_s10 + $0x984] ss:$16 sps:$4 sm:$0xff]  }
 0x6ee   : > { %8146 = vmatmul.mubr.bf16.vlgmr.msra.gmra.mxu0 %v14266_v58 }
 0x6ef   : > { %8183 = vmatpush2.bf16.msra.mxu1 %v11501_v46  ;;  %8196 = vmatpush1.bf16.msra.mxu0 %v11504_v3  ;;  %v11572_v46 = vld [vmem:[%s15850_s10 + $0xbc4] ss:$16 sps:$4 sm:$0xff]   ;;  %v11567_v3 = vld [vmem:[%s15850_s10 + $0x980] ss:$16 sps:$4 sm:$0xff]  }
 0x6f0   : > { %8184 = vmatprep.subr.bf16.mxu1 %v11509_v37  ;;  %8197 = vmatprep.subr.bf16.mxu0 %v11512_v13  ;;  %v11570_v37 = vld [vmem:[%s15850_s10 + $0xbc0] ss:$16 sps:$4 sm:$0xff]   ;;  %v11575_v13 = vld [vmem:[%s15850_s10 + $0x964] ss:$16 sps:$4 sm:$0xff]  }
 0x6f1   : > { %8227 = vmatprep.mubr.bf16.mxu0 %v14276_v7 }
 0x6f3   : > { %8185 = vmatpush2.bf16.msra.mxu1 %v11507_v11  ;;  %8198 = vmatpush1.bf16.msra.mxu0 %v11510_v19  ;;  %v11578_v11 = vld [vmem:[%s15850_s10 + $0xba4] ss:$16 sps:$4 sm:$0xff]   ;;  %v11573_v19 = vld [vmem:[%s15850_s10 + $0x960] ss:$16 sps:$4 sm:$0xff]  }
 0x6f4   : > { %8199 = vmatprep.subr.bf16.mxu0 %v11515_v44  ;;  %8236 = vmatprep.subr.bf16.mxu1 %v11518_v34  ;;  %v11576_v44 = vld [vmem:[%s15850_s10 + $0xba0] ss:$16 sps:$4 sm:$0xff]   ;;  %v11581_v34 = vld [vmem:[%s15850_s10 + $0x944] ss:$16 sps:$4 sm:$0xff]  }
 0x6f6   : > { %8187 = vmatmul.mubr.bf16.vlgmr.msra.gmra.mxu1 %v14300_v24 }
 0x6f7   : > { %8200 = vmatpush1.bf16.msra.mxu0 %v11513_v4  ;;  %8237 = vmatpush1.bf16.msra.mxu1 %v11516_v27  ;;  %v11584_v4 = vld [vmem:[%s15850_s10 + $0xb84] ss:$16 sps:$4 sm:$0xff]   ;;  %v11579_v27 = vld [vmem:[%s15850_s10 + $0x940] ss:$16 sps:$4 sm:$0xff]  }
 0x6f8   : > { %8201 = vmatprep.subr.bf16.mxu0 %v11521_v54  ;;  %8238 = vmatprep.subr.bf16.mxu1 %v11524_v28  ;;  %v11582_v54 = vld [vmem:[%s15850_s10 + $0xb80] ss:$16 sps:$4 sm:$0xff]   ;;  %v11587_v28 = vld [vmem:[%s15850_s10 + $0x924] ss:$16 sps:$4 sm:$0xff]  }
 0x6f9   : > { %8268 = vmatprep.mubr.bf16.mxu1 %v14310_v38 }
 0x6fb   : > { %8202 = vmatpush1.bf16.msra.mxu0 %v11519_v18  ;;  %8239 = vmatpush1.bf16.msra.mxu1 %v11522_v61  ;;  %v11590_v18 = vld [vmem:[%s15850_s10 + $0xb64] ss:$16 sps:$4 sm:$0xff]   ;;  %v11585_v61 = vld [vmem:[%s15850_s10 + $0x920] ss:$16 sps:$4 sm:$0xff]  }
 0x6fc   : > { %8203 = vmatprep.subr.bf16.mxu0 %v11527_v48  ;;  %8240 = vmatprep.subr.bf16.mxu1 %v11530_v49  ;;  %v11588_v48 = vld [vmem:[%s15850_s10 + $0xb60] ss:$16 sps:$4 sm:$0xff]   ;;  %v11593_v49 = vld [vmem:[%s15850_s10 + $0x904] ss:$16 sps:$4 sm:$0xff]  }
 0x6ff   : > { %8204 = vmatpush1.bf16.msra.mxu0 %v11525_v2  ;;  %8241 = vmatpush1.bf16.msra.mxu1 %v11528_v20  ;;  %v11596_v2 = vld [vmem:[%s15850_s10 + $0xb44] ss:$16 sps:$4 sm:$0xff]   ;;  %v11591_v20 = vld [vmem:[%s15850_s10 + $0x900] ss:$16 sps:$4 sm:$0xff]  }
 0x700   : > { %8205 = vmatprep.subr.bf16.mxu0 %v11533_v59  ;;  %8242 = vmatprep.subr.bf16.mxu1 %v11536_v5  ;;  %v11594_v59 = vld [vmem:[%s15850_s10 + $0xb40] ss:$16 sps:$4 sm:$0xff]   ;;  %v11599_v5 = vld [vmem:[%s15850_s10 + $0xb24] ss:$16 sps:$4 sm:$0xff]  }
 0x703   : > { %8206 = vmatpush1.bf16.msra.mxu0 %v11531_v1  ;;  %8243 = vmatpush1.bf16.msra.mxu1 %v11534_v22  ;;  %v11602_v1 = vld [vmem:[%s15850_s10 + $0xce4] ss:$16 sps:$4 sm:$0xff]   ;;  %v11597_v22 = vld [vmem:[%s15850_s10 + $0xb20] ss:$16 sps:$4 sm:$0xff]  }
 0x704   : > { %8207 = vmatprep.subr.bf16.mxu0 %v11539_v47  ;;  %8244 = vmatprep.subr.bf16.mxu1 %v11542_v16  ;;  %v11600_v47 = vld [vmem:[%s15850_s10 + $0xce0] ss:$16 sps:$4 sm:$0xff]   ;;  %v14478_v16 = vpack.c.bf16 %v14036_v15, %v14036_v15 }
 0x705   : > { %v11603_v15 = vld [vmem:[%s15850_s10 + $0xb00] ss:$16 sps:$4 sm:$0xff]  }
 0x707   : > { %8208 = vmatpush1.bf16.msra.mxu0 %v11537_v0  ;;  %8245 = vmatpush1.bf16.msra.mxu1 %v11540_v23  ;;  %v11605_v0 = vld [vmem:[%s15850_s10 + $0xb04] ss:$16 sps:$4 sm:$0xff]  }
 0x708   : > { %8209 = vmatprep.subr.bf16.mxu0 %v11545_v63  ;;  %8246 = vmatprep.subr.bf16.mxu1 %v11548_v6  ;;  %v11608_v23 = vld [vmem:[%s15850_s10 + $0xcc4] ss:$16 sps:$4 sm:$0xff]   ;;  %v14488_v63 = vpack.c.bf16 %v14060_v25, %v14060_v25  ;;  %v11606_v6 = vld [vmem:[%s15850_s10 + $0xcc0] ss:$16 sps:$4 sm:$0xff]  }
 0x709   : > { %v11614_v25 = vld [vmem:[%s15850_s10 + $0xee4] ss:$16 sps:$4 sm:$0xff]  }
 0x70b   : > { %8210 = vmatpush1.bf16.msra.mxu0 %v11543_v33  ;;  %8247 = vmatpush1.bf16.msra.mxu1 %v11546_v50  ;;  %v11611_v33 = vld [vmem:[%s15850_s10 + $0xca4] ss:$16 sps:$4 sm:$0xff]   ;;  %v11609_v50 = vld [vmem:[%s15850_s10 + $0xca0] ss:$16 sps:$4 sm:$0xff]  }
 0x70c   : > { %8211 = vmatprep.subr.bf16.mxu0 %v11551_v9  ;;  %8248 = vmatprep.subr.bf16.mxu1 %v11554_v10  ;;  %v11612_v9 = vld [vmem:[%s15850_s10 + $0xee0] ss:$16 sps:$4 sm:$0xff]   ;;  %v14512_v10 = vpack.c.bf16 %v14154_v41, %v14154_v41 }
 0x70d   : > { %v11615_v41 = vld [vmem:[%s15850_s10 + $0xc80] ss:$16 sps:$4 sm:$0xff]  }
 0x70f   : > { %8212 = vmatpush2.bf16.msra.mxu0 %v11549_v42  ;;  %8249 = vmatpush1.bf16.msra.mxu1 %v11552_v31  ;;  %v11617_v42 = vld [vmem:[%s15850_s10 + $0xc84] ss:$16 sps:$4 sm:$0xff]  }
 0x710   : > { %8213 = vmatprep.subr.bf16.mxu0 %v11557_v17  ;;  %8250 = vmatprep.subr.bf16.mxu1 %v11560_v21  ;;  %v11620_v31 = vld [vmem:[%s15850_s10 + $0xec4] ss:$16 sps:$4 sm:$0xff]   ;;  %v14522_v17 = vpack.c.bf16 %v14184_v39, %v14184_v39  ;;  %v11618_v21 = vld [vmem:[%s15850_s10 + $0xec0] ss:$16 sps:$4 sm:$0xff]  }
 0x711   : > { %v11626_v39 = vld [vmem:[%s15850_s10 + $0xea4] ss:$16 sps:$4 sm:$0xff]  }
 0x713   : > { %8214 = vmatpush2.bf16.msra.mxu0 %v11555_v43  ;;  %8251 = vmatpush1.bf16.msra.mxu1 %v11558_v53  ;;  %v11623_v43 = vld [vmem:[%s15850_s10 + $0xc64] ss:$16 sps:$4 sm:$0xff]   ;;  %v11621_v53 = vld [vmem:[%s15850_s10 + $0xc60] ss:$16 sps:$4 sm:$0xff]  }
 0x714   : > { %8215 = vmatprep.subr.bf16.mxu0 %v11563_v51  ;;  %8252 = vmatprep.subr.bf16.mxu1 %v11566_v52  ;;  %v11624_v51 = vld [vmem:[%s15850_s10 + $0xea0] ss:$16 sps:$4 sm:$0xff]   ;;  %v11629_v52 = vld [vmem:[%s15850_s10 + $0xc44] ss:$16 sps:$4 sm:$0xff]  }
 0x717   : > { %8216 = vmatpush2.bf16.msra.mxu0 %v11561_v26  ;;  %8253 = vmatpush2.bf16.msra.mxu1 %v11564_v36  ;;  %v11632_v26 = vld [vmem:[%s15850_s10 + $0xe84] ss:$16 sps:$4 sm:$0xff]   ;;  %v11627_v36 = vld [vmem:[%s15850_s10 + $0xc40] ss:$16 sps:$4 sm:$0xff]  }
 0x718   : > { %8217 = vmatprep.subr.bf16.mxu0 %v11569_v56  ;;  %8254 = vmatprep.subr.bf16.mxu1 %v11572_v46  ;;  %v11630_v56 = vld [vmem:[%s15850_s10 + $0xe80] ss:$16 sps:$4 sm:$0xff]   ;;  %v11635_v46 = vld [vmem:[%s15850_s10 + $0xc24] ss:$16 sps:$4 sm:$0xff]  }
 0x71b   : > { %8218 = vmatpush2.bf16.msra.mxu0 %v11567_v3  ;;  %8255 = vmatpush2.bf16.msra.mxu1 %v11570_v37  ;;  %v11638_v3 = vld [vmem:[%s15850_s10 + $0xe64] ss:$16 sps:$4 sm:$0xff]   ;;  %v11633_v37 = vld [vmem:[%s15850_s10 + $0xc20] ss:$16 sps:$4 sm:$0xff]  }
 0x71c   : > { %8219 = vmatprep.subr.bf16.mxu0 %v11575_v13  ;;  %8256 = vmatprep.subr.bf16.mxu1 %v11578_v11  ;;  %v11636_v13 = vld [vmem:[%s15850_s10 + $0xe60] ss:$16 sps:$4 sm:$0xff]   ;;  %v11641_v11 = vld [vmem:[%s15850_s10 + $0xc04] ss:$16 sps:$4 sm:$0xff]  }
 0x71f   : > { %8220 = vmatpush2.bf16.msra.mxu0 %v11573_v19  ;;  %8257 = vmatpush2.bf16.msra.mxu1 %v11576_v44  ;;  %v11644_v19 = vld [vmem:[%s15850_s10 + $0xe44] ss:$16 sps:$4 sm:$0xff]   ;;  %v11639_v44 = vld [vmem:[%s15850_s10 + $0xc00] ss:$16 sps:$4 sm:$0xff]  }
 0x720   : > { %8221 = vmatprep.subr.bf16.mxu0 %v11581_v34  ;;  %8258 = vmatprep.subr.bf16.mxu1 %v11584_v4  ;;  %v11642_v34 = vld [vmem:[%s15850_s10 + $0xe40] ss:$16 sps:$4 sm:$0xff]   ;;  %v11647_v4 = vld [vmem:[%s15850_s10 + $0xde4] ss:$16 sps:$4 sm:$0xff]  }
 0x723   : > { %8222 = vmatpush2.bf16.msra.mxu0 %v11579_v27  ;;  %8259 = vmatpush2.bf16.msra.mxu1 %v11582_v54  ;;  %v11650_v27 = vld [vmem:[%s15850_s10 + $0xe24] ss:$16 sps:$4 sm:$0xff]   ;;  %v11645_v54 = vld [vmem:[%s15850_s10 + $0xde0] ss:$16 sps:$4 sm:$0xff]  }
 0x724   : > { %8223 = vmatprep.subr.bf16.mxu0 %v11587_v28  ;;  %8260 = vmatprep.subr.bf16.mxu1 %v11590_v18  ;;  %v11648_v28 = vld [vmem:[%s15850_s10 + $0xe20] ss:$16 sps:$4 sm:$0xff]   ;;  %v11653_v18 = vld [vmem:[%s15850_s10 + $0xdc4] ss:$16 sps:$4 sm:$0xff]  }
 0x727   : > { %8224 = vmatpush2.bf16.msra.mxu0 %v11585_v61  ;;  %8261 = vmatpush2.bf16.msra.mxu1 %v11588_v48  ;;  %v11656_v61 = vld [vmem:[%s15850_s10 + $0xe04] ss:$16 sps:$4 sm:$0xff]   ;;  %v11651_v48 = vld [vmem:[%s15850_s10 + $0xdc0] ss:$16 sps:$4 sm:$0xff]  }
 0x728   : > { %8225 = vmatprep.subr.bf16.mxu0 %v11593_v49  ;;  %8262 = vmatprep.subr.bf16.mxu1 %v11596_v2  ;;  %v11654_v49 = vld [vmem:[%s15850_s10 + $0xe00] ss:$16 sps:$4 sm:$0xff]   ;;  %v11659_v2 = vld [vmem:[%s15850_s10 + $0xda4] ss:$16 sps:$4 sm:$0xff]  }
 0x72b   : > { %8226 = vmatpush2.bf16.msra.mxu0 %v11591_v20  ;;  %8263 = vmatpush2.bf16.msra.mxu1 %v11594_v59  ;;  %v11662_v20 = vld [vmem:[%s15850_s10 + $0xfe4] ss:$16 sps:$4 sm:$0xff]   ;;  %v11657_v59 = vld [vmem:[%s15850_s10 + $0xda0] ss:$16 sps:$4 sm:$0xff]  }
 0x72c   : > { %8264 = vmatprep.subr.bf16.mxu1 %v11599_v5  ;;  %8277 = vmatprep.subr.bf16.mxu0 %v11602_v1  ;;  %v11660_v5 = vld [vmem:[%s15850_s10 + $0xfe0] ss:$16 sps:$4 sm:$0xff]   ;;  %v11665_v1 = vld [vmem:[%s15850_s10 + $0xd84] ss:$16 sps:$4 sm:$0xff]  }
 0x72e   : > { %8228 = vmatmul.mubr.bf16.vlgmr.msra.gmra.mxu0 %v14478_v16 }
 0x72f   : > { %8265 = vmatpush2.bf16.msra.mxu1 %v11597_v22  ;;  %8278 = vmatpush1.bf16.msra.mxu0 %v11600_v47  ;;  %v11668_v22 = vld [vmem:[%s15850_s10 + $0xfc4] ss:$16 sps:$4 sm:$0xff]   ;;  %v11663_v47 = vld [vmem:[%s15850_s10 + $0xd80] ss:$16 sps:$4 sm:$0xff]  }
 0x730   : > { %8266 = vmatprep.subr.bf16.mxu1 %v11605_v0  ;;  %8279 = vmatprep.subr.bf16.mxu0 %v11608_v23  ;;  %v11666_v0 = vld [vmem:[%s15850_s10 + $0xfc0] ss:$16 sps:$4 sm:$0xff]   ;;  %v11671_v23 = vld [vmem:[%s15850_s10 + $0xd64] ss:$16 sps:$4 sm:$0xff]  }
 0x731   : > { %8309 = vmatprep.mubr.bf16.mxu0 %v14488_v63 }
 0x733   : > { %8267 = vmatpush2.bf16.msra.mxu1 %v11603_v15  ;;  %8280 = vmatpush1.bf16.msra.mxu0 %v11606_v6  ;;  %v11674_v15 = vld [vmem:[%s15850_s10 + $0xfa4] ss:$16 sps:$4 sm:$0xff]   ;;  %v11669_v6 = vld [vmem:[%s15850_s10 + $0xd60] ss:$16 sps:$4 sm:$0xff]  }
 0x734   : > { %8281 = vmatprep.subr.bf16.mxu0 %v11611_v33  ;;  %8318 = vmatprep.subr.bf16.mxu1 %v11614_v25  ;;  %v11672_v33 = vld [vmem:[%s15850_s10 + $0xfa0] ss:$16 sps:$4 sm:$0xff]   ;;  %v11677_v25 = vld [vmem:[%s15850_s10 + $0xd44] ss:$16 sps:$4 sm:$0xff]  }
 0x736   : > { %8269 = vmatmul.mubr.bf16.vlgmr.msra.gmra.mxu1 %v14512_v10 }
 0x737   : > { %8282 = vmatpush1.bf16.msra.mxu0 %v11609_v50  ;;  %8319 = vmatpush1.bf16.msra.mxu1 %v11612_v9  ;;  %v11680_v50 = vld [vmem:[%s15850_s10 + $0xf84] ss:$16 sps:$4 sm:$0xff]   ;;  %v11675_v9 = vld [vmem:[%s15850_s10 + $0xd40] ss:$16 sps:$4 sm:$0xff]  }
 0x738   : > { %8283 = vmatprep.subr.bf16.mxu0 %v11617_v42  ;;  %8320 = vmatprep.subr.bf16.mxu1 %v11620_v31  ;;  %v11678_v42 = vld [vmem:[%s15850_s10 + $0xf80] ss:$16 sps:$4 sm:$0xff]   ;;  %v11683_v31 = vld [vmem:[%s15850_s10 + $0xd24] ss:$16 sps:$4 sm:$0xff]  }
 0x739   : > { %8350 = vmatprep.mubr.bf16.mxu1 %v14522_v17 }
 0x73b   : > { %8284 = vmatpush1.bf16.msra.mxu0 %v11615_v41  ;;  %8321 = vmatpush1.bf16.msra.mxu1 %v11618_v21  ;;  %v11686_v41 = vld [vmem:[%s15850_s10 + $0xf64] ss:$16 sps:$4 sm:$0xff]   ;;  %v11681_v21 = vld [vmem:[%s15850_s10 + $0xd20] ss:$16 sps:$4 sm:$0xff]  }
 0x73c   : > { %8285 = vmatprep.subr.bf16.mxu0 %v11623_v43  ;;  %8322 = vmatprep.subr.bf16.mxu1 %v11626_v39  ;;  %v11684_v43 = vld [vmem:[%s15850_s10 + $0xf60] ss:$16 sps:$4 sm:$0xff]   ;;  %v11689_v39 = vld [vmem:[%s15850_s10 + $0xd04] ss:$16 sps:$4 sm:$0xff]  }
 0x73f   : > { %8286 = vmatpush1.bf16.msra.mxu0 %v11621_v53  ;;  %8323 = vmatpush1.bf16.msra.mxu1 %v11624_v51  ;;  %v11692_v53 = vld [vmem:[%s15850_s10 + $0xf44] ss:$16 sps:$4 sm:$0xff]   ;;  %v11687_v51 = vld [vmem:[%s15850_s10 + $0xd00] ss:$16 sps:$4 sm:$0xff]  }
 0x740   : > { %8287 = vmatprep.subr.bf16.mxu0 %v11629_v52  ;;  %8324 = vmatprep.subr.bf16.mxu1 %v11632_v26  ;;  %v11690_v52 = vld [vmem:[%s15850_s10 + $0xf40] ss:$16 sps:$4 sm:$0xff]   ;;  %v11695_v26 = vld [vmem:[%s15850_s10 + $0xf24] ss:$16 sps:$4 sm:$0xff]  }
 0x743   : > { %8288 = vmatpush1.bf16.msra.mxu0 %v11627_v36  ;;  %8325 = vmatpush1.bf16.msra.mxu1 %v11630_v56  ;;  %v11698_v36 = vld [vmem:[%s15850_s10 + $0x10e4] ss:$16 sps:$4 sm:$0xff]   ;;  %v11693_v56 = vld [vmem:[%s15850_s10 + $0xf20] ss:$16 sps:$4 sm:$0xff]  }
 0x744   : > { %8289 = vmatprep.subr.bf16.mxu0 %v11635_v46  ;;  %8326 = vmatprep.subr.bf16.mxu1 %v11638_v3  ;;  %v11696_v46 = vld [vmem:[%s15850_s10 + $0x10e0] ss:$16 sps:$4 sm:$0xff]   ;;  %v14690_v3 = vpack.c.bf16 %v14058_v30, %v14058_v30 }
 0x745   : > { %v5129_v30 = vld [vmem:[%s15851_s11] sm:$0xf] }
 0x747   : > { %8290 = vmatpush1.bf16.msra.mxu0 %v11633_v37  ;;  %8327 = vmatpush1.bf16.msra.mxu1 %v11636_v13  ;;  %v11701_v37 = vld [vmem:[%s15850_s10 + $0xf04] ss:$16 sps:$4 sm:$0xff]  }
 0x748   : > { %8291 = vmatprep.subr.bf16.mxu0 %v11641_v11  ;;  %8328 = vmatprep.subr.bf16.mxu1 %v11644_v19  ;;  %v11704_v13 = vld [vmem:[%s15850_s10 + $0x10c4] ss:$16 sps:$4 sm:$0xff]   ;;  %v14700_v11 = vpack.c.bf16 %v14096_v14, %v14096_v14 }
 0x749   : > { %v11707_v14 = vld [vmem:[%s15850_s10 + $0x10a4] ss:$16 sps:$4 sm:$0xff]  }
 0x74b   : > { %8292 = vmatpush1.bf16.msra.mxu0 %v11639_v44  ;;  %8329 = vmatpush1.bf16.msra.mxu1 %v11642_v34  ;;  %v11699_v44 = vld [vmem:[%s15850_s10 + $0xf00] ss:$16 sps:$4 sm:$0xff]  }
 0x74c   : > { %8293 = vmatprep.subr.bf16.mxu0 %v11647_v4  ;;  %8330 = vmatprep.subr.bf16.mxu1 %v11650_v27  ;;  %v11702_v34 = vld [vmem:[%s15850_s10 + $0x10c0] ss:$16 sps:$4 sm:$0xff]   ;;  %v11710_v4 = vld [vmem:[%s15850_s10 + $0xec] ss:$16 sps:$4 sm:$0xff]  }
 0x74f   : > { %8294 = vmatpush2.bf16.msra.mxu0 %v11645_v54  ;;  %8331 = vmatpush1.bf16.msra.mxu1 %v11648_v28  ;;  %v5134_v54 = vrot.slane %v5129_v30, %v3172_v8  ;;  %v11713_v8 = vld [vmem:[%s15850_s10 + $0x1084] ss:$16 sps:$4 sm:$0xff]  }
 0x750   : > { %8295 = vmatprep.subr.bf16.mxu0 %v11653_v18  ;;  %8332 = vmatprep.subr.bf16.mxu1 %v11656_v61  ;;  %v11705_v18 = vld [vmem:[%s15850_s10 + $0x10a0] ss:$16 sps:$4 sm:$0xff]   ;;  %v11708_v61 = vld [vmem:[%s15850_s10 + $0xe8] ss:$16 sps:$4 sm:$0xff]  }
 0x753   : > { %8296 = vmatpush2.bf16.msra.mxu0 %v11651_v48  ;;  %8333 = vmatpush1.bf16.msra.mxu1 %v11654_v49  ;;  %v5138_v48 = vrot.slane %v5129_v30, %v3176_v40  ;;  %v14731_v49 = vpack.c.bf16 %v14182_v29, %v14182_v29  ;;  %v11711_v29 = vld [vmem:[%s15850_s10 + $0x1080] ss:$16 sps:$4 sm:$0xff]   ;;  %v11752_v30 = vld [vmem:[%s15850_s10 + $0xc] ss:$16 sps:$4 sm:$0xff]  }
 0x754   : > { %8297 = vmatprep.subr.bf16.mxu0 %v11659_v2  ;;  %8334 = vmatprep.subr.bf16.mxu1 %v11662_v20 }
 0x757   : > { %8298 = vmatpush2.bf16.msra.mxu0 %v11657_v59  ;;  %8335 = vmatpush2.bf16.msra.mxu1 %v11660_v5  ;;  %v11716_v59 = vld [vmem:[%s15850_s10 + $0xcc] ss:$16 sps:$4 sm:$0xff]  }
 0x758   : > { %8299 = vmatprep.subr.bf16.mxu0 %v11665_v1  ;;  %8336 = vmatprep.subr.bf16.mxu1 %v11668_v22  ;;  %v11714_v1 = vld [vmem:[%s15850_s10 + $0xc8] ss:$16 sps:$4 sm:$0xff]  }
 0x75b   : > { %8300 = vmatpush2.bf16.msra.mxu0 %v11663_v47  ;;  %8337 = vmatpush2.bf16.msra.mxu1 %v11666_v0  ;;  %v11719_v0 = vld [vmem:[%s15850_s10 + $0x1064] ss:$16 sps:$4 sm:$0xff]  }
 0x75c   : > { %8301 = vmatprep.subr.bf16.mxu0 %v11671_v23  ;;  %8338 = vmatprep.subr.bf16.mxu1 %v11674_v15  ;;  %v11722_v23 = vld [vmem:[%s15850_s10 + $0xac] ss:$16 sps:$4 sm:$0xff]  }
 0x75f   : > { %8302 = vmatpush2.bf16.msra.mxu0 %v11669_v6  ;;  %8339 = vmatpush2.bf16.msra.mxu1 %v11672_v33  ;;  %v11720_v33 = vld [vmem:[%s15850_s10 + $0xa8] ss:$16 sps:$4 sm:$0xff]  }
 0x760   : > { %8303 = vmatprep.subr.bf16.mxu0 %v11677_v25  ;;  %8340 = vmatprep.subr.bf16.mxu1 %v11680_v50  ;;  %v11725_v25 = vld [vmem:[%s15850_s10 + $0x1044] ss:$16 sps:$4 sm:$0xff]   ;;  %v11728_v50 = vld [vmem:[%s15850_s10 + $0x8c] ss:$16 sps:$4 sm:$0xff]  }
 0x763   : > { %8304 = vmatpush2.bf16.msra.mxu0 %v11675_v9  ;;  %8341 = vmatpush2.bf16.msra.mxu1 %v11678_v42  ;;  %v11723_v42 = vld [vmem:[%s15850_s10 + $0x1040] ss:$16 sps:$4 sm:$0xff]  }
 0x764   : > { %8305 = vmatprep.subr.bf16.mxu0 %v11683_v31  ;;  %8342 = vmatprep.subr.bf16.mxu1 %v11686_v41  ;;  %v11726_v31 = vld [vmem:[%s15850_s10 + $0x88] ss:$16 sps:$4 sm:$0xff]   ;;  %v11731_v41 = vld [vmem:[%s15850_s10 + $0x1024] ss:$16 sps:$4 sm:$0xff]  }
 0x767   : > { %8306 = vmatpush2.bf16.msra.mxu0 %v11681_v21  ;;  %8343 = vmatpush2.bf16.msra.mxu1 %v11684_v43  ;;  %v11734_v21 = vld [vmem:[%s15850_s10 + $0x6c] ss:$16 sps:$4 sm:$0xff]   ;;  %v11729_v43 = vld [vmem:[%s15850_s10 + $0x1020] ss:$16 sps:$4 sm:$0xff]  }
 0x768   : > { %8307 = vmatprep.subr.bf16.mxu0 %v11689_v39  ;;  %8344 = vmatprep.subr.bf16.mxu1 %v11692_v53  ;;  %v11732_v39 = vld [vmem:[%s15850_s10 + $0x68] ss:$16 sps:$4 sm:$0xff]   ;;  %v11737_v53 = vld [vmem:[%s15850_s10 + $0x1004] ss:$16 sps:$4 sm:$0xff]  }
 0x76b   : > { %8308 = vmatpush2.bf16.msra.mxu0 %v11687_v51  ;;  %8345 = vmatpush2.bf16.msra.mxu1 %v11690_v52  ;;  %v11740_v51 = vld [vmem:[%s15850_s10 + $0x4c] ss:$16 sps:$4 sm:$0xff]   ;;  %v11735_v52 = vld [vmem:[%s15850_s10 + $0x1000] ss:$16 sps:$4 sm:$0xff]  }
 0x76c   : > { %8346 = vmatprep.subr.bf16.mxu1 %v11695_v26  ;;  %8359 = vmatprep.subr.bf16.mxu0 %v11698_v36  ;;  %v11738_v26 = vld [vmem:[%s15850_s10 + $0x48] ss:$16 sps:$4 sm:$0xff]   ;;  %v11743_v36 = vld [vmem:[%s15850_s10 + $0x11e4] ss:$16 sps:$4 sm:$0xff]  }
 0x76e   : > { %8310 = vmatmul.mubr.bf16.vlgmr.msra.gmra.mxu0 %v14690_v3  ;;  %v8065_v19 = vpop.f32.mrf.mxu0 }
 0x76f   : > { %8347 = vmatpush2.bf16.msra.mxu1 %v11693_v56  ;;  %8360 = vmatpush1.bf16.msra.mxu0 %v11696_v46  ;;  %v8066_v20 = vadd.f32 %v8065_v19, %v5134_v54  ;;  %v11746_v56 = vld [vmem:[%s15850_s10 + $0x2c] ss:$16 sps:$4 sm:$0xff]   ;;  %v11741_v46 = vld [vmem:[%s15850_s10 + $0x11e0] ss:$16 sps:$4 sm:$0xff]   ;;  %v11761_v54 = vld [vmem:[%s15850_s10 + $0x1184] ss:$16 sps:$4 sm:$0xff]  }
 0x770   : > { %8391 = vmatprep.mubr.bf16.mxu0 %v14700_v11  ;;  %8348 = vmatprep.subr.bf16.mxu1 %v11701_v37  ;;  %v8067_v27 = vpop.f32.mrf.mxu0  ;;  %v11744_v37 = vld [vmem:[%s15850_s10 + $0x28] ss:$16 sps:$4 sm:$0xff]   ;;  %v11747_v19 = vld [vmem:[%s15850_s10 + $0x11c0] ss:$16 sps:$4 sm:$0xff]  }
 0x771   : > { %8361 = vmatprep.subr.bf16.mxu0 %v11704_v13  ;;  %v8068_v40 = vadd.f32 %v8067_v27, %v5138_v48  ;;  %v11749_v13 = vld [vmem:[%s15850_s10 + $0x11c4] ss:$16 sps:$4 sm:$0xff]   ;;  %v11756_v27 = vld [vmem:[%s15850_s10 + $0x1e8] ss:$16 sps:$4 sm:$0xff]  }
 0x772   : > { %v8069_v28 = vpop.f32.mrf.mxu0  ;;  %v11767_v48 = vld [vmem:[%s15850_s10 + $0x1164] ss:$16 sps:$4 sm:$0xff]  }
 0x773   : > { %8349 = vmatpush2.bf16.msra.mxu1 %v11699_v44  ;;  %8362 = vmatpush1.bf16.msra.mxu0 %v11702_v34  ;;  %v11750_v44 = vld [vmem:[%s15850_s10 + $0x8] ss:$16 sps:$4 sm:$0xff]   ;;  %v11755_v34 = vld [vmem:[%s15850_s10 + $0x11a4] ss:$16 sps:$4 sm:$0xff]   ;;  %v11764_v28 = vld [vmem:[%s15850_s10 + $0x1cc] ss:$16 sps:$4 sm:$0xff]  }
 0x774   : > { %8363 = vmatprep.subr.bf16.mxu0 %v11707_v14  ;;  %8400 = vmatprep.subr.bf16.mxu1 %v11710_v4  ;;  %v8070_v2 = vpop.f32.mrf.mxu0  ;;  %v11758_v14 = vld [vmem:[%s15850_s10 + $0x1ec] ss:$16 sps:$4 sm:$0xff]   ;;  %v11753_v4 = vld [vmem:[%s15850_s10 + $0x11a0] ss:$16 sps:$4 sm:$0xff]  }
 0x775   : > { %v11765_v2 = vld [vmem:[%s15850_s10 + $0x1160] ss:$16 sps:$4 sm:$0xff]  }
 0x776   : > { %8351 = vmatmul.mubr.bf16.vlgmr.msra.gmra.mxu1 %v14731_v49  ;;  %v8106_v5 = vpop.f32.mrf.mxu1 }
 0x777   : > { %8364 = vmatpush1.bf16.msra.mxu0 %v11705_v18  ;;  %8401 = vmatpush1.bf16.msra.mxu1 %v11708_v61  ;;  %v14746_v22 = vadd.f32 %v8106_v5, %v8066_v20  ;;  %v11759_v18 = vld [vmem:[%s15850_s10 + $0x1180] ss:$16 sps:$4 sm:$0xff]   ;;  %v11762_v61 = vld [vmem:[%s15850_s10 + $0x1c8] ss:$16 sps:$4 sm:$0xff]   ;;  %v11776_v5 = vld [vmem:[%s15850_s10 + $0x18c] ss:$16 sps:$4 sm:$0xff]  }
 0x778   : > { %8432 = vmatprep.mubr.bf16.mxu1 %v14040_v60  ;;  %8365 = vmatprep.subr.bf16.mxu0 %v11713_v8  ;;  %v8108_v47 = vpop.f32.mrf.mxu1  ;;  %v11717_v60 = vld [vmem:[%s15850_s10 + $0x1060] ss:$16 sps:$4 sm:$0xff]   ;;  %v11770_v8 = vld [vmem:[%s15850_s10 + $0x1ac] ss:$16 sps:$4 sm:$0xff]   ;;  %v11768_v20 = vld [vmem:[%s15850_s10 + $0x1a8] ss:$16 sps:$4 sm:$0xff]  }
 0x779   : > { %8402 = vmatprep.subr.bf16.mxu1 %v11716_v59  ;;  %v14755_v15 = vadd.f32 %v8108_v47, %v8068_v40  ;;  %v11773_v59 = vld [vmem:[%s15850_s10 + $0x1144] ss:$16 sps:$4 sm:$0xff]   ;;  %v11771_v40 = vld [vmem:[%s15850_s10 + $0x1140] ss:$16 sps:$4 sm:$0xff]   ;;  %v11782_v47 = vld [vmem:[%s15850_s10 + $0x16c] ss:$16 sps:$4 sm:$0xff]  }
 0x77a   : > { %v8110_v6 = vpop.f32.mrf.mxu1 }
 0x77b   : > { %8366 = vmatpush1.bf16.msra.mxu0 %v11711_v29  ;;  %8403 = vmatpush1.bf16.msra.mxu1 %v11714_v1  ;;  %v11774_v29 = vld [vmem:[%s15850_s10 + $0x188] ss:$16 sps:$4 sm:$0xff]   ;;  %v11779_v1 = vld [vmem:[%s15850_s10 + $0x1124] ss:$16 sps:$4 sm:$0xff]  }
 0x77c   : > { %8367 = vmatprep.subr.bf16.mxu0 %v11719_v0  ;;  %8404 = vmatprep.subr.bf16.mxu1 %v11722_v23  ;;  %v8111_v9 = vpop.f32.mrf.mxu1  ;;  %v11777_v0 = vld [vmem:[%s15850_s10 + $0x1120] ss:$16 sps:$4 sm:$0xff]   ;;  %v11780_v23 = vld [vmem:[%s15850_s10 + $0x168] ss:$16 sps:$4 sm:$0xff]   ;;  %v11785_v6 = vld [vmem:[%s15850_s10 + $0x1104] ss:$16 sps:$4 sm:$0xff]  }
 0x77d   : > { %v11794_v9 = vld [vmem:[%s15850_s10 + $0x2ec] ss:$16 sps:$4 sm:$0xff]  }
 0x77f   : > { %8368 = vmatpush1.bf16.msra.mxu0 %v11717_v60  ;;  %8405 = vmatpush1.bf16.msra.mxu1 %v11720_v33  ;;  %v11788_v60 = vld [vmem:[%s15850_s10 + $0x14c] ss:$16 sps:$4 sm:$0xff]   ;;  %v11783_v33 = vld [vmem:[%s15850_s10 + $0x1100] ss:$16 sps:$4 sm:$0xff]  }
 0x780   : > { %8369 = vmatprep.subr.bf16.mxu0 %v11725_v25  ;;  %8406 = vmatprep.subr.bf16.mxu1 %v11728_v50  ;;  %v11786_v25 = vld [vmem:[%s15850_s10 + $0x148] ss:$16 sps:$4 sm:$0xff]   ;;  %v11791_v50 = vld [vmem:[%s15850_s10 + $0x12c] ss:$16 sps:$4 sm:$0xff]  }
 0x783   : > { %8370 = vmatpush1.bf16.msra.mxu0 %v11723_v42  ;;  %8407 = vmatpush1.bf16.msra.mxu1 %v11726_v31  ;;  %v11789_v42 = vld [vmem:[%s15850_s10 + $0x128] ss:$16 sps:$4 sm:$0xff]  }
 0x784   : > { %8371 = vmatprep.subr.bf16.mxu0 %v11731_v41  ;;  %8408 = vmatprep.subr.bf16.mxu1 %v11734_v21  ;;  %v11792_v31 = vld [vmem:[%s15850_s10 + $0x2e8] ss:$16 sps:$4 sm:$0xff]   ;;  %v14909_v41 = vpack.c.bf16 %v14094_v62, %v14094_v62  ;;  %v11797_v21 = vld [vmem:[%s15850_s10 + $0x10c] ss:$16 sps:$4 sm:$0xff]  }
 0x785   : > { %v11795_v62 = vld [vmem:[%s15850_s10 + $0x108] ss:$16 sps:$4 sm:$0xff]  }
 0x787   : > { %8372 = vmatpush1.bf16.msra.mxu0 %v11729_v43  ;;  %8409 = vmatpush1.bf16.msra.mxu1 %v11732_v39  ;;  %v11800_v43 = vld [vmem:[%s15850_s10 + $0x2cc] ss:$16 sps:$4 sm:$0xff]  }
 0x788   : > { %8373 = vmatprep.subr.bf16.mxu0 %v11737_v53  ;;  %8410 = vmatprep.subr.bf16.mxu1 %v11740_v51  ;;  %v11798_v51 = vld [vmem:[%s15850_s10 + $0x2c8] ss:$16 sps:$4 sm:$0xff]  }
 0x78b   : > { %8374 = vmatpush1.bf16.msra.mxu0 %v11735_v52  ;;  %8411 = vmatpush1.bf16.msra.mxu1 %v11738_v26  ;;  %v11803_v26 = vld [vmem:[%s15850_s10 + $0x2ac] ss:$16 sps:$4 sm:$0xff]  }
 0x78c   : > { %8375 = vmatprep.subr.bf16.mxu0 %v11743_v36  ;;  %8412 = vmatprep.subr.bf16.mxu1 %v11746_v56 }
 0x78f   : > { %8376 = vmatpush2.bf16.msra.mxu0 %v11741_v46  ;;  %8413 = vmatpush1.bf16.msra.mxu1 %v11744_v37  ;;  %v11804_v46 = vld [vmem:[%s15850_s10 + $0x4e8] ss:$16 sps:$4 sm:$0xff]   ;;  %v11809_v37 = vld [vmem:[%s15850_s10 + $0x28c] ss:$16 sps:$4 sm:$0xff]  }
 0x790   : > { %8377 = vmatprep.subr.bf16.mxu0 %v11749_v13  ;;  %8414 = vmatprep.subr.bf16.mxu1 %v11752_v30 }
 0x793   : > { %8378 = vmatpush2.bf16.msra.mxu0 %v11747_v19  ;;  %8415 = vmatpush1.bf16.msra.mxu1 %v11750_v44  ;;  %v11807_v44 = vld [vmem:[%s15850_s10 + $0x288] ss:$16 sps:$4 sm:$0xff]  }
 0x794   : > { %8379 = vmatprep.subr.bf16.mxu0 %v11755_v34  ;;  %8416 = vmatprep.subr.bf16.mxu1 %v11758_v14  ;;  %v11810_v34 = vld [vmem:[%s15850_s10 + $0x4c8] ss:$16 sps:$4 sm:$0xff]  }
 0x797   : > { %8380 = vmatpush2.bf16.msra.mxu0 %v11753_v4  ;;  %8417 = vmatpush2.bf16.msra.mxu1 %v11756_v27  ;;  %v11818_v4 = vld [vmem:[%s15850_s10 + $0x4ac] ss:$16 sps:$4 sm:$0xff]  }
 0x798   : > { %8381 = vmatprep.subr.bf16.mxu0 %v11761_v54  ;;  %8418 = vmatprep.subr.bf16.mxu1 %v11764_v28  ;;  %v11816_v28 = vld [vmem:[%s15850_s10 + $0x4a8] ss:$16 sps:$4 sm:$0xff]  }
 0x79b   : > { %8382 = vmatpush2.bf16.msra.mxu0 %v11759_v18  ;;  %8419 = vmatpush2.bf16.msra.mxu1 %v11762_v61  ;;  %v11821_v18 = vld [vmem:[%s15850_s10 + $0x24c] ss:$16 sps:$4 sm:$0xff]  }
 0x79c   : > { %8383 = vmatprep.subr.bf16.mxu0 %v11767_v48  ;;  %8420 = vmatprep.subr.bf16.mxu1 %v11770_v8  ;;  %v11824_v61 = vld [vmem:[%s15850_s10 + $0x48c] ss:$16 sps:$4 sm:$0xff]   ;;  %v11819_v8 = vld [vmem:[%s15850_s10 + $0x248] ss:$16 sps:$4 sm:$0xff]  }
 0x79f   : > { %8384 = vmatpush2.bf16.msra.mxu0 %v11765_v2  ;;  %8421 = vmatpush2.bf16.msra.mxu1 %v11768_v20  ;;  %v11822_v2 = vld [vmem:[%s15850_s10 + $0x488] ss:$16 sps:$4 sm:$0xff]   ;;  %v11827_v20 = vld [vmem:[%s15850_s10 + $0x22c] ss:$16 sps:$4 sm:$0xff]  }
 0x7a0   : > { %8385 = vmatprep.subr.bf16.mxu0 %v11773_v59  ;;  %8422 = vmatprep.subr.bf16.mxu1 %v11776_v5  ;;  %v11830_v59 = vld [vmem:[%s15850_s10 + $0x46c] ss:$16 sps:$4 sm:$0xff]   ;;  %v11825_v5 = vld [vmem:[%s15850_s10 + $0x228] ss:$16 sps:$4 sm:$0xff]  }
 0x7a3   : > { %8386 = vmatpush2.bf16.msra.mxu0 %v11771_v40  ;;  %8423 = vmatpush2.bf16.msra.mxu1 %v11774_v29  ;;  %v11828_v40 = vld [vmem:[%s15850_s10 + $0x468] ss:$16 sps:$4 sm:$0xff]   ;;  %v11833_v29 = vld [vmem:[%s15850_s10 + $0x20c] ss:$16 sps:$4 sm:$0xff]  }
 0x7a4   : > { %8387 = vmatprep.subr.bf16.mxu0 %v11779_v1  ;;  %8424 = vmatprep.subr.bf16.mxu1 %v11782_v47  ;;  %v11836_v1 = vld [vmem:[%s15850_s10 + $0x44c] ss:$16 sps:$4 sm:$0xff]   ;;  %v11831_v47 = vld [vmem:[%s15850_s10 + $0x208] ss:$16 sps:$4 sm:$0xff]  }
 0x7a7   : > { %8388 = vmatpush2.bf16.msra.mxu0 %v11777_v0  ;;  %8425 = vmatpush2.bf16.msra.mxu1 %v11780_v23  ;;  %v11834_v0 = vld [vmem:[%s15850_s10 + $0x448] ss:$16 sps:$4 sm:$0xff]   ;;  %v11839_v23 = vld [vmem:[%s15850_s10 + $0x3ec] ss:$16 sps:$4 sm:$0xff]  }
 0x7a8   : > { %8389 = vmatprep.subr.bf16.mxu0 %v11785_v6  ;;  %8426 = vmatprep.subr.bf16.mxu1 %v11788_v60  ;;  %v11842_v6 = vld [vmem:[%s15850_s10 + $0x42c] ss:$16 sps:$4 sm:$0xff]   ;;  %v11837_v60 = vld [vmem:[%s15850_s10 + $0x3e8] ss:$16 sps:$4 sm:$0xff]  }
 0x7ab   : > { %8390 = vmatpush2.bf16.msra.mxu0 %v11783_v33  ;;  %8427 = vmatpush2.bf16.msra.mxu1 %v11786_v25  ;;  %v11840_v33 = vld [vmem:[%s15850_s10 + $0x428] ss:$16 sps:$4 sm:$0xff]   ;;  %v11845_v25 = vld [vmem:[%s15850_s10 + $0x3cc] ss:$16 sps:$4 sm:$0xff]  }
 0x7ac   : > { %8428 = vmatprep.subr.bf16.mxu1 %v11791_v50  ;;  %8441 = vmatprep.subr.bf16.mxu0 %v11794_v9  ;;  %v11848_v50 = vld [vmem:[%s15850_s10 + $0x40c] ss:$16 sps:$4 sm:$0xff]   ;;  %v11843_v9 = vld [vmem:[%s15850_s10 + $0x3c8] ss:$16 sps:$4 sm:$0xff]  }
 0x7ae   : > { %v8147_v39 = vpop.f32.mrf.mxu0  ;;  %8392 = vmatmul.mubr.bf16.vlgmr.msra.gmra.mxu0 %v14909_v41 }
 0x7af   : > { %v8148_v53 = vadd.f32 %v8147_v39, %v14746_v22  ;;  %8429 = vmatpush2.bf16.msra.mxu1 %v11789_v42  ;;  %8442 = vmatpush1.bf16.msra.mxu0 %v11792_v31  ;;  %v11806_v22 = vld [vmem:[%s15850_s10 + $0x4ec] ss:$16 sps:$4 sm:$0xff]   ;;  %v11846_v42 = vld [vmem:[%s15850_s10 + $0x408] ss:$16 sps:$4 sm:$0xff]  }
 0x7b0   : > { %8473 = vmatprep.mubr.bf16.mxu0 %v14062_v12  ;;  %v8149_v52 = vpop.f32.mrf.mxu0  ;;  %8430 = vmatprep.subr.bf16.mxu1 %v11797_v21  ;;  %v11801_v12 = vld [vmem:[%s15850_s10 + $0x2a8] ss:$16 sps:$4 sm:$0xff]   ;;  %v11851_v31 = vld [vmem:[%s15850_s10 + $0x3ac] ss:$16 sps:$4 sm:$0xff]  }
 0x7b1   : > { %v8150_v36 = vadd.f32 %v8149_v52, %v14755_v15  ;;  %8443 = vmatprep.subr.bf16.mxu0 %v11800_v43  ;;  %v11812_v15 = vld [vmem:[%s15850_s10 + $0x4cc] ss:$16 sps:$4 sm:$0xff]   ;;  %v11849_v43 = vld [vmem:[%s15850_s10 + $0x3a8] ss:$16 sps:$4 sm:$0xff]  }
 0x7b2   : > { %v8151_v56 = vpop.f32.mrf.mxu0  ;;  %v11854_v21 = vld [vmem:[%s15850_s10 + $0x5ec] ss:$16 sps:$4 sm:$0xff]   ;;  %v11852_v39 = vld [vmem:[%s15850_s10 + $0x5e8] ss:$16 sps:$4 sm:$0xff]  }
 0x7b3   : > { %8431 = vmatpush2.bf16.msra.mxu1 %v11795_v62  ;;  %8444 = vmatpush1.bf16.msra.mxu0 %v11798_v51  ;;  %v11860_v62 = vld [vmem:[%s15850_s10 + $0x5cc] ss:$16 sps:$4 sm:$0xff]   ;;  %v11855_v51 = vld [vmem:[%s15850_s10 + $0x388] ss:$16 sps:$4 sm:$0xff]  }
 0x7b4   : > { %8445 = vmatprep.subr.bf16.mxu0 %v11803_v26  ;;  %8482 = vmatprep.subr.bf16.mxu1 %v11806_v22  ;;  %v8152_v13 = vpop.f32.mrf.mxu0  ;;  %v11858_v52 = vld [vmem:[%s15850_s10 + $0x5c8] ss:$16 sps:$4 sm:$0xff]   ;;  %v11863_v26 = vld [vmem:[%s15850_s10 + $0x36c] ss:$16 sps:$4 sm:$0xff]  }
 0x7b5   : > { %v11866_v22 = vld [vmem:[%s15850_s10 + $0x5ac] ss:$16 sps:$4 sm:$0xff]   ;;  %v11864_v56 = vld [vmem:[%s15850_s10 + $0x5a8] ss:$16 sps:$4 sm:$0xff]  }
 0x7b6   : > { %v8188_v30 = vpop.f32.mrf.mxu1  ;;  %8433 = vmatmul.mubr.bf16.vlgmr.msra.gmra.mxu1 %v14045_v57  ;;  %v11815_v57 = vld [vmem:[%s15850_s10 + $0x26c] ss:$16 sps:$4 sm:$0xff]   ;;  %v11870_v13 = vld [vmem:[%s15850_s10 + $0x588] ss:$16 sps:$4 sm:$0xff]  }
 0x7b7   : > { %v14946_v19 = vadd.f32 %v8188_v30, %v8148_v53  ;;  %8446 = vmatpush1.bf16.msra.mxu0 %v11801_v12  ;;  %8483 = vmatpush1.bf16.msra.mxu1 %v11804_v46  ;;  %v11857_v53 = vld [vmem:[%s15850_s10 + $0x38c] ss:$16 sps:$4 sm:$0xff]  }
 0x7b8   : > { %8514 = vmatprep.mubr.bf16.mxu1 %v14104_v55  ;;  %v8190_v14 = vpop.f32.mrf.mxu1  ;;  %8447 = vmatprep.subr.bf16.mxu0 %v11809_v37  ;;  %v11813_v55 = vld [vmem:[%s15850_s10 + $0x268] ss:$16 sps:$4 sm:$0xff]   ;;  %v11869_v12 = vld [vmem:[%s15850_s10 + $0x34c] ss:$16 sps:$4 sm:$0xff]  }
 0x7b9   : > { %v14961_v27 = vadd.f32 %v8190_v14, %v8150_v36  ;;  %8484 = vmatprep.subr.bf16.mxu1 %v11812_v15  ;;  %v11861_v36 = vld [vmem:[%s15850_s10 + $0x368] ss:$16 sps:$4 sm:$0xff]   ;;  %v11872_v46 = vld [vmem:[%s15850_s10 + $0x58c] ss:$16 sps:$4 sm:$0xff]  }
 0x7ba   : > { %v8192_v54 = vpop.f32.mrf.mxu1  ;;  %v11867_v37 = vld [vmem:[%s15850_s10 + $0x348] ss:$16 sps:$4 sm:$0xff]   ;;  %v11875_v15 = vld [vmem:[%s15850_s10 + $0x32c] ss:$16 sps:$4 sm:$0xff]  }
 0x7bb   : > { %8448 = vmatpush1.bf16.msra.mxu0 %v11807_v44  ;;  %8485 = vmatpush1.bf16.msra.mxu1 %v11810_v34  ;;  %v11878_v30 = vld [vmem:[%s15850_s10 + $0x56c] ss:$16 sps:$4 sm:$0xff]   ;;  %v11873_v44 = vld [vmem:[%s15850_s10 + $0x328] ss:$16 sps:$4 sm:$0xff]  }
 0x7bc   : > { %8449 = vmatprep.subr.bf16.mxu0 %v11815_v57  ;;  %8486 = vmatprep.subr.bf16.mxu1 %v11818_v4  ;;  %v8193_v48 = vpop.f32.mrf.mxu1  ;;  %v11876_v34 = vld [vmem:[%s15850_s10 + $0x568] ss:$16 sps:$4 sm:$0xff]   ;;  %v11881_v14 = vld [vmem:[%s15850_s10 + $0x30c] ss:$16 sps:$4 sm:$0xff]  }
 0x7bd   : > { %v11884_v57 = vld [vmem:[%s15850_s10 + $0x54c] ss:$16 sps:$4 sm:$0xff]   ;;  %v11879_v4 = vld [vmem:[%s15850_s10 + $0x308] ss:$16 sps:$4 sm:$0xff]  }
 0x7be   : > { %v11882_v54 = vld [vmem:[%s15850_s10 + $0x548] ss:$16 sps:$4 sm:$0xff]   ;;  %v11893_v48 = vld [vmem:[%s15850_s10 + $0x50c] ss:$16 sps:$4 sm:$0xff]  }
 0x7bf   : > { %8450 = vmatpush1.bf16.msra.mxu0 %v11813_v55  ;;  %8487 = vmatpush1.bf16.msra.mxu1 %v11816_v28  ;;  %v11887_v55 = vld [vmem:[%s15850_s10 + $0x52c] ss:$16 sps:$4 sm:$0xff]  }
 0x7c0   : > { %8451 = vmatprep.subr.bf16.mxu0 %v11821_v18  ;;  %8488 = vmatprep.subr.bf16.mxu1 %v11824_v61  ;;  %v11890_v28 = vld [vmem:[%s15850_s10 + $0x6ec] ss:$16 sps:$4 sm:$0xff]   ;;  %v11885_v18 = vld [vmem:[%s15850_s10 + $0x528] ss:$16 sps:$4 sm:$0xff]  }
 0x7c1   : > { %v11888_v61 = vld [vmem:[%s15850_s10 + $0x6e8] ss:$16 sps:$4 sm:$0xff]  }
 0x7c3   : > { %8452 = vmatpush1.bf16.msra.mxu0 %v11819_v8  ;;  %8489 = vmatpush1.bf16.msra.mxu1 %v11822_v2  ;;  %v11896_v8 = vld [vmem:[%s15850_s10 + $0x6cc] ss:$16 sps:$4 sm:$0xff]  }
 0x7c4   : > { %8453 = vmatprep.subr.bf16.mxu0 %v11827_v20  ;;  %8490 = vmatprep.subr.bf16.mxu1 %v11830_v59  ;;  %v11891_v59 = vld [vmem:[%s15850_s10 + $0x508] ss:$16 sps:$4 sm:$0xff]  }
 0x7c7   : > { %8454 = vmatpush1.bf16.msra.mxu0 %v11825_v5  ;;  %8491 = vmatpush1.bf16.msra.mxu1 %v11828_v40  ;;  %v11894_v5 = vld [vmem:[%s15850_s10 + $0x6c8] ss:$16 sps:$4 sm:$0xff]  }
 0x7c8   : > { %8455 = vmatprep.subr.bf16.mxu0 %v11833_v29  ;;  %8492 = vmatprep.subr.bf16.mxu1 %v11836_v1 }
 0x7cb   : > { %8456 = vmatpush1.bf16.msra.mxu0 %v11831_v47  ;;  %8493 = vmatpush1.bf16.msra.mxu1 %v11834_v0  ;;  %v11900_v47 = vld [vmem:[%s15850_s10 + $0x8e8] ss:$16 sps:$4 sm:$0xff]  }
 0x7cc   : > { %8457 = vmatprep.subr.bf16.mxu0 %v11839_v23  ;;  %8494 = vmatprep.subr.bf16.mxu1 %v11842_v6  ;;  %v11905_v23 = vld [vmem:[%s15850_s10 + $0x68c] ss:$16 sps:$4 sm:$0xff]  }
 0x7cf   : > { %8458 = vmatpush2.bf16.msra.mxu0 %v11837_v60  ;;  %8495 = vmatpush1.bf16.msra.mxu1 %v11840_v33  ;;  %v11903_v33 = vld [vmem:[%s15850_s10 + $0x688] ss:$16 sps:$4 sm:$0xff]  }
 0x7d0   : > { %8459 = vmatprep.subr.bf16.mxu0 %v11845_v25  ;;  %8496 = vmatprep.subr.bf16.mxu1 %v11848_v50  ;;  %v11906_v25 = vld [vmem:[%s15850_s10 + $0x8c8] ss:$16 sps:$4 sm:$0xff]  }
 0x7d3   : > { %8460 = vmatpush2.bf16.msra.mxu0 %v11843_v9  ;;  %8497 = vmatpush1.bf16.msra.mxu1 %v11846_v42  ;;  %v11914_v9 = vld [vmem:[%s15850_s10 + $0x8ac] ss:$16 sps:$4 sm:$0xff]  }
 0x7d4   : > { %8461 = vmatprep.subr.bf16.mxu0 %v11851_v31  ;;  %8498 = vmatprep.subr.bf16.mxu1 %v11854_v21  ;;  %v11912_v21 = vld [vmem:[%s15850_s10 + $0x8a8] ss:$16 sps:$4 sm:$0xff]  }
 0x7d7   : > { %8462 = vmatpush2.bf16.msra.mxu0 %v11849_v43  ;;  %8499 = vmatpush2.bf16.msra.mxu1 %v11852_v39  ;;  %v11917_v39 = vld [vmem:[%s15850_s10 + $0x64c] ss:$16 sps:$4 sm:$0xff]  }
 0x7d8   : > { %8463 = vmatprep.subr.bf16.mxu0 %v11857_v53  ;;  %8500 = vmatprep.subr.bf16.mxu1 %v11860_v62  ;;  %v11920_v53 = vld [vmem:[%s15850_s10 + $0x88c] ss:$16 sps:$4 sm:$0xff]   ;;  %v11915_v62 = vld [vmem:[%s15850_s10 + $0x648] ss:$16 sps:$4 sm:$0xff]  }
 0x7db   : > { %8464 = vmatpush2.bf16.msra.mxu0 %v11855_v51  ;;  %8501 = vmatpush2.bf16.msra.mxu1 %v11858_v52  ;;  %v11918_v51 = vld [vmem:[%s15850_s10 + $0x888] ss:$16 sps:$4 sm:$0xff]   ;;  %v11923_v52 = vld [vmem:[%s15850_s10 + $0x62c] ss:$16 sps:$4 sm:$0xff]  }
 0x7dc   : > { %8465 = vmatprep.subr.bf16.mxu0 %v11863_v26  ;;  %8502 = vmatprep.subr.bf16.mxu1 %v11866_v22  ;;  %v11926_v26 = vld [vmem:[%s15850_s10 + $0x86c] ss:$16 sps:$4 sm:$0xff]   ;;  %v11921_v22 = vld [vmem:[%s15850_s10 + $0x628] ss:$16 sps:$4 sm:$0xff]  }
 0x7df   : > { %8466 = vmatpush2.bf16.msra.mxu0 %v11861_v36  ;;  %8503 = vmatpush2.bf16.msra.mxu1 %v11864_v56  ;;  %v11924_v36 = vld [vmem:[%s15850_s10 + $0x868] ss:$16 sps:$4 sm:$0xff]   ;;  %v11929_v56 = vld [vmem:[%s15850_s10 + $0x60c] ss:$16 sps:$4 sm:$0xff]  }
 0x7e0   : > { %8467 = vmatprep.subr.bf16.mxu0 %v11869_v12  ;;  %8504 = vmatprep.subr.bf16.mxu1 %v11872_v46  ;;  %v11932_v12 = vld [vmem:[%s15850_s10 + $0x84c] ss:$16 sps:$4 sm:$0xff]   ;;  %v11927_v46 = vld [vmem:[%s15850_s10 + $0x608] ss:$16 sps:$4 sm:$0xff]  }
 0x7e3   : > { %8468 = vmatpush2.bf16.msra.mxu0 %v11867_v37  ;;  %8505 = vmatpush2.bf16.msra.mxu1 %v11870_v13  ;;  %v11930_v37 = vld [vmem:[%s15850_s10 + $0x848] ss:$16 sps:$4 sm:$0xff]   ;;  %v11935_v13 = vld [vmem:[%s15850_s10 + $0x7ec] ss:$16 sps:$4 sm:$0xff]  }
 0x7e4   : > { %8469 = vmatprep.subr.bf16.mxu0 %v11875_v15  ;;  %8506 = vmatprep.subr.bf16.mxu1 %v11878_v30  ;;  %v11938_v15 = vld [vmem:[%s15850_s10 + $0x82c] ss:$16 sps:$4 sm:$0xff]   ;;  %v11933_v30 = vld [vmem:[%s15850_s10 + $0x7e8] ss:$16 sps:$4 sm:$0xff]  }
 0x7e7   : > { %8470 = vmatpush2.bf16.msra.mxu0 %v11873_v44  ;;  %8507 = vmatpush2.bf16.msra.mxu1 %v11876_v34  ;;  %v11936_v44 = vld [vmem:[%s15850_s10 + $0x828] ss:$16 sps:$4 sm:$0xff]   ;;  %v11941_v34 = vld [vmem:[%s15850_s10 + $0x7cc] ss:$16 sps:$4 sm:$0xff]  }
 0x7e8   : > { %8471 = vmatprep.subr.bf16.mxu0 %v11881_v14  ;;  %8508 = vmatprep.subr.bf16.mxu1 %v11884_v57  ;;  %v11944_v14 = vld [vmem:[%s15850_s10 + $0x80c] ss:$16 sps:$4 sm:$0xff]   ;;  %v11939_v57 = vld [vmem:[%s15850_s10 + $0x7c8] ss:$16 sps:$4 sm:$0xff]  }
 0x7eb   : > { %8472 = vmatpush2.bf16.msra.mxu0 %v11879_v4  ;;  %8509 = vmatpush2.bf16.msra.mxu1 %v11882_v54  ;;  %v11942_v4 = vld [vmem:[%s15850_s10 + $0x808] ss:$16 sps:$4 sm:$0xff]   ;;  %v11947_v54 = vld [vmem:[%s15850_s10 + $0x7ac] ss:$16 sps:$4 sm:$0xff]  }
 0x7ec   : > { %8510 = vmatprep.subr.bf16.mxu1 %v11887_v55  ;;  %8523 = vmatprep.subr.bf16.mxu0 %v11890_v28  ;;  %v11950_v55 = vld [vmem:[%s15850_s10 + $0x9ec] ss:$16 sps:$4 sm:$0xff]   ;;  %v11945_v28 = vld [vmem:[%s15850_s10 + $0x7a8] ss:$16 sps:$4 sm:$0xff]  }
 0x7ee   : > { %v8229_v2 = vpop.f32.mrf.mxu0  ;;  %8474 = vmatmul.mubr.bf16.vlgmr.msra.gmra.mxu0 %v14070_v32  ;;  %v11899_v32 = vld [vmem:[%s15850_s10 + $0x6ac] ss:$16 sps:$4 sm:$0xff]  }
 0x7ef   : > { %v8230_v20 = vadd.f32 %v8229_v2, %v14946_v19  ;;  %8511 = vmatpush2.bf16.msra.mxu1 %v11885_v18  ;;  %8524 = vmatpush1.bf16.msra.mxu0 %v11888_v61  ;;  %v11902_v19 = vld [vmem:[%s15850_s10 + $0x8ec] ss:$16 sps:$4 sm:$0xff]   ;;  %v11948_v18 = vld [vmem:[%s15850_s10 + $0x9e8] ss:$16 sps:$4 sm:$0xff]  }
 0x7f0   : > { %8555 = vmatprep.mubr.bf16.mxu0 %v14133_v35  ;;  %v8231_v40 = vpop.f32.mrf.mxu0  ;;  %8512 = vmatprep.subr.bf16.mxu1 %v11893_v48  ;;  %v11897_v35 = vld [vmem:[%s15850_s10 + $0x6a8] ss:$16 sps:$4 sm:$0xff]   ;;  %v11953_v61 = vld [vmem:[%s15850_s10 + $0x78c] ss:$16 sps:$4 sm:$0xff]  }
 0x7f1   : > { %v8232_v29 = vadd.f32 %v8231_v40, %v14961_v27  ;;  %8525 = vmatprep.subr.bf16.mxu0 %v11896_v8  ;;  %v11908_v27 = vld [vmem:[%s15850_s10 + $0x8cc] ss:$16 sps:$4 sm:$0xff]   ;;  %v11951_v8 = vld [vmem:[%s15850_s10 + $0x788] ss:$16 sps:$4 sm:$0xff]  }
 0x7f2   : > { %v8233_v1 = vpop.f32.mrf.mxu0  ;;  %v11956_v48 = vld [vmem:[%s15850_s10 + $0x9cc] ss:$16 sps:$4 sm:$0xff]   ;;  %v11954_v2 = vld [vmem:[%s15850_s10 + $0x9c8] ss:$16 sps:$4 sm:$0xff]  }
 0x7f3   : > { %8513 = vmatpush2.bf16.msra.mxu1 %v11891_v59  ;;  %8526 = vmatpush1.bf16.msra.mxu0 %v11894_v5  ;;  %v11962_v59 = vld [vmem:[%s15850_s10 + $0x9ac] ss:$16 sps:$4 sm:$0xff]   ;;  %v11957_v5 = vld [vmem:[%s15850_s10 + $0x768] ss:$16 sps:$4 sm:$0xff]  }
 0x7f4   : > { %8527 = vmatprep.subr.bf16.mxu0 %v11899_v32  ;;  %8564 = vmatprep.subr.bf16.mxu1 %v11902_v19  ;;  %v8234_v0 = vpop.f32.mrf.mxu0  ;;  %v11960_v40 = vld [vmem:[%s15850_s10 + $0x9a8] ss:$16 sps:$4 sm:$0xff]   ;;  %v11965_v32 = vld [vmem:[%s15850_s10 + $0x74c] ss:$16 sps:$4 sm:$0xff]  }
 0x7f5   : > { %v11968_v19 = vld [vmem:[%s15850_s10 + $0x98c] ss:$16 sps:$4 sm:$0xff]   ;;  %v11966_v1 = vld [vmem:[%s15850_s10 + $0x988] ss:$16 sps:$4 sm:$0xff]  }
 0x7f6   : > { %v8270_v6 = vpop.f32.mrf.mxu1  ;;  %8515 = vmatmul.mubr.bf16.vlgmr.msra.gmra.mxu1 %v14266_v58  ;;  %v11911_v58 = vld [vmem:[%s15850_s10 + $0x66c] ss:$16 sps:$4 sm:$0xff]   ;;  %v11969_v0 = vld [vmem:[%s15850_s10 + $0x728] ss:$16 sps:$4 sm:$0xff]  }
 0x7f7   : > { %v15148_v60 = vadd.f32 %v8270_v6, %v8230_v20  ;;  %8528 = vmatpush1.bf16.msra.mxu0 %v11897_v35  ;;  %8565 = vmatpush1.bf16.msra.mxu1 %v11900_v47  ;;  %v11959_v20 = vld [vmem:[%s15850_s10 + $0x76c] ss:$16 sps:$4 sm:$0xff]  }
 0x7f8   : > { %8596 = vmatprep.mubr.bf16.mxu1 %v14276_v7  ;;  %v8272_v50 = vpop.f32.mrf.mxu1  ;;  %8529 = vmatprep.subr.bf16.mxu0 %v11905_v23  ;;  %v11909_v7 = vld [vmem:[%s15850_s10 + $0x668] ss:$16 sps:$4 sm:$0xff]   ;;  %v11971_v35 = vld [vmem:[%s15850_s10 + $0x72c] ss:$16 sps:$4 sm:$0xff]  }
 0x7f9   : > { %v15163_v42 = vadd.f32 %v8272_v50, %v8232_v29  ;;  %8566 = vmatprep.subr.bf16.mxu1 %v11908_v27  ;;  %v11963_v29 = vld [vmem:[%s15850_s10 + $0x748] ss:$16 sps:$4 sm:$0xff]   ;;  %v11974_v47 = vld [vmem:[%s15850_s10 + $0x96c] ss:$16 sps:$4 sm:$0xff]  }
 0x7fa   : > { %v8274_v31 = vpop.f32.mrf.mxu1  ;;  %v11972_v23 = vld [vmem:[%s15850_s10 + $0x968] ss:$16 sps:$4 sm:$0xff]   ;;  %v11977_v27 = vld [vmem:[%s15850_s10 + $0x70c] ss:$16 sps:$4 sm:$0xff]  }
 0x7fb   : > { %8530 = vmatpush1.bf16.msra.mxu0 %v11903_v33  ;;  %8567 = vmatpush1.bf16.msra.mxu1 %v11906_v25  ;;  %v11980_v6 = vld [vmem:[%s15850_s10 + $0x94c] ss:$16 sps:$4 sm:$0xff]   ;;  %v11975_v33 = vld [vmem:[%s15850_s10 + $0x708] ss:$16 sps:$4 sm:$0xff]  }
 0x7fc   : > { %8531 = vmatprep.subr.bf16.mxu0 %v11911_v58  ;;  %8568 = vmatprep.subr.bf16.mxu1 %v11914_v9  ;;  %v8275_v43 = vpop.f32.mrf.mxu1  ;;  %v11978_v25 = vld [vmem:[%s15850_s10 + $0x948] ss:$16 sps:$4 sm:$0xff]   ;;  %v11983_v50 = vld [vmem:[%s15850_s10 + $0x92c] ss:$16 sps:$4 sm:$0xff]  }
 0x7fd   : > { %v11986_v58 = vld [vmem:[%s15850_s10 + $0xaec] ss:$16 sps:$4 sm:$0xff]   ;;  %v11981_v9 = vld [vmem:[%s15850_s10 + $0x928] ss:$16 sps:$4 sm:$0xff]  }
 0x7fe   : > { %v11984_v31 = vld [vmem:[%s15850_s10 + $0xae8] ss:$16 sps:$4 sm:$0xff]  }
 0x7ff   : > { %8532 = vmatpush1.bf16.msra.mxu0 %v11909_v7  ;;  %8569 = vmatpush1.bf16.msra.mxu1 %v11912_v21  ;;  %v11989_v7 = vld [vmem:[%s15850_s10 + $0x90c] ss:$16 sps:$4 sm:$0xff]  }
 0x800   : > { %8533 = vmatprep.subr.bf16.mxu0 %v11917_v39  ;;  %8570 = vmatprep.subr.bf16.mxu1 %v11920_v53  ;;  %v11992_v21 = vld [vmem:[%s15850_s10 + $0xacc] ss:$16 sps:$4 sm:$0xff]   ;;  %v11987_v53 = vld [vmem:[%s15850_s10 + $0x908] ss:$16 sps:$4 sm:$0xff]  }
 0x803   : > { %8534 = vmatpush1.bf16.msra.mxu0 %v11915_v62  ;;  %8571 = vmatpush1.bf16.msra.mxu1 %v11918_v51  ;;  %v11990_v62 = vld [vmem:[%s15850_s10 + $0xac8] ss:$16 sps:$4 sm:$0xff]  }
 0x804   : > { %8535 = vmatprep.subr.bf16.mxu0 %v11923_v52  ;;  %8572 = vmatprep.subr.bf16.mxu1 %v11926_v26 }
 0x807   : > { %8536 = vmatpush1.bf16.msra.mxu0 %v11921_v22  ;;  %8573 = vmatpush1.bf16.msra.mxu1 %v11924_v36  ;;  %v11996_v22 = vld [vmem:[%s15850_s10 + $0xce8] ss:$16 sps:$4 sm:$0xff]  }
 0x808   : > { %8537 = vmatprep.subr.bf16.mxu0 %v11929_v56  ;;  %8574 = vmatprep.subr.bf16.mxu1 %v11932_v12  ;;  %v12001_v56 = vld [vmem:[%s15850_s10 + $0xa8c] ss:$16 sps:$4 sm:$0xff]  }
 0x80b   : > { %8538 = vmatpush1.bf16.msra.mxu0 %v11927_v46  ;;  %8575 = vmatpush1.bf16.msra.mxu1 %v11930_v37  ;;  %v11999_v37 = vld [vmem:[%s15850_s10 + $0xa88] ss:$16 sps:$4 sm:$0xff]  }
 0x80c   : > { %8539 = vmatprep.subr.bf16.mxu0 %v11935_v13  ;;  %8576 = vmatprep.subr.bf16.mxu1 %v11938_v15  ;;  %v12002_v13 = vld [vmem:[%s15850_s10 + $0xcc8] ss:$16 sps:$4 sm:$0xff]  }
 0x80f   : > { %8540 = vmatpush2.bf16.msra.mxu0 %v11933_v30  ;;  %8577 = vmatpush1.bf16.msra.mxu1 %v11936_v44  ;;  %v12010_v30 = vld [vmem:[%s15850_s10 + $0xcac] ss:$16 sps:$4 sm:$0xff]  }
 0x810   : > { %8541 = vmatprep.subr.bf16.mxu0 %v11941_v34  ;;  %8578 = vmatprep.subr.bf16.mxu1 %v11944_v14  ;;  %v12008_v14 = vld [vmem:[%s15850_s10 + $0xca8] ss:$16 sps:$4 sm:$0xff]  }
 0x813   : > { %8542 = vmatpush2.bf16.msra.mxu0 %v11939_v57  ;;  %8579 = vmatpush1.bf16.msra.mxu1 %v11942_v4  ;;  %v12013_v4 = vld [vmem:[%s15850_s10 + $0xa4c] ss:$16 sps:$4 sm:$0xff]  }
 0x814   : > { %8543 = vmatprep.subr.bf16.mxu0 %v11947_v54  ;;  %8580 = vmatprep.subr.bf16.mxu1 %v11950_v55  ;;  %v12016_v54 = vld [vmem:[%s15850_s10 + $0xc8c] ss:$16 sps:$4 sm:$0xff]   ;;  %v12011_v55 = vld [vmem:[%s15850_s10 + $0xa48] ss:$16 sps:$4 sm:$0xff]  }
 0x817   : > { %8544 = vmatpush2.bf16.msra.mxu0 %v11945_v28  ;;  %8581 = vmatpush2.bf16.msra.mxu1 %v11948_v18  ;;  %v12014_v28 = vld [vmem:[%s15850_s10 + $0xc88] ss:$16 sps:$4 sm:$0xff]   ;;  %v12019_v18 = vld [vmem:[%s15850_s10 + $0xa2c] ss:$16 sps:$4 sm:$0xff]  }
 0x818   : > { %8545 = vmatprep.subr.bf16.mxu0 %v11953_v61  ;;  %8582 = vmatprep.subr.bf16.mxu1 %v11956_v48  ;;  %v12022_v61 = vld [vmem:[%s15850_s10 + $0xc6c] ss:$16 sps:$4 sm:$0xff]   ;;  %v12017_v48 = vld [vmem:[%s15850_s10 + $0xa28] ss:$16 sps:$4 sm:$0xff]  }
 0x81b   : > { %8546 = vmatpush2.bf16.msra.mxu0 %v11951_v8  ;;  %8583 = vmatpush2.bf16.msra.mxu1 %v11954_v2  ;;  %v12020_v8 = vld [vmem:[%s15850_s10 + $0xc68] ss:$16 sps:$4 sm:$0xff]   ;;  %v12025_v2 = vld [vmem:[%s15850_s10 + $0xa0c] ss:$16 sps:$4 sm:$0xff]  }
 0x81c   : > { %8547 = vmatprep.subr.bf16.mxu0 %v11959_v20  ;;  %8584 = vmatprep.subr.bf16.mxu1 %v11962_v59  ;;  %v12028_v20 = vld [vmem:[%s15850_s10 + $0xc4c] ss:$16 sps:$4 sm:$0xff]   ;;  %v12023_v59 = vld [vmem:[%s15850_s10 + $0xa08] ss:$16 sps:$4 sm:$0xff]  }
 0x81f   : > { %8548 = vmatpush2.bf16.msra.mxu0 %v11957_v5  ;;  %8585 = vmatpush2.bf16.msra.mxu1 %v11960_v40  ;;  %v12026_v5 = vld [vmem:[%s15850_s10 + $0xc48] ss:$16 sps:$4 sm:$0xff]   ;;  %v12031_v40 = vld [vmem:[%s15850_s10 + $0xbec] ss:$16 sps:$4 sm:$0xff]  }
 0x820   : > { %8549 = vmatprep.subr.bf16.mxu0 %v11965_v32  ;;  %8586 = vmatprep.subr.bf16.mxu1 %v11968_v19  ;;  %v12034_v32 = vld [vmem:[%s15850_s10 + $0xc2c] ss:$16 sps:$4 sm:$0xff]   ;;  %v12029_v19 = vld [vmem:[%s15850_s10 + $0xbe8] ss:$16 sps:$4 sm:$0xff]  }
 0x823   : > { %8550 = vmatpush2.bf16.msra.mxu0 %v11963_v29  ;;  %8587 = vmatpush2.bf16.msra.mxu1 %v11966_v1  ;;  %v12032_v29 = vld [vmem:[%s15850_s10 + $0xc28] ss:$16 sps:$4 sm:$0xff]   ;;  %v12037_v1 = vld [vmem:[%s15850_s10 + $0xbcc] ss:$16 sps:$4 sm:$0xff]  }
 0x824   : > { %8551 = vmatprep.subr.bf16.mxu0 %v11971_v35  ;;  %8588 = vmatprep.subr.bf16.mxu1 %v11974_v47  ;;  %v12040_v35 = vld [vmem:[%s15850_s10 + $0xc0c] ss:$16 sps:$4 sm:$0xff]   ;;  %v12035_v47 = vld [vmem:[%s15850_s10 + $0xbc8] ss:$16 sps:$4 sm:$0xff]  }
 0x827   : > { %8552 = vmatpush2.bf16.msra.mxu0 %v11969_v0  ;;  %8589 = vmatpush2.bf16.msra.mxu1 %v11972_v23  ;;  %v12038_v0 = vld [vmem:[%s15850_s10 + $0xc08] ss:$16 sps:$4 sm:$0xff]   ;;  %v12043_v23 = vld [vmem:[%s15850_s10 + $0xbac] ss:$16 sps:$4 sm:$0xff]  }
 0x828   : > { %8553 = vmatprep.subr.bf16.mxu0 %v11977_v27  ;;  %8590 = vmatprep.subr.bf16.mxu1 %v11980_v6  ;;  %v12046_v27 = vld [vmem:[%s15850_s10 + $0xdec] ss:$16 sps:$4 sm:$0xff]   ;;  %v12041_v6 = vld [vmem:[%s15850_s10 + $0xba8] ss:$16 sps:$4 sm:$0xff]  }
 0x82b   : > { %8554 = vmatpush2.bf16.msra.mxu0 %v11975_v33  ;;  %8591 = vmatpush2.bf16.msra.mxu1 %v11978_v25  ;;  %v12044_v33 = vld [vmem:[%s15850_s10 + $0xde8] ss:$16 sps:$4 sm:$0xff]   ;;  %v12049_v25 = vld [vmem:[%s15850_s10 + $0xb8c] ss:$16 sps:$4 sm:$0xff]  }
 0x82c   : > { %8592 = vmatprep.subr.bf16.mxu1 %v11983_v50  ;;  %8605 = vmatprep.subr.bf16.mxu0 %v11986_v58  ;;  %v12052_v50 = vld [vmem:[%s15850_s10 + $0xdcc] ss:$16 sps:$4 sm:$0xff]   ;;  %v12047_v58 = vld [vmem:[%s15850_s10 + $0xb88] ss:$16 sps:$4 sm:$0xff]  }
 0x82e   : > { %v8311_v43 = vpop.f32.mrf.mxu0  ;;  %8556 = vmatmul.mubr.bf16.vlgmr.msra.gmra.mxu0 %v14300_v24  ;;  %v11995_v24 = vld [vmem:[%s15850_s10 + $0xaac] ss:$16 sps:$4 sm:$0xff]  }
 0x82f   : > { %v8312_v39 = vadd.f32 %v8311_v43, %v15148_v60  ;;  %8593 = vmatpush2.bf16.msra.mxu1 %v11981_v9  ;;  %8606 = vmatpush1.bf16.msra.mxu0 %v11984_v31  ;;  %v11998_v60 = vld [vmem:[%s15850_s10 + $0xcec] ss:$16 sps:$4 sm:$0xff]   ;;  %v12050_v9 = vld [vmem:[%s15850_s10 + $0xdc8] ss:$16 sps:$4 sm:$0xff]  }
 0x830   : > { %8637 = vmatprep.mubr.bf16.mxu0 %v14310_v38  ;;  %v8313_v51 = vpop.f32.mrf.mxu0  ;;  %8594 = vmatprep.subr.bf16.mxu1 %v11989_v7  ;;  %v11993_v38 = vld [vmem:[%s15850_s10 + $0xaa8] ss:$16 sps:$4 sm:$0xff]   ;;  %v12055_v31 = vld [vmem:[%s15850_s10 + $0xb6c] ss:$16 sps:$4 sm:$0xff]  }
 0x831   : > { %v8314_v52 = vadd.f32 %v8313_v51, %v15163_v42  ;;  %8607 = vmatprep.subr.bf16.mxu0 %v11992_v21  ;;  %v12004_v42 = vld [vmem:[%s15850_s10 + $0xccc] ss:$16 sps:$4 sm:$0xff]   ;;  %v12053_v21 = vld [vmem:[%s15850_s10 + $0xb68] ss:$16 sps:$4 sm:$0xff]  }
 0x832   : > { %v8315_v26 = vpop.f32.mrf.mxu0  ;;  %v12058_v7 = vld [vmem:[%s15850_s10 + $0xdac] ss:$16 sps:$4 sm:$0xff]   ;;  %v12056_v43 = vld [vmem:[%s15850_s10 + $0xda8] ss:$16 sps:$4 sm:$0xff]  }
 0x833   : > { %8595 = vmatpush2.bf16.msra.mxu1 %v11987_v53  ;;  %8608 = vmatpush1.bf16.msra.mxu0 %v11990_v62  ;;  %v12064_v53 = vld [vmem:[%s15850_s10 + $0xd8c] ss:$16 sps:$4 sm:$0xff]   ;;  %v12059_v62 = vld [vmem:[%s15850_s10 + $0xb48] ss:$16 sps:$4 sm:$0xff]  }
 0x834   : > { %v8316_v36 = vpop.f32.mrf.mxu0  ;;  %8609 = vmatprep.subr.bf16.mxu0 %v11995_v24  ;;  %8646 = vmatprep.subr.bf16.mxu1 %v11998_v60  ;;  %v12062_v51 = vld [vmem:[%s15850_s10 + $0xd88] ss:$16 sps:$4 sm:$0xff]   ;;  %v12067_v24 = vld [vmem:[%s15850_s10 + $0xb2c] ss:$16 sps:$4 sm:$0xff]  }
 0x835   : > { %v12070_v60 = vld [vmem:[%s15850_s10 + $0xd6c] ss:$16 sps:$4 sm:$0xff]   ;;  %v12068_v26 = vld [vmem:[%s15850_s10 + $0xd68] ss:$16 sps:$4 sm:$0xff]  }
 0x836   : > { %v8352_v12 = vpop.f32.mrf.mxu1  ;;  %8597 = vmatmul.mubr.bf16.vlgmr.msra.gmra.mxu1 %v14478_v16  ;;  %v12007_v16 = vld [vmem:[%s15850_s10 + $0xa6c] ss:$16 sps:$4 sm:$0xff]   ;;  %v12071_v36 = vld [vmem:[%s15850_s10 + $0xb08] ss:$16 sps:$4 sm:$0xff]  }
 0x837   : > { %v15350_v46 = vadd.f32 %v8352_v12, %v8312_v39  ;;  %8610 = vmatpush1.bf16.msra.mxu0 %v11993_v38  ;;  %8647 = vmatpush1.bf16.msra.mxu1 %v11996_v22  ;;  %v12061_v39 = vld [vmem:[%s15850_s10 + $0xb4c] ss:$16 sps:$4 sm:$0xff]  }
 0x838   : > { %8678 = vmatprep.mubr.bf16.mxu1 %v14488_v63  ;;  %v8354_v15 = vpop.f32.mrf.mxu1  ;;  %8611 = vmatprep.subr.bf16.mxu0 %v12001_v56  ;;  %v12005_v63 = vld [vmem:[%s15850_s10 + $0xa68] ss:$16 sps:$4 sm:$0xff]   ;;  %v12073_v38 = vld [vmem:[%s15850_s10 + $0xb0c] ss:$16 sps:$4 sm:$0xff]  }
 0x839   : > { %v15365_v44 = vadd.f32 %v8354_v15, %v8314_v52  ;;  %8648 = vmatprep.subr.bf16.mxu1 %v12004_v42  ;;  %v12065_v52 = vld [vmem:[%s15850_s10 + $0xb28] ss:$16 sps:$4 sm:$0xff]   ;;  %v12076_v22 = vld [vmem:[%s15850_s10 + $0xd4c] ss:$16 sps:$4 sm:$0xff]  }
 0x83a   : > { %v8356_v34 = vpop.f32.mrf.mxu1  ;;  %v12074_v56 = vld [vmem:[%s15850_s10 + $0xd48] ss:$16 sps:$4 sm:$0xff]   ;;  %v12079_v42 = vld [vmem:[%s15850_s10 + $0xd2c] ss:$16 sps:$4 sm:$0xff]  }
 0x83b   : > { %8612 = vmatpush1.bf16.msra.mxu0 %v11999_v37  ;;  %8649 = vmatpush1.bf16.msra.mxu1 %v12002_v13  ;;  %v12082_v12 = vld [vmem:[%s15850_s10 + $0xeec] ss:$16 sps:$4 sm:$0xff]   ;;  %v12077_v37 = vld [vmem:[%s15850_s10 + $0xd28] ss:$16 sps:$4 sm:$0xff]  }
 0x83c   : > { %v8357_v57 = vpop.f32.mrf.mxu1  ;;  %8613 = vmatprep.subr.bf16.mxu0 %v12007_v16  ;;  %8650 = vmatprep.subr.bf16.mxu1 %v12010_v30  ;;  %v12080_v13 = vld [vmem:[%s15850_s10 + $0xee8] ss:$16 sps:$4 sm:$0xff]   ;;  %v12085_v15 = vld [vmem:[%s15850_s10 + $0xd0c] ss:$16 sps:$4 sm:$0xff]  }
 0x83d   : > { %v12088_v16 = vld [vmem:[%s15850_s10 + $0xecc] ss:$16 sps:$4 sm:$0xff]  }
 0x83f   : > { %8614 = vmatpush1.bf16.msra.mxu0 %v12005_v63  ;;  %8651 = vmatpush1.bf16.msra.mxu1 %v12008_v14  ;;  %v12083_v63 = vld [vmem:[%s15850_s10 + $0xd08] ss:$16 sps:$4 sm:$0xff]  }
 0x840   : > { %8615 = vmatprep.subr.bf16.mxu0 %v12013_v4  ;;  %8652 = vmatprep.subr.bf16.mxu1 %v12016_v54  ;;  %v12086_v14 = vld [vmem:[%s15850_s10 + $0xec8] ss:$16 sps:$4 sm:$0xff]  }
 0x841   : > { %v12089_v54 = vld [vmem:[%s15850_s10 + $0xea8] ss:$16 sps:$4 sm:$0xff]  }
 0x843   : > { %8616 = vmatpush1.bf16.msra.mxu0 %v12011_v55  ;;  %8653 = vmatpush1.bf16.msra.mxu1 %v12014_v28  ;;  %v12097_v28 = vld [vmem:[%s15850_s10 + $0xe8c] ss:$16 sps:$4 sm:$0xff]  }
 0x844   : > { %8617 = vmatprep.subr.bf16.mxu0 %v12019_v18  ;;  %8654 = vmatprep.subr.bf16.mxu1 %v12022_v61  ;;  %v12100_v18 = vld [vmem:[%s15850_s10 + $0x10cc] ss:$16 sps:$4 sm:$0xff]  }
 0x847   : > { %8618 = vmatpush1.bf16.msra.mxu0 %v12017_v48  ;;  %8655 = vmatpush1.bf16.msra.mxu1 %v12020_v8  ;;  %v12095_v48 = vld [vmem:[%s15850_s10 + $0xe88] ss:$16 sps:$4 sm:$0xff]  }
 0x848   : > { %8619 = vmatprep.subr.bf16.mxu0 %v12025_v2  ;;  %8656 = vmatprep.subr.bf16.mxu1 %v12028_v20  ;;  %v12098_v8 = vld [vmem:[%s15850_s10 + $0x10c8] ss:$16 sps:$4 sm:$0xff]   ;;  %v12103_v20 = vld [vmem:[%s15850_s10 + $0xe6c] ss:$16 sps:$4 sm:$0xff]  }
 0x84b   : > { %8620 = vmatpush1.bf16.msra.mxu0 %v12023_v59  ;;  %8657 = vmatpush1.bf16.msra.mxu1 %v12026_v5  ;;  %v12101_v5 = vld [vmem:[%s15850_s10 + $0xe68] ss:$16 sps:$4 sm:$0xff]  }
 0x84c   : > { %8621 = vmatprep.subr.bf16.mxu0 %v12031_v40  ;;  %8658 = vmatprep.subr.bf16.mxu1 %v12034_v32  ;;  %v12109_v32 = vld [vmem:[%s15850_s10 + $0xe4c] ss:$16 sps:$4 sm:$0xff]  }
 0x84f   : > { %8622 = vmatpush2.bf16.msra.mxu0 %v12029_v19  ;;  %8659 = vmatpush1.bf16.msra.mxu1 %v12032_v29  ;;  %v12112_v19 = vld [vmem:[%s15850_s10 + $0x108c] ss:$16 sps:$4 sm:$0xff]   ;;  %v12107_v29 = vld [vmem:[%s15850_s10 + $0xe48] ss:$16 sps:$4 sm:$0xff]  }
 0x850   : > { %8623 = vmatprep.subr.bf16.mxu0 %v12037_v1  ;;  %8660 = vmatprep.subr.bf16.mxu1 %v12040_v35  ;;  %v12110_v1 = vld [vmem:[%s15850_s10 + $0x1088] ss:$16 sps:$4 sm:$0xff]   ;;  %v12115_v35 = vld [vmem:[%s15850_s10 + $0xe2c] ss:$16 sps:$4 sm:$0xff]  }
 0x853   : > { %8624 = vmatpush2.bf16.msra.mxu0 %v12035_v47  ;;  %8661 = vmatpush1.bf16.msra.mxu1 %v12038_v0  ;;  %v12118_v47 = vld [vmem:[%s15850_s10 + $0x106c] ss:$16 sps:$4 sm:$0xff]   ;;  %v12113_v0 = vld [vmem:[%s15850_s10 + $0xe28] ss:$16 sps:$4 sm:$0xff]  }
 0x854   : > { %8625 = vmatprep.subr.bf16.mxu0 %v12043_v23  ;;  %8662 = vmatprep.subr.bf16.mxu1 %v12046_v27  ;;  %v12116_v23 = vld [vmem:[%s15850_s10 + $0x1068] ss:$16 sps:$4 sm:$0xff]   ;;  %v12121_v27 = vld [vmem:[%s15850_s10 + $0xe0c] ss:$16 sps:$4 sm:$0xff]  }
 0x857   : > { %8626 = vmatpush2.bf16.msra.mxu0 %v12041_v6  ;;  %8663 = vmatpush2.bf16.msra.mxu1 %v12044_v33  ;;  %v12124_v6 = vld [vmem:[%s15850_s10 + $0x104c] ss:$16 sps:$4 sm:$0xff]   ;;  %v12119_v33 = vld [vmem:[%s15850_s10 + $0xe08] ss:$16 sps:$4 sm:$0xff]  }
 0x858   : > { %8627 = vmatprep.subr.bf16.mxu0 %v12049_v25  ;;  %8664 = vmatprep.subr.bf16.mxu1 %v12052_v50  ;;  %v12122_v25 = vld [vmem:[%s15850_s10 + $0x1048] ss:$16 sps:$4 sm:$0xff]   ;;  %v12127_v50 = vld [vmem:[%s15850_s10 + $0xfec] ss:$16 sps:$4 sm:$0xff]  }
 0x85b   : > { %8628 = vmatpush2.bf16.msra.mxu0 %v12047_v58  ;;  %8665 = vmatpush2.bf16.msra.mxu1 %v12050_v9  ;;  %v12130_v58 = vld [vmem:[%s15850_s10 + $0x102c] ss:$16 sps:$4 sm:$0xff]   ;;  %v12125_v9 = vld [vmem:[%s15850_s10 + $0xfe8] ss:$16 sps:$4 sm:$0xff]  }
 0x85c   : > { %8629 = vmatprep.subr.bf16.mxu0 %v12055_v31  ;;  %8666 = vmatprep.subr.bf16.mxu1 %v12058_v7  ;;  %v12128_v31 = vld [vmem:[%s15850_s10 + $0x1028] ss:$16 sps:$4 sm:$0xff]   ;;  %v12133_v7 = vld [vmem:[%s15850_s10 + $0xfcc] ss:$16 sps:$4 sm:$0xff]  }
 0x85f   : > { %8630 = vmatpush2.bf16.msra.mxu0 %v12053_v21  ;;  %8667 = vmatpush2.bf16.msra.mxu1 %v12056_v43  ;;  %v12136_v21 = vld [vmem:[%s15850_s10 + $0x100c] ss:$16 sps:$4 sm:$0xff]   ;;  %v12131_v43 = vld [vmem:[%s15850_s10 + $0xfc8] ss:$16 sps:$4 sm:$0xff]  }
 0x860   : > { %8631 = vmatprep.subr.bf16.mxu0 %v12061_v39  ;;  %8668 = vmatprep.subr.bf16.mxu1 %v12064_v53  ;;  %v12134_v39 = vld [vmem:[%s15850_s10 + $0x1008] ss:$16 sps:$4 sm:$0xff]   ;;  %v12139_v53 = vld [vmem:[%s15850_s10 + $0xfac] ss:$16 sps:$4 sm:$0xff]  }
 0x863   : > { %8632 = vmatpush2.bf16.msra.mxu0 %v12059_v62  ;;  %8669 = vmatpush2.bf16.msra.mxu1 %v12062_v51  ;;  %v12142_v62 = vld [vmem:[%s15850_s10 + $0x11ec] ss:$16 sps:$4 sm:$0xff]   ;;  %v12137_v51 = vld [vmem:[%s15850_s10 + $0xfa8] ss:$16 sps:$4 sm:$0xff]  }
 0x864   : > { %8633 = vmatprep.subr.bf16.mxu0 %v12067_v24  ;;  %8670 = vmatprep.subr.bf16.mxu1 %v12070_v60  ;;  %v12140_v24 = vld [vmem:[%s15850_s10 + $0x11e8] ss:$16 sps:$4 sm:$0xff]   ;;  %v12145_v60 = vld [vmem:[%s15850_s10 + $0xf8c] ss:$16 sps:$4 sm:$0xff]  }
 0x867   : > { %8634 = vmatpush2.bf16.msra.mxu0 %v12065_v52  ;;  %8671 = vmatpush2.bf16.msra.mxu1 %v12068_v26  ;;  %v12148_v52 = vld [vmem:[%s15850_s10 + $0x11cc] ss:$16 sps:$4 sm:$0xff]   ;;  %v12143_v26 = vld [vmem:[%s15850_s10 + $0xf88] ss:$16 sps:$4 sm:$0xff]  }
 0x868   : > { %8635 = vmatprep.subr.bf16.mxu0 %v12073_v38  ;;  %8672 = vmatprep.subr.bf16.mxu1 %v12076_v22  ;;  %v12146_v38 = vld [vmem:[%s15850_s10 + $0x11c8] ss:$16 sps:$4 sm:$0xff]   ;;  %v12151_v22 = vld [vmem:[%s15850_s10 + $0xf6c] ss:$16 sps:$4 sm:$0xff]  }
 0x86b   : > { %8636 = vmatpush2.bf16.msra.mxu0 %v12071_v36  ;;  %8673 = vmatpush2.bf16.msra.mxu1 %v12074_v56  ;;  %v12154_v36 = vld [vmem:[%s15850_s10 + $0x11ac] ss:$16 sps:$4 sm:$0xff]   ;;  %v12149_v56 = vld [vmem:[%s15850_s10 + $0xf68] ss:$16 sps:$4 sm:$0xff]  }
 0x86c   : > { %8674 = vmatprep.subr.bf16.mxu1 %v12079_v42  ;;  %8687 = vmatprep.subr.bf16.mxu0 %v12082_v12  ;;  %v12152_v42 = vld [vmem:[%s15850_s10 + $0x11a8] ss:$16 sps:$4 sm:$0xff]   ;;  %v12157_v12 = vld [vmem:[%s15850_s10 + $0xf4c] ss:$16 sps:$4 sm:$0xff]  }
 0x86e   : > { %v8393_v30 = vpop.f32.mrf.mxu0  ;;  %8638 = vmatmul.mubr.bf16.vlgmr.msra.gmra.mxu0 %v14512_v10  ;;  %v12091_v10 = vld [vmem:[%s15850_s10 + $0xeac] ss:$16 sps:$4 sm:$0xff]  }
 0x86f   : > { %v15525_v34 = vadd.f32 %v8393_v30, %v15350_v46  ;;  %8675 = vmatpush2.bf16.msra.mxu1 %v12077_v37  ;;  %8688 = vmatpush1.bf16.msra.mxu0 %v12080_v13  ;;  %v12094_v46 = vld [vmem:[%s15850_s10 + $0x10ec] ss:$16 sps:$4 sm:$0xff]   ;;  %v12155_v13 = vld [vmem:[%s15850_s10 + $0xf48] ss:$16 sps:$4 sm:$0xff]  }
 0x870   : > { %8719 = vmatprep.mubr.bf16.mxu0 %v14522_v17  ;;  %v15534_v57 = vpop.f32.mrf.mxu0  ;;  %8676 = vmatprep.subr.bf16.mxu1 %v12085_v15  ;;  %v12092_v17 = vld [vmem:[%s15850_s10 + $0x10e8] ss:$16 sps:$4 sm:$0xff]   ;;  %v12160_v37 = vld [vmem:[%s15850_s10 + $0x118c] ss:$16 sps:$4 sm:$0xff]  }
 0x871   : > { %8689 = vmatprep.subr.bf16.mxu0 %v12088_v16  ;;  %v12158_v15 = vld [vmem:[%s15850_s10 + $0x1188] ss:$16 sps:$4 sm:$0xff]   ;;  %v12163_v16 = vld [vmem:[%s15850_s10 + $0xf2c] ss:$16 sps:$4 sm:$0xff]  }
 0x872   : > { %v8397_v4 = vpop.f32.mrf.mxu0  ;;  %v12166_v30 = vld [vmem:[%s15850_s10 + $0x116c] ss:$16 sps:$4 sm:$0xff]  }
 0x873   : > { %8677 = vmatpush2.bf16.msra.mxu1 %v12083_v63  ;;  %8690 = vmatpush1.bf16.msra.mxu0 %v12086_v14  ;;  %v12161_v63 = vld [vmem:[%s15850_s10 + $0xf28] ss:$16 sps:$4 sm:$0xff]   ;;  %v5141_v4 = vsub.s32 2, %v13784_v45 }
 0x874   : > { %v8398_v55 = vpop.f32.mrf.mxu0  ;;  %8691 = vmatprep.subr.bf16.mxu0 %v12091_v10  ;;  %8728 = vmatprep.subr.bf16.mxu1 %v12094_v46  ;;  %v12164_v14 = vld [vmem:[%s15850_s10 + $0x1168] ss:$16 sps:$4 sm:$0xff]   ;;  %v12169_v10 = vld [vmem:[%s15850_s10 + $0xf0c] ss:$16 sps:$4 sm:$0xff]  }
 0x875   : > { %v12172_v46 = vld [vmem:[%s15850_s10 + $0x114c] ss:$16 sps:$4 sm:$0xff]   ;;  %v12167_v55 = vld [vmem:[%s15850_s10 + $0xf08] ss:$16 sps:$4 sm:$0xff]  }
 0x876   : > { %v15554_v61 = vpop.f32.mrf.mxu1  ;;  %8679 = vmatmul.mubr.bf16.vlgmr.msra.gmra.mxu1 %v14690_v3  ;;  %v12106_v3 = vld [vmem:[%s15850_s10 + $0x10ac] ss:$16 sps:$4 sm:$0xff]  }
 0x877   : > { %8692 = vmatpush1.bf16.msra.mxu0 %v12089_v54  ;;  %8729 = vmatpush1.bf16.msra.mxu1 %v12092_v17  ;;  %v8396_v54 = vadd.f32 %v15534_v57, %v15365_v44  ;;  %v5145_v17 = vsub.s32 3, %v13784_v45  ;;  %v12176_v45 = vld [vmem:[%s15852_s12 + $0x78] sm:$0xff]   ;;  %v12211_v44 = vld [vmem:[%s15851_s11] sm:$0xf] }
 0x878   : > { %8760 = vmatprep.mubr.bf16.mxu1 %v14700_v11  ;;  %v15564_v2 = vpop.f32.mrf.mxu1  ;;  %8693 = vmatprep.subr.bf16.mxu0 %v12097_v28  ;;  %v12104_v11 = vld [vmem:[%s15850_s10 + $0x10a8] ss:$16 sps:$4 sm:$0xff]   ;;  %v5142_v57 = vrot.slane %v12211_v44, %v5141_v4 }
 0x879   : > { %8730 = vmatprep.subr.bf16.mxu1 %v12100_v18  ;;  %v12170_v28 = vld [vmem:[%s15850_s10 + $0x1148] ss:$16 sps:$4 sm:$0xff]   ;;  %v12175_v18 = vld [vmem:[%s15850_s10 + $0x112c] ss:$16 sps:$4 sm:$0xff]  }
 0x87a   : > { %v8438_v59 = vpop.f32.mrf.mxu1 }
 0x87b   : > { %8694 = vmatpush1.bf16.msra.mxu0 %v12095_v48  ;;  %8731 = vmatpush1.bf16.msra.mxu1 %v12098_v8  ;;  %v8770_v48 = vmax.f32 %v8396_v54, 0.0  ;;  %v5146_v8 = vrot.slane %v12211_v44, %v5145_v17  ;;  %v12180_v59 = vld [vmem:[%s15850_s10 + $0x110c] ss:$16 sps:$4 sm:$0xff]   ;;  %v12209_v44 = vld [vmem:[%s15852_s12 + $0xc0] sm:$0xff]  }
 0x87c   : > { %v8439_v40 = vpop.f32.mrf.mxu1  ;;  %8695 = vmatprep.subr.bf16.mxu0 %v12103_v20  ;;  %8732 = vmatprep.subr.bf16.mxu1 %v12106_v3  ;;  %v12173_v20 = vld [vmem:[%s15850_s10 + $0x1128] ss:$16 sps:$4 sm:$0xff]  }
 0x87d   : > { %v12177_v3 = vld [vmem:[%s15852_s12 + $0x38] sm:$0xff]   ;;  %v8774_v40 = vpack.c.bf16 %v8770_v48, %v8770_v48  ;;  %v12207_v17 = vld [vmem:[%s15852_s12 + $0xc8] sm:$0xff]   ;;  %v12210_v48 = vld [vmem:[%s15852_s12 + $0x80] sm:$0xff]  }
 0x87f   : > { %8696 = vmatpush1.bf16.msra.mxu0 %v12101_v5  ;;  %8733 = vmatpush1.bf16.msra.mxu1 %v12104_v11  ;;  %v8435_v5 = vadd.f32 %v15554_v61, %v5142_v57  ;;  %v12181_v11 = vld [vmem:[%s15852_s12 + $0x70] sm:$0xff]  }
 0x880   : > { %8697 = vmatprep.subr.bf16.mxu0 %v12109_v32  ;;  %8734 = vmatprep.subr.bf16.mxu1 %v12112_v19  ;;  %v8437_v19 = vadd.f32 %v15564_v2, %v5146_v8  ;;  %v12182_v61 = vld [vmem:[%s15852_s12 + $0x30] sm:$0xff]  }
 0x883   : > { %8698 = vmatpush1.bf16.msra.mxu0 %v12107_v29  ;;  %8735 = vmatpush1.bf16.msra.mxu1 %v12110_v1  ;;  %v12178_v1 = vld [vmem:[%s15850_s10 + $0x1108] ss:$16 sps:$4 sm:$0xff]  }
 0x884   : > { %8699 = vmatprep.subr.bf16.mxu0 %v12115_v35  ;;  %8736 = vmatprep.subr.bf16.mxu1 %v12118_v47 }
 0x887   : > { %8700 = vmatpush1.bf16.msra.mxu0 %v12113_v0  ;;  %8737 = vmatpush1.bf16.msra.mxu1 %v12116_v23  ;;  %v12184_v0 = vld [vmem:[%s15852_s12 + $0x28] sm:$0xff]  }
 0x888   : > { %8701 = vmatprep.subr.bf16.mxu0 %v12121_v27  ;;  %8738 = vmatprep.subr.bf16.mxu1 %v12124_v6  ;;  %v12185_v27 = vld [vmem:[%s15852_s12 + $0x60] sm:$0xff]  }
 0x88b   : > { %8702 = vmatpush1.bf16.msra.mxu0 %v12119_v33  ;;  %8739 = vmatpush1.bf16.msra.mxu1 %v12122_v25  ;;  %v12186_v25 = vld [vmem:[%s15852_s12 + $0x20] sm:$0xff]  }
 0x88c   : > { %8703 = vmatprep.subr.bf16.mxu0 %v12127_v50  ;;  %8740 = vmatprep.subr.bf16.mxu1 %v12130_v58  ;;  %v12187_v58 = vld [vmem:[%s15852_s12 + $0x58] sm:$0xff]  }
 0x88f   : > { %8704 = vmatpush2.bf16.msra.mxu0 %v12125_v9  ;;  %8741 = vmatpush1.bf16.msra.mxu1 %v12128_v31 }
 0x890   : > { %8705 = vmatprep.subr.bf16.mxu0 %v12133_v7  ;;  %8742 = vmatprep.subr.bf16.mxu1 %v12136_v21  ;;  %v12188_v7 = vld [vmem:[%s15852_s12 + $0x18] sm:$0xff]  }
 0x893   : > { %8706 = vmatpush2.bf16.msra.mxu0 %v12131_v43  ;;  %8743 = vmatpush1.bf16.msra.mxu1 %v12134_v39  ;;  %v12195_v43 = vld [vmem:[%s15852_s12 + $0xf8] sm:$0xff]  }
 0x894   : > { %8707 = vmatprep.subr.bf16.mxu0 %v12139_v53  ;;  %8744 = vmatprep.subr.bf16.mxu1 %v12142_v62  ;;  %v12196_v39 = vld [vmem:[%s15852_s12 + $0xb8] sm:$0xff]   ;;  %v12197_v53 = vld [vmem:[%s15852_s12 + $0xf0] sm:$0xff]  }
 0x895   : > { %v12190_v62 = vld [vmem:[%s15852_s12 + $0x10] sm:$0xff]  }
 0x897   : > { %8708 = vmatpush2.bf16.msra.mxu0 %v12137_v51  ;;  %8745 = vmatpush2.bf16.msra.mxu1 %v12140_v24  ;;  %v12198_v51 = vld [vmem:[%s15852_s12 + $0xb0] sm:$0xff]   ;;  %v12191_v24 = vld [vmem:[%s15852_s12 + $0x48] sm:$0xff]  }
 0x898   : > { %8709 = vmatprep.subr.bf16.mxu0 %v12145_v60  ;;  %8746 = vmatprep.subr.bf16.mxu1 %v12148_v52  ;;  %v12199_v60 = vld [vmem:[%s15852_s12 + $0xe8] sm:$0xff]  }
 0x899   : > { %v12192_v52 = vld [vmem:[%s15852_s12 + $0x8] sm:$0xff]  }
 0x89b   : > { %8710 = vmatpush2.bf16.msra.mxu0 %v12143_v26  ;;  %8747 = vmatpush2.bf16.msra.mxu1 %v12146_v38  ;;  %v12200_v26 = vld [vmem:[%s15852_s12 + $0xa8] sm:$0xff]   ;;  %v12193_v38 = vld [vmem:[%s15852_s12 + $0x40] sm:$0xff]  }
 0x89c   : > { %8711 = vmatprep.subr.bf16.mxu0 %v12151_v22  ;;  %8748 = vmatprep.subr.bf16.mxu1 %v12154_v36  ;;  %v12201_v22 = vld [vmem:[%s15852_s12 + $0xe0] sm:$0xff]  }
 0x89d   : > { %v12194_v36 = vld [vmem:[%s15852_s12] sm:$0xff]  }
 0x89f   : > { %8712 = vmatpush2.bf16.msra.mxu0 %v12149_v56  ;;  %8749 = vmatpush2.bf16.msra.mxu1 %v12152_v42  ;;  %v12202_v56 = vld [vmem:[%s15852_s12 + $0xa0] sm:$0xff]   ;;  %v8769_v42 = vmax.f32 %v15525_v34, 0.0 }
 0x8a0   : > { %8713 = vmatprep.subr.bf16.mxu0 %v12157_v12  ;;  %8750 = vmatprep.subr.bf16.mxu1 %v12160_v37 }
 0x8a1   : > { %v8773_v12 = vpack.c.bf16 %v8769_v42, %v8769_v42 }
 0x8a3   : > { %8714 = vmatpush2.bf16.msra.mxu0 %v12155_v13  ;;  %8751 = vmatpush2.bf16.msra.mxu1 %v12158_v15  ;;  %v12203_v15 = vld [vmem:[%s15852_s12 + $0xd8] sm:$0xff]  }
 0x8a4   : > { %8715 = vmatprep.subr.bf16.mxu0 %v12163_v16  ;;  %8752 = vmatprep.subr.bf16.mxu1 %v12166_v30  ;;  %v12204_v30 = vld [vmem:[%s15852_s12 + $0x98] sm:$0xff]  }
 0x8a7   : > { %8716 = vmatpush2.bf16.msra.mxu0 %v12161_v63  ;;  %8753 = vmatpush2.bf16.msra.mxu1 %v12164_v14  ;;  %v12205_v14 = vld [vmem:[%s15852_s12 + $0xd0] sm:$0xff]  }
 0x8a8   : > { %8717 = vmatprep.subr.bf16.mxu0 %v12169_v10  ;;  %8754 = vmatprep.subr.bf16.mxu1 %v12172_v46  ;;  %v12206_v46 = vld [vmem:[%s15852_s12 + $0x90] sm:$0xff]  }
 0x8ab   : > { %8718 = vmatpush2.bf16.msra.mxu0 %v12167_v55  ;;  %8755 = vmatpush2.bf16.msra.mxu1 %v12170_v28  ;;  %v12208_v28 = vld [vmem:[%s15852_s12 + $0x88] sm:$0xff]  }
 0x8ac   : > { %8756 = vmatprep.subr.bf16.mxu1 %v12175_v18  ;;  %10712 = vmatprep.subr.bf16.mxu0 %v12176_v45 }
 0x8ae   : > { %v8475_v32 = vpop.f32.mrf.mxu0  ;;  %8720 = vmatmul.mubr.bf16.vlgmr.msra.gmra.mxu0 %v14731_v49  ;;  %v12183_v49 = vld [vmem:[%s15852_s12 + $0x68] sm:$0xff]  }
 0x8af   : > { %v8476_v29 = vadd.f32 %v8475_v32, %v8435_v5  ;;  %8757 = vmatpush2.bf16.msra.mxu1 %v12173_v20  ;;  %10713 = vmatpush3.bf16.msra.mxu0 %v12177_v3 }
 0x8b0   : > { %9072 = vmatprep.mubr.bf16.mxu0 %v8774_v40  ;;  %v8477_v35 = vpop.f32.mrf.mxu0  ;;  %8758 = vmatprep.subr.bf16.mxu1 %v12180_v59 }
 0x8b1   : > { %v8478_v47 = vadd.f32 %v8477_v35, %v8437_v19  ;;  %10714 = vmatprep.subr.bf16.mxu0 %v12181_v11 }
 0x8b2   : > { %v8479_v2 = vpop.f32.mrf.mxu0 }
 0x8b3   : > { %8759 = vmatpush2.bf16.msra.mxu1 %v12178_v1  ;;  %10715 = vmatpush3.bf16.msra.mxu0 %v12182_v61 }
 0x8b4   : > { %v8480_v23 = vpop.f32.mrf.mxu0  ;;  %10716 = vmatprep.subr.bf16.mxu0 %v12183_v49  ;;  %10734 = vmatprep.subr.bf16.mxu1 %v12195_v43 }
 0x8b6   : > { %v8516_v6 = vpop.f32.mrf.mxu1  ;;  %8761 = vmatmul.mubr.bf16.vlgmr.msra.gmra.mxu1 %v14909_v41  ;;  %v12189_v41 = vld [vmem:[%s15852_s12 + $0x50] sm:$0xff]  }
 0x8b7   : > { %v8517_v33 = vadd.f32 %v8516_v6, %v8476_v29  ;;  %10717 = vmatpush3.bf16.msra.mxu0 %v12184_v0  ;;  %10735 = vmatpush3.bf16.msra.mxu1 %v12196_v39 }
 0x8b8   : > { %v8518_v50 = vpop.f32.mrf.mxu1  ;;  %10718 = vmatprep.subr.bf16.mxu0 %v12185_v27  ;;  %10736 = vmatprep.subr.bf16.mxu1 %v12197_v53 }
 0x8b9   : > { %v8519_v9 = vadd.f32 %v8518_v50, %v8478_v47 }
 0x8ba   : > { %v8520_v31 = vpop.f32.mrf.mxu1 }
 0x8bb   : > { %10719 = vmatpush3.bf16.msra.mxu0 %v12186_v25  ;;  %10737 = vmatpush3.bf16.msra.mxu1 %v12198_v51  ;;  %v10165_v51 = vld [vmem:[%s15853_s13] ss:$0 sm:$0xff] }
 0x8bc   : > { %v8521_v21 = vpop.f32.mrf.mxu1  ;;  %10720 = vmatprep.subr.bf16.mxu0 %v12187_v58  ;;  %10738 = vmatprep.subr.bf16.mxu1 %v12199_v60 }
 0x8bf   : > { %10721 = vmatpush3.bf16.msra.mxu0 %v12188_v7  ;;  %10739 = vmatpush3.bf16.msra.mxu1 %v12200_v26 }
 0x8c0   : > { %10722 = vmatprep.subr.bf16.mxu0 %v12189_v41  ;;  %10740 = vmatprep.subr.bf16.mxu1 %v12201_v22 }
 0x8c3   : > { %10723 = vmatpush3.bf16.msra.mxu0 %v12190_v62  ;;  %10741 = vmatpush3.bf16.msra.mxu1 %v12202_v56 }
 0x8c4   : > { %10724 = vmatprep.subr.bf16.mxu0 %v12191_v24  ;;  %10742 = vmatprep.subr.bf16.mxu1 %v12203_v15 }
 0x8c7   : > { %10725 = vmatpush3.bf16.msra.mxu0 %v12192_v52  ;;  %10743 = vmatpush3.bf16.msra.mxu1 %v12204_v30 }
 0x8c8   : > { %10726 = vmatprep.subr.bf16.mxu0 %v12193_v38  ;;  %10744 = vmatprep.subr.bf16.mxu1 %v12205_v14 }
 0x8cb   : > { %10727 = vmatpush3.bf16.msra.mxu0 %v12194_v36  ;;  %10745 = vmatpush3.bf16.msra.mxu1 %v12206_v46 }
 0x8cc   : > { %10746 = vmatprep.subr.bf16.mxu1 %v12207_v17 }
 0x8ce   : > { %9073 = vmatmul.mubr.bf16.vlgmr.msra.gmra.mxu0 %v8773_v12 }
 0x8cf   : > { %10747 = vmatpush3.bf16.msra.mxu1 %v12208_v28 }
 0x8d0   : > { %10748 = vmatprep.subr.bf16.mxu1 %v12209_v44 }
 0x8d3   : > { %10749 = vmatpush3.bf16.msra.mxu1 %v12210_v48 }
 0x8ee   : > { %v8557_v37 = vpop.f32.mrf.mxu0 }
 0x8ef   : > { %v8558_v13 = vadd.f32 %v8557_v37, %v8517_v33 }
 0x8f0   : > { %v8559_v16 = vpop.f32.mrf.mxu0 }
 0x8f1   : > { %v8560_v63 = vadd.f32 %v8559_v16, %v8519_v9 }
 0x8f2   : > { %v8561_v34 = vpop.f32.mrf.mxu0 }
 0x8f4   : > { %v8562_v10 = vpop.f32.mrf.mxu0 }
 0x8f6   : > { %v8598_v4 = vpop.f32.mrf.mxu1 }
 0x8f7   : > { %v8599_v54 = vadd.f32 %v8598_v4, %v8558_v13 }
 0x8f8   : > { %v8600_v55 = vpop.f32.mrf.mxu1 }
 0x8f9   : > { %v8601_v18 = vadd.f32 %v8600_v55, %v8560_v63 }
 0x8fa   : > { %v8602_v45 = vpop.f32.mrf.mxu1 }
 0x8fc   : > { %v8603_v57 = vpop.f32.mrf.mxu1 }
 0x92e   : > { %v8639_v8 = vpop.f32.mrf.mxu0 }
 0x92f   : > { %v8640_v20 = vadd.f32 %v8639_v8, %v8599_v54 }
 0x930   : > { %v8641_v3 = vpop.f32.mrf.mxu0 }
 0x931   : > { %v8642_v59 = vadd.f32 %v8641_v3, %v8601_v18 }
 0x932   : > { %v8643_v5 = vpop.f32.mrf.mxu0 }
 0x934   : > { %v8644_v11 = vpop.f32.mrf.mxu0 }
 0x936   : > { %v8680_v40 = vpop.f32.mrf.mxu1 }
 0x937   : > { %v8681_v49 = vadd.f32 %v8680_v40, %v8640_v20 }
 0x938   : > { %v8682_v32 = vpop.f32.mrf.mxu1 }
 0x939   : > { %v8683_v2 = vadd.f32 %v8682_v32, %v8642_v59 }
 0x93a   : > { %v8684_v19 = vpop.f32.mrf.mxu1 }
 0x93c   : > { %v8685_v29 = vpop.f32.mrf.mxu1 }
 0x96e   : > { %v8721_v1 = vpop.f32.mrf.mxu0 }
 0x96f   : > { %v8722_v0 = vadd.f32 %v8721_v1, %v8681_v49 }
 0x970   : > { %v8723_v61 = vpop.f32.mrf.mxu0 }
 0x971   : > { %v8724_v27 = vadd.f32 %v8723_v61, %v8683_v2 }
 0x972   : > { %v8725_v35 = vpop.f32.mrf.mxu0 }
 0x974   : > { %v8726_v47 = vpop.f32.mrf.mxu0 }
 0x976   : > { %v8762_v23 = vpop.f32.mrf.mxu1 }
 0x977   : > { %v8763_v6 = vadd.f32 %v8762_v23, %v8722_v0 }
 0x978   : > { %v8764_v33 = vpop.f32.mrf.mxu1 }
 0x979   : > { %v8765_v25 = vadd.f32 %v8764_v33, %v8724_v27  ;;  %v8771_v50 = vmax.f32 %v8763_v6, 0.0 }
 0x97a   : > { %v8766_v58 = vpop.f32.mrf.mxu1 }
 0x97b   : > { %v8772_v9 = vmax.f32 %v8765_v25, 0.0  ;;  %v8775_v41 = vpack.c.bf16 %v8771_v50, %v8771_v50 }
 0x97c   : > { %v8767_v31 = vpop.f32.mrf.mxu1 }
 0x97d   : > { %v8776_v7 = vpack.c.bf16 %v8772_v9, %v8772_v9 }
 0x97f   : > { %9112 = vmatprep.mubr.bf16.mxu1 %v8776_v7 }
 0x980   : > { %9113 = vmatmul.mubr.bf16.vlgmr.msra.gmra.mxu1 %v8775_v41 }
 0x98e   : > { %v10728_v21 = vpop.f32.mrf.mxu0 }
 0x990   : > { %v10729_v43 = vpop.f32.mrf.mxu0 }
 0x991   : > { %v10730_v39 = vadd.f32 %v10729_v43, %v10728_v21 }
 0x992   : > { %v10731_v53 = vpop.f32.mrf.mxu0 }
 0x993   : > { %v9075_v52 = vadd.f32 %v10730_v39, %v10165_v51 }
 0x994   : > { %v10732_v62 = vpop.f32.mrf.mxu0 }
 0xa40   : > { %v10750_v24 = vpop.f32.mrf.mxu1 }
 0xa42   : > { %v10751_v60 = vpop.f32.mrf.mxu1 }
 0xa43   : > { %v10752_v26 = vadd.f32 %v10751_v60, %v10750_v24 }
 0xa44   : > { %v10753_v38 = vpop.f32.mrf.mxu1 }
 0xa45   : > { %v9115_v22 = vadd.f32 %v10752_v26, %v9075_v52 }
 0xa46   : > { %v10754_v36 = vpop.f32.mrf.mxu1 }
 0xa47   : > { %9120 = vst [vmem:[%s465_s19] sm:$0xff] %v9115_v22 }
 0xa48 PF: > { %s24_s29 = sadd.s32 1, %s12218_s29  }
 0xa49   : > { %p21_p4 = scmp.ge.s32.totalorder %s24_s29, 4  }
 0xa4b   :  { %23 = sbr.rel (!%p21_p4) target bundleno = 1 (0x1), region = 130 }

</bundles_post_ra>
